<compile_context>
chip_gen: v7x
topology: tpu7x:2x2x1
jax: 0.10.0
libtpu: 0.0.40
codegen_flags: <defaults>
</compile_context>

<pallas_src>
import functools

import jax
import jax.numpy as jnp
from jax import lax
from jax.experimental import pallas as pl
from jax.experimental.pallas import tpu as pltpu

EPS = 1e-5                      # args.layernorm_eps
NEG_INF = -1e30                 # finite mask value (avoids inf-inf -> NaN)


def _vmem_limit_bytes():
    """Generation-aware scoped-VMEM cap: ~75% of physical, at most 100 MiB."""
    try:
        info = pltpu.get_tpu_info()
        cap = int(getattr(info, "vmem_capacity_bytes", 128 * 1024 * 1024))
    except Exception:
        cap = 128 * 1024 * 1024
    return min(int(cap * 0.75), 100 * 1024 * 1024)


def _pick_tile(n, candidates):
    """Largest candidate that evenly divides n (falls back to n itself)."""
    for c in candidates:
        if n % c == 0:
            return c
    return n


def _layer_norm(x, g, b):
    mu = jnp.mean(x, axis=-1, keepdims=True)
    var = jnp.mean((x - mu) ** 2, axis=-1, keepdims=True)
    return (x - mu) * lax.rsqrt(var + EPS) * g + b


# --------------------------------------------------------------------------
# Kernel 1: pre-LN + fused QKV projection (row-tiled, single lane-dense store)
# --------------------------------------------------------------------------
def _ln_qkv_kernel(compute_dtype, x_ref, g_ref, b_ref, w_ref, bias_ref, qkv_ref):
    x = x_ref[...].astype(jnp.float32)                               # (tile, D)
    xn = _layer_norm(x, g_ref[...], b_ref[...]).astype(compute_dtype)
    qkv = jnp.dot(xn, w_ref[...],
                  preferred_element_type=jnp.float32) + bias_ref[...]
    qkv_ref[...] = qkv.astype(qkv_ref.dtype)                         # (tile, 3D)


# --------------------------------------------------------------------------
# Kernel 2: flash-style causal attention, grid = (B, H, T//tq, T//tk)
#   (fallback layout uses grid (B*H, 1, T//tq, T//tk) -> same body)
# --------------------------------------------------------------------------
def _flash_attn_kernel(tq, tk, compute_dtype,
                       q_ref, k_ref, v_ref, o_ref,
                       m_sc, l_sc, acc_sc):
    qi = pl.program_id(2)
    ki = pl.program_id(3)

    @pl.when(ki == 0)
    def _():
        m_sc[...] = jnp.full_like(m_sc, NEG_INF)
        l_sc[...] = jnp.zeros_like(l_sc)
        acc_sc[...] = jnp.zeros_like(acc_sc)

    # Compute only for kv blocks that intersect the causal lower triangle
    # (their DMA is also suppressed via the clamped index_map in the wrapper).
    @pl.when(ki * tk <= qi * tq + (tq - 1))
    def _():
        q = q_ref[0].astype(compute_dtype)                           # (tq, hd)
        k = k_ref[0].astype(compute_dtype)                           # (tk, hd)
        v = v_ref[0].astype(compute_dtype)                           # (tk, hd)

        # Contract last dims directly (no per-step transpose of k).
        s = lax.dot_general(q, k, (((1,), (1,)), ((), ())),
                            preferred_element_type=jnp.float32)      # (tq, tk)
        row = qi * tq + lax.broadcasted_iota(jnp.int32, (tq, tk), 0)
        col = ki * tk + lax.broadcasted_iota(jnp.int32, (tq, tk), 1)
        s = jnp.where(col <= row, s, NEG_INF)

        m_prev = m_sc[...]
        m_new = jnp.maximum(m_prev, jnp.max(s, axis=-1, keepdims=True))
        alpha = jnp.exp(m_prev - m_new)
        p = jnp.exp(s - m_new)
        l_sc[...] = alpha * l_sc[...] + jnp.sum(p, axis=-1, keepdims=True)
        acc_sc[...] = alpha * acc_sc[...] + jnp.dot(
            p.astype(compute_dtype), v, preferred_element_type=jnp.float32)
        m_sc[...] = m_new

    @pl.when(ki == pl.num_programs(3) - 1)
    def _():
        o_ref[0] = (acc_sc[...] *
                    pl.reciprocal(l_sc[...], approx=True)).astype(o_ref.dtype)


# --------------------------------------------------------------------------
# Kernel 3: out-proj + residual + pre-LN + FFN (F-tiled) + residual
#   grid = (rows//row_tile, F//tf); f axis is an "arbitrary" reduction.
# --------------------------------------------------------------------------
def _out_proj_ffn_kernel(compute_dtype, gelu_approx,
                         o_ref, x_ref,
                         wo_ref, bo_ref,
                         g_ref, b_ref,
                         w1_ref, b1_ref, w2_ref, b2_ref,
                         y_ref,
                         xn_sc, acc_sc):
    f = pl.program_id(1)

    @pl.when(f == 0)
    def _():
        o = o_ref[...].astype(compute_dtype)                         # (tile, D)
        attn_out = jnp.dot(o, wo_ref[...],
                           preferred_element_type=jnp.float32) + bo_ref[...]
        x1 = x_ref[...].astype(jnp.float32) + attn_out               # residual*1 + x
        xn_sc[...] = _layer_norm(x1, g_ref[...], b_ref[...]).astype(xn_sc.dtype)
        acc_sc[...] = x1 + b2_ref[...]        # second residual + fc2 bias folded in

    h = jnp.dot(xn_sc[...], w1_ref[...],
                preferred_element_type=jnp.float32) + b1_ref[...]     # (tile, tf)
    # Default exact erf gelu matches torch F.gelu; approximate=True maps to EUP.
    h = jax.nn.gelu(h, approximate=gelu_approx)
    acc_sc[...] += jnp.dot(h.astype(compute_dtype), w2_ref[...],
                           preferred_element_type=jnp.float32)

    @pl.when(f == pl.num_programs(1) - 1)
    def _():
        y_ref[...] = acc_sc[...].astype(y_ref.dtype)


# --------------------------------------------------------------------------
# Optional kernel: full attention probabilities, only when the caller asks.
# --------------------------------------------------------------------------
def _attn_probs_kernel(tq, compute_dtype, q_ref, k_ref, p_ref):
    qi = pl.program_id(1)
    t_total = k_ref.shape[1]
    q = q_ref[0].astype(compute_dtype)                               # (tq, hd)
    k = k_ref[0].astype(compute_dtype)                               # (T, hd)
    s = lax.dot_general(q, k, (((1,), (1,)), ((), ())),
                        preferred_element_type=jnp.float32)          # (tq, T)
    row = qi * tq + lax.broadcasted_iota(jnp.int32, (tq, t_total), 0)
    col = lax.broadcasted_iota(jnp.int32, (tq, t_total), 1)
    s = jnp.where(col <= row, s, NEG_INF)
    m = jnp.max(s, axis=-1, keepdims=True)
    e = jnp.exp(s - m)
    p_ref[0] = (e / jnp.sum(e, axis=-1, keepdims=True)).astype(p_ref.dtype)


# --------------------------------------------------------------------------
# One-time parameter preparation: fuse QKV, fold q scaling, cast MXU weights.
# --------------------------------------------------------------------------
def prepare_decoder_params(params, num_heads, compute_dtype=jnp.bfloat16):
    D = params['wq'].shape[0]
    hd = D // num_heads
    scaling = hd ** -0.5
    wqkv = jnp.concatenate(
        [params['wq'] * scaling, params['wk'], params['wv']], axis=1)
    bqkv = jnp.concatenate(
        [params['bq'] * scaling, params['bk'], params['bv']], axis=1)
    return dict(
        compute_dtype=compute_dtype,
        ln1_g=params['ln1_g'].astype(jnp.float32),
        ln1_b=params['ln1_b'].astype(jnp.float32),
        ln2_g=params['ln2_g'].astype(jnp.float32),
        ln2_b=params['ln2_b'].astype(jnp.float32),
        wqkv=wqkv.astype(compute_dtype), bqkv=bqkv.astype(jnp.float32),
        wo=params['wo'].astype(compute_dtype), bo=params['bo'].astype(jnp.float32),
        w1=params['w1'].astype(compute_dtype), b1=params['b1'].astype(jnp.float32),
        w2=params['w2'].astype(compute_dtype), b2=params['b2'].astype(jnp.float32),
    )


# --------------------------------------------------------------------------
# Wrapper
# --------------------------------------------------------------------------
def decoder_layer_forward(x, params, num_heads, need_attn=False,
                          gelu_approx=False):
    compute_dtype = params['compute_dtype']
    B, T, D = x.shape
    F = params['w1'].shape[1]
    H = num_heads
    hd = D // H
    rows = B * T
    out_dtype = x.dtype

    cp = functools.partial(pltpu.CompilerParams,
                           vmem_limit_bytes=_vmem_limit_bytes())

    xf = x.reshape(rows, D)
    # Prefer 256 rows: MXU-efficient M and >=2 parallel blocks for megacore.
    row_tile = _pick_tile(rows, (256, 512, 128, 64, 32, 16, 8))

    # ---- kernel 1: LN1 + fused QKV projection ------------------------------
    row_spec1 = pl.BlockSpec((row_tile, D), lambda i: (i, 0))
    vec1 = pl.BlockSpec((1, D), lambda i: (0, 0))
    qkv = pl.pallas_call(
        functools.partial(_ln_qkv_kernel, compute_dtype),
        out_shape=jax.ShapeDtypeStruct((rows, 3 * D), compute_dtype),
        grid=(rows // row_tile,),
        in_specs=[
            row_spec1,
            vec1, vec1,                                           # ln1 gamma/beta
            pl.BlockSpec((D, 3 * D), lambda i: (0, 0)),           # fused wqkv
            pl.BlockSpec((1, 3 * D), lambda i: (0, 0)),           # fused bias
        ],
        out_specs=pl.BlockSpec((row_tile, 3 * D), lambda i: (i, 0)),
        compiler_params=cp(dimension_semantics=("parallel",)),
    )(xf, params['ln1_g'], params['ln1_b'], params['wqkv'], params['bqkv'])

    # ---- kernel 2: flash-style causal attention ----------------------------
    tq = _pick_tile(T, (256, 128, 64, 32, 16, 8))
    tk = _pick_tile(T, (256, 128, 64, 32, 16, 8))
    flash = functools.partial(_flash_attn_kernel, tq, tk, compute_dtype)
    scratch = [pltpu.VMEM((tq, 1), jnp.float32),      # running max m
               pltpu.VMEM((tq, 1), jnp.float32),      # running denom l
               pltpu.VMEM((tq, hd), jnp.float32)]     # running acc
    sem4 = ("parallel", "parallel", "parallel", "arbitrary")

    qh = kh = None
    if hd % 128 == 0:
        # Transpose-free: q/k/v read straight out of the (B,T,3D) qkv buffer,
        # context written straight into (B,T,D) at the head's lane block.
        qkv3 = qkv.reshape(B, T, 3 * D)

        def q_map(b, h, qi, ki):
            return (b, qi, h)

        def kv_map(base):
            def m(b, h, qi, ki):
                kc = jnp.minimum(ki, (qi * tq + tq - 1) // tk)  # causal DMA clamp
                return (b, kc, base + h)
            return m

        ctx = pl.pallas_call(
            flash,
            out_shape=jax.ShapeDtypeStruct((B, T, D), compute_dtype),
            grid=(B, H, T // tq, T // tk),
            in_specs=[
                pl.BlockSpec((1, tq, hd), q_map),
                pl.BlockSpec((1, tk, hd), kv_map(H)),             # k columns
                pl.BlockSpec((1, tk, hd), kv_map(2 * H)),         # v columns
            ],
            out_specs=pl.BlockSpec((1, tq, hd), lambda b, h, qi, ki: (b, qi, h)),
            scratch_shapes=scratch,
            compiler_params=cp(dimension_semantics=sem4),
        )(qkv3, qkv3, qkv3)
        attn_flat = ctx.reshape(rows, D)
    else:
        # Fallback for head_dim < 128: head-major layout (extra HBM passes).
        qkv_h = (qkv.reshape(B, T, 3, H, hd)
                     .transpose(2, 0, 3, 1, 4)
                     .reshape(3, B * H, T, hd))
        qh, kh, vh = qkv_h[0], qkv_h[1], qkv_h[2]

        def q_map_f(bh, h, qi, ki):
            return (bh, qi, 0)

        def kv_map_f(bh, h, qi, ki):
            kc = jnp.minimum(ki, (qi * tq + tq - 1) // tk)
            return (bh, kc, 0)

        oh = pl.pallas_call(
            flash,
            out_shape=jax.ShapeDtypeStruct((B * H, T, hd), compute_dtype),
            grid=(B * H, 1, T // tq, T // tk),
            in_specs=[
                pl.BlockSpec((1, tq, hd), q_map_f),
                pl.BlockSpec((1, tk, hd), kv_map_f),
                pl.BlockSpec((1, tk, hd), kv_map_f),
            ],
            out_specs=pl.BlockSpec((1, tq, hd), lambda bh, h, qi, ki: (bh, qi, 0)),
            scratch_shapes=scratch,
            compiler_params=cp(dimension_semantics=sem4),
        )(qh, kh, vh)
        attn_flat = (oh.reshape(B, H, T, hd)
                       .transpose(0, 2, 1, 3).reshape(rows, D))

    # ---- kernel 3: out-proj + residual + LN2 + FFN (F-tiled) + residual ----
    tf = _pick_tile(F, (1024, 512, 256, 128))
    ffn_kernel = functools.partial(_out_proj_ffn_kernel, compute_dtype, gelu_approx)
    row_spec3 = pl.BlockSpec((row_tile, D), lambda i, f: (i, 0))
    vec3 = pl.BlockSpec((1, D), lambda i, f: (0, 0))
    y = pl.pallas_call(
        ffn_kernel,
        out_shape=jax.ShapeDtypeStruct((rows, D), out_dtype),
        grid=(rows // row_tile, F // tf),
        in_specs=[
            row_spec3,                                            # attention ctx
            row_spec3,                                            # residual x
            pl.BlockSpec((D, D), lambda i, f: (0, 0)), vec3,      # wo, bo
            vec3, vec3,                                           # ln2 gamma/beta
            pl.BlockSpec((D, tf), lambda i, f: (0, f)),           # w1 block
            pl.BlockSpec((1, tf), lambda i, f: (0, f)),           # b1 block
            pl.BlockSpec((tf, D), lambda i, f: (f, 0)),           # w2 block
            vec3,                                                 # b2
        ],
        out_specs=row_spec3,
        scratch_shapes=[
            pltpu.VMEM((row_tile, D), compute_dtype),   # normalized x (reused)
            pltpu.VMEM((row_tile, D), jnp.float32),     # residual + FFN acc
        ],
        compiler_params=cp(dimension_semantics=("parallel", "arbitrary")),
    )(attn_flat, xf, params['wo'], params['bo'],
      params['ln2_g'], params['ln2_b'],
      params['w1'], params['b1'], params['w2'], params['b2'])

    y = y.reshape(B, T, D)

    # ---- optional: attention probabilities (off the hot path) --------------
    attn = None
    if need_attn:
        if qh is None:
            qkv5 = qkv.reshape(B, T, 3, H, hd)
            qh = qkv5[:, :, 0].transpose(0, 2, 1, 3).reshape(B * H, T, hd)
            kh = qkv5[:, :, 1].transpose(0, 2, 1, 3).reshape(B * H, T, hd)
        probs_kernel = functools.partial(_attn_probs_kernel, tq, compute_dtype)
        attn = pl.pallas_call(
            probs_kernel,
            out_shape=jax.ShapeDtypeStruct((B * H, T, T), jnp.float32),
            grid=(B * H, T // tq),
            in_specs=[
                pl.BlockSpec((1, tq, hd), lambda b, qi: (b, qi, 0)),
                pl.BlockSpec((1, T, hd), lambda b, qi: (b, 0, 0)),
            ],
            out_specs=pl.BlockSpec((1, tq, T), lambda b, qi: (b, qi, 0)),
            compiler_params=cp(dimension_semantics=("parallel", "parallel")),
        )(qh, kh)
        attn = attn.reshape(B, H, T, T)

    return y, attn, None, None


# --------------------------------------------------------------------------
# Pure-JAX reference of the same forward pass
# --------------------------------------------------------------------------
def ref_decoder_layer(x, p, num_heads):
    B, T, D = x.shape
    H = num_heads
    hd = D // H
    residual = x
    xn = _layer_norm(x, p['ln1_g'][0], p['ln1_b'][0])
    q = (xn @ p['wq'] + p['bq'][0]) * hd ** -0.5
    k = xn @ p['wk'] + p['bk'][0]
    v = xn @ p['wv'] + p['bv'][0]
    q = q.reshape(B, T, H, hd)
    k = k.reshape(B, T, H, hd)
    v = v.reshape(B, T, H, hd)
    s = jnp.einsum('bqhd,bkhd->bhqk', q, k)
    mask = jnp.tril(jnp.ones((T, T), bool))
    s = jnp.where(mask, s, -jnp.inf)
    probs = jax.nn.softmax(s, axis=-1)
    o = jnp.einsum('bhqk,bkhd->bqhd', probs, v).reshape(B, T, D)
    x = residual + (o @ p['wo'] + p['bo'][0])
    residual = x
    xn = _layer_norm(x, p['ln2_g'][0], p['ln2_b'][0])
    h = jax.nn.gelu(xn @ p['w1'] + p['b1'][0], approximate=False)
    x = residual + (h @ p['w2'] + p['b2'][0])
    return x, probs


def _make_params(key, D, F):
    ks = jax.random.split(key, 16)
    w = lambda k, shape: (0.02 * jax.random.normal(k, shape)).astype(jnp.float32)
    return dict(
        ln1_g=(1.0 + 0.1 * jax.random.normal(ks[12], (1, D))).astype(jnp.float32),
        ln1_b=(0.1 * jax.random.normal(ks[13], (1, D))).astype(jnp.float32),
        ln2_g=(1.0 + 0.1 * jax.random.normal(ks[14], (1, D))).astype(jnp.float32),
        ln2_b=(0.1 * jax.random.normal(ks[15], (1, D))).astype(jnp.float32),
        wq=w(ks[0], (D, D)), bq=w(ks[1], (1, D)),
        wk=w(ks[2], (D, D)), bk=w(ks[3], (1, D)),
        wv=w(ks[4], (D, D)), bv=w(ks[5], (1, D)),
        wo=w(ks[6], (D, D)), bo=w(ks[7], (1, D)),
        w1=w(ks[8], (D, F)), b1=w(ks[9], (1, F)),
        w2=w(ks[10], (F, D)), b2=w(ks[11], (1, D)),
    )


if __name__ == "__main__":
    key = jax.random.PRNGKey(0)
    k1, k2, k3, k4 = jax.random.split(key, 4)

    # ---- Config A: head_dim = 128 -> transpose-free attention layout -------
    B, T, D, H, F = 2, 512, 256, 2, 512
    params = _make_params(k1, D, F)
    x = jax.random.normal(k2, (B, T, D), jnp.float32)
    y_ref, attn_ref = ref_decoder_layer(x, params, H)

    # f32 path with attention-probs output (full module semantics).
    prep_f32 = prepare_decoder_params(params, H, compute_dtype=jnp.float32)
    y, attn, _, l_aux = decoder_layer_forward(x, prep_f32, H, need_attn=True)
    jax.block_until_ready((y, attn))
    assert l_aux is None
    assert jnp.allclose(y, y_ref, atol=2e-3, rtol=2e-3), "f32 output mismatch"
    assert jnp.allclose(attn, attn_ref, atol=2e-3, rtol=2e-3), "attn mismatch"

    # Hot path: bf16 MXU operands + bf16 inter-kernel intermediates,
    # f32 accumulation / stats, no probability writeback.
    prep_bf16 = prepare_decoder_params(params, H, compute_dtype=jnp.bfloat16)
    y_bf16, attn_none, _, _ = decoder_layer_forward(x, prep_bf16, H,
                                                    need_attn=False)
    jax.block_until_ready(y_bf16)
    assert attn_none is None
    assert jnp.allclose(y_bf16, y_ref, atol=6e-2, rtol=6e-2), "bf16 mismatch"

    # ---- Config B: head_dim = 32 -> head-major fallback layout -------------
    Bb, Tb, Db, Hb, Fb = 2, 128, 128, 4, 256
    params_b = _make_params(k3, Db, Fb)
    xb = jax.random.normal(k4, (Bb, Tb, Db), jnp.float32)
    yb_ref, _ = ref_decoder_layer(xb, params_b, Hb)
    prep_b = prepare_decoder_params(params_b, Hb, compute_dtype=jnp.float32)
    yb, _, _, _ = decoder_layer_forward(xb, prep_b, Hb)
    jax.block_until_ready(yb)
    assert jnp.allclose(yb, yb_ref, atol=2e-3, rtol=2e-3), "fallback mismatch"

    print("KERNEL_OK")
</pallas_src>

<mosaic_0001>
module attributes {stable_mosaic.version = 11 : i64} {
  func.func @_ln_qkv_kernel(%arg0: i32, %arg1: memref<256x256xf32, #tpu.memory_space<vmem>>, %arg2: memref<1x256xf32, #tpu.memory_space<vmem>>, %arg3: memref<1x256xf32, #tpu.memory_space<vmem>>, %arg4: memref<256x768xf32, #tpu.memory_space<vmem>>, %arg5: memref<1x768xf32, #tpu.memory_space<vmem>>, %arg6: memref<256x768xf32, #tpu.memory_space<vmem>>) attributes {dimension_semantics = [#tpu.dimension_semantics<parallel>], iteration_bounds = array<i64: 4>, scalar_prefetch = 0 : i64, scratch_operands = 0 : i64, tpu.core_type = #tpu.core_type<tc>, window_params = [{transform_indices = @transform_0, window_bounds = array<i64: 256, 256>}, {pipeline_mode = #tpu.pipeline_mode<synchronous>, transform_indices = @transform_1, window_bounds = array<i64: 1, 256>}, {pipeline_mode = #tpu.pipeline_mode<synchronous>, transform_indices = @transform_2, window_bounds = array<i64: 1, 256>}, {pipeline_mode = #tpu.pipeline_mode<synchronous>, transform_indices = @transform_3, window_bounds = array<i64: 256, 768>}, {pipeline_mode = #tpu.pipeline_mode<synchronous>, transform_indices = @transform_4, window_bounds = array<i64: 1, 768>}, {transform_indices = @transform_5, window_bounds = array<i64: 256, 768>}]} {
    %c0 = arith.constant 0 : index
    %c0_0 = arith.constant 0 : index
    %0 = vector.load %arg1[%c0, %c0_0] : memref<256x256xf32, #tpu.memory_space<vmem>>, vector<256x256xf32>
    %c0_1 = arith.constant 0 : index
    %c0_2 = arith.constant 0 : index
    %1 = vector.load %arg2[%c0_1, %c0_2] : memref<1x256xf32, #tpu.memory_space<vmem>>, vector<1x256xf32>
    %c0_3 = arith.constant 0 : index
    %c0_4 = arith.constant 0 : index
    %2 = vector.load %arg3[%c0_3, %c0_4] : memref<1x256xf32, #tpu.memory_space<vmem>>, vector<1x256xf32>
    %cst = arith.constant dense<0.000000e+00> : vector<256xf32>
    %3 = vector.multi_reduction <add>, %0, %cst [1] : vector<256x256xf32> to vector<256xf32>
    %4 = vector.shape_cast %3 : vector<256xf32> to vector<256x1xf32>
    %cst_5 = arith.constant 2.560000e+02 : f32
    %5 = vector.broadcast %cst_5 : f32 to vector<256x1xf32>
    %6 = arith.divf %4, %5 : vector<256x1xf32>
    %7 = vector.broadcast %6 : vector<256x1xf32> to vector<256x256xf32>
    %8 = arith.subf %0, %7 : vector<256x256xf32>
    %9 = arith.mulf %8, %8 : vector<256x256xf32>
    %cst_6 = arith.constant dense<0.000000e+00> : vector<256xf32>
    %10 = vector.multi_reduction <add>, %9, %cst_6 [1] : vector<256x256xf32> to vector<256xf32>
    %11 = vector.shape_cast %10 : vector<256xf32> to vector<256x1xf32>
    %cst_7 = arith.constant 2.560000e+02 : f32
    %12 = vector.broadcast %cst_7 : f32 to vector<256x1xf32>
    %13 = arith.divf %11, %12 : vector<256x1xf32>
    %14 = vector.broadcast %6 : vector<256x1xf32> to vector<256x256xf32>
    %15 = arith.subf %0, %14 : vector<256x256xf32>
    %cst_8 = arith.constant 9.99999974E-6 : f32
    %16 = vector.broadcast %cst_8 : f32 to vector<256x1xf32>
    %17 = arith.addf %13, %16 : vector<256x1xf32>
    %18 = math.rsqrt %17 : vector<256x1xf32>
    %19 = vector.broadcast %18 : vector<256x1xf32> to vector<256x256xf32>
    %20 = arith.mulf %15, %19 : vector<256x256xf32>
    %21 = vector.broadcast %1 : vector<1x256xf32> to vector<256x256xf32>
    %22 = arith.mulf %20, %21 : vector<256x256xf32>
    %23 = vector.broadcast %2 : vector<1x256xf32> to vector<256x256xf32>
    %24 = arith.addf %22, %23 : vector<256x256xf32>
    %c0_9 = arith.constant 0 : index
    %c0_10 = arith.constant 0 : index
    %25 = vector.load %arg4[%c0_9, %c0_10] : memref<256x768xf32, #tpu.memory_space<vmem>>, vector<256x768xf32>
    %cst_11 = arith.constant dense<0.000000e+00> : vector<256x768xf32>
    %26 = tpu.matmul %24, %25, %cst_11 {dimension_numbers = #tpu.dot_dimension_numbers<[1], [0], [0], [1], [0, 0, 1, 1], [], []>} : vector<256x256xf32>, vector<256x768xf32>, vector<256x768xf32> -> vector<256x768xf32>
    %c0_12 = arith.constant 0 : index
    %c0_13 = arith.constant 0 : index
    %27 = vector.load %arg5[%c0_12, %c0_13] : memref<1x768xf32, #tpu.memory_space<vmem>>, vector<1x768xf32>
    %28 = vector.broadcast %27 : vector<1x768xf32> to vector<256x768xf32>
    %29 = arith.addf %26, %28 : vector<256x768xf32>
    %c0_14 = arith.constant 0 : index
    %c0_15 = arith.constant 0 : index
    %30 = vector.load %arg6[%c0_14, %c0_15] : memref<256x768xf32, #tpu.memory_space<vmem>>, vector<256x768xf32>
    tpu.vector_store %arg6[%c0_14, %c0_15], %29 {strides = array<i32>} : memref<256x768xf32, #tpu.memory_space<vmem>>, vector<256x768xf32>,
    return
  }
  func.func @transform_0(%arg0: i32) -> (i32, i32) {
    %c0_i32 = arith.constant 0 : i32
    %c0_i32_0 = arith.constant 0 : i32
    return %arg0, %c0_i32 : i32, i32
  }
  func.func @transform_1(%arg0: i32) -> (i32, i32) {
    %c0_i32 = arith.constant 0 : i32
    %c0_i32_0 = arith.constant 0 : i32
    %c0_i32_1 = arith.constant 0 : i32
    return %c0_i32, %c0_i32_0 : i32, i32
  }
  func.func @transform_2(%arg0: i32) -> (i32, i32) {
    %c0_i32 = arith.constant 0 : i32
    %c0_i32_0 = arith.constant 0 : i32
    %c0_i32_1 = arith.constant 0 : i32
    return %c0_i32, %c0_i32_0 : i32, i32
  }
  func.func @transform_3(%arg0: i32) -> (i32, i32) {
    %c0_i32 = arith.constant 0 : i32
    %c0_i32_0 = arith.constant 0 : i32
    %c0_i32_1 = arith.constant 0 : i32
    return %c0_i32, %c0_i32_0 : i32, i32
  }
  func.func @transform_4(%arg0: i32) -> (i32, i32) {
    %c0_i32 = arith.constant 0 : i32
    %c0_i32_0 = arith.constant 0 : i32
    %c0_i32_1 = arith.constant 0 : i32
    return %c0_i32, %c0_i32_0 : i32, i32
  }
  func.func @transform_5(%arg0: i32) -> (i32, i32) {
    %c0_i32 = arith.constant 0 : i32
    %c0_i32_0 = arith.constant 0 : i32
    return %arg0, %c0_i32 : i32, i32
  }
}

</mosaic_0001>

<bundles_post_ra>
// kernel: tpu_custom_call.1
= control target key start
LH: loop header
LB: loop body
LE: loop exit
PB: predicated region body
PF: predicated region fallthrough
CT: control target
= control target key end

     0   :  { %10 = vsyncpa [#allocation3], 0  ;;  %s5343_s0 = inlined_call_operand.hbm [shape: f32[1024,256], index: 0, kind: input, shape index: {}]   ;;  %s5344_s1 = inlined_call_operand.hbm [shape: f32[1,256], index: 1, kind: input, shape index: {}]   ;;  %s5345_s2 = inlined_call_operand.hbm [shape: f32[1,256], index: 2, kind: input, shape index: {}]   ;;  %s5346_s3 = inlined_call_operand.hbm [shape: f32[256,768], index: 3, kind: input, shape index: {}]   ;;  %s5347_s4 = inlined_call_operand.hbm [shape: f32[1,768], index: 4, kind: input, shape index: {}]   ;;  %s5348_s5 = inlined_call_operand.hbm [shape: f32[1024,768], index: 5, kind: output, shape index: {}]  }
   0x1   :  { %12 = vsyncpa [#allocation3 + $0x1], 0 }
   0x2   :  { %13 = vsyncpa [#allocation6], 0 }
   0x3   :  { %14 = vsyncpa [#allocation9], 0 }
   0x4   :  { %15 = vsyncpa [#allocation4], 0 }
   0x5   :  { %17 = vsyncpa [#allocation4 + $0x1], 0  ;;  %s3007_s18 = smov 0   ;;  %s3009_s19 = smov 0  }
   0x6   :  { %s3011_s20 = smov 0   ;;  %s3013_s21 = smov 0  }
   0x7 LB: > { %s3028_s22 = sadd.s32 4294967295, %s2963_s21   ;;  %s2340_s23 = sadd.s32 4294967294, %s2963_s21   ;;  %s2963_s21 = sphi %s3013_s21, %s5995_s21   ;;  %s2959_s20 = sphi %s3011_s20, %s5994_s20   ;;  %s2955_s19 = sphi %s3009_s19, %s5993_s19   ;;  %s2951_s18 = sphi %s3007_s18, %s5992_s18  }
   0x8   : > { %p43_p0 = scmp.ne.s32.totalorder %s2955_s19, %s2951_s18  ;;  %p5349_p1 = scmp.eq.s32.totalorder %s3028_s22, 0 }
   0x9   : > { %p157_p3 = scmp.eq.s32.totalorder %s2340_s23, 3  ;;  %p2341_p5 = scmp.ge.s32.totalorder %s2963_s21, 1 }
   0xa   : > { %p3037_p4 = por %p5349_p1, %p43_p0  ;;  %p164_p7 = scmp.lt.s32.totalorder %s2963_s21, 5 }
   0xb   : > { %p3042_p6 = por %p157_p3, %p43_p0  ;;  %s2965_s27 = smov [#allocation5]  }
   0xc   : > { %s5559_s24 = scalar_select %p3037_p4, 1, 0 }
   0xd   : > { %s5560_s25 = scalar_select %p3042_p6, 1, 0 }
   0xe   : > { %p3047_p8 = pnand %p2341_p5, %p164_p7  ;;  %s177_s28 = sshll.u32 %s2965_s27, 4  ;;  %s178_s28 = int_to_ptr.vmem [resolvable:$true] %s177_s28 }
   0xf   : > { %s2966_s29 = smov [#allocation8]   ;;  %s2967_s7 = smov [#allocation7]  }
  0x10   : > { %s5561_s26 = scalar_select %p3047_p8, 1, 0 }
  0x11   : > { %p2610_p9 = pneg %p3047_p8  ;;  %s198_s30 = sshll.u32 %s2966_s29, 4  ;;  %s3059_s30 = int_to_ptr.vmem [resolvable:$true] %s198_s30 }
  0x12   : > { %s3061_s8 = sshll.u32 %s2967_s7, 4  ;;  %s2747_s11 = scalar_lea.hbm %s5344_s1, 32  ;;  %s189_s8 = int_to_ptr.vmem [resolvable:$true] %s3061_s8 }
  0x13   : > { %p3055_p10 = pnand %p2610_p9, %p5349_p1  ;;  %p2748_p11 = scmp.ne.s32.totalorder %s5344_s1, %s2747_s11 }
  0x14   : > { %p2754_p3 = scmp.lt.u32.totalorder %s2747_s11, %s5344_s1 }
  0x15   : > { %p3071_p12 = pneg %p3055_p10 }
  0x17   : > { %p2750_p13 = pnand %p3071_p12, %p2748_p11 }
  0x19   : > { %p2751_p0 = pneg %p2750_p13 }
  0x1b   : > { %p2756_p5 = pnand %p2754_p3, %p2751_p0 }
  0x1d   : > { %2759 = shalt.err (!%p2756_p5)
}
  0x1e   : > { %s2760_s17 = scalar_lea.vmem %s178_s28, 32  ;;  %p2768_p2 = scmp.lt.s32.totalorder %s178_s28, %s178_s28 }
  0x1f   : > { %p2761_p7 = scmp.ne.s32.totalorder %s178_s28, %s2760_s17  ;;  %p2769_p6 = scmp.lt.s32.totalorder %s2760_s17, %s2760_s17 }
  0x21   : > { %p2763_p9 = pnand %p2761_p7, %p3071_p12  ;;  %p2770_p4 = por %p2769_p6, %p2768_p2 }
  0x23   : > { %p2764_p1 = pneg %p2763_p9 }
  0x25   : > { %p2771_p8 = pnand %p2770_p4, %p2764_p1 }
  0x27   : > { %2774 = shalt.err (!%p2771_p8)
}
  0x28   : > { %2613 = dma.hbm_to_vmem [thread:$0]  (!%p3055_p10), %s5344_s1, 32, %s178_s28, [#allocation6]  }
  0x29   : > { %s2775_s9 = scalar_lea.hbm %s5346_s3, 24576 }
  0x2a   : > { %p2776_p11 = scmp.ne.s32.totalorder %s5346_s3, %s2775_s9  ;;  %p2782_p1 = scmp.lt.u32.totalorder %s2775_s9, %s5346_s3 }
  0x2c   : > { %p2778_p13 = pnand %p2776_p11, %p3071_p12 }
  0x2e   : > { %p2779_p2 = pneg %p2778_p13 }
  0x30   : > { %p2784_p4 = pnand %p2782_p1, %p2779_p2 }
  0x32   : > { %2787 = shalt.err (!%p2784_p4)
}
  0x33   : > { %s2788_s28 = scalar_lea.vmem %s3059_s30, 24576  ;;  %p2796_p3 = scmp.lt.s32.totalorder %s3059_s30, %s3059_s30 }
  0x34   : > { %p2789_p6 = scmp.ne.s32.totalorder %s3059_s30, %s2788_s28  ;;  %p2797_p5 = scmp.lt.s32.totalorder %s2788_s28, %s2788_s28 }
  0x36   : > { %p2791_p8 = pnand %p2789_p6, %p3071_p12  ;;  %p2798_p7 = por %p2797_p5, %p2796_p3 }
  0x38   : > { %p2792_p0 = pneg %p2791_p8 }
  0x3a   : > { %p2799_p9 = pnand %p2798_p7, %p2792_p0 }
  0x3c   : > { %2802 = shalt.err (!%p2799_p9)
}
  0x3d   : > { %s2968_s15 = smov 768   ;;  %s2969_s16 = smov 48  }
  0x3e   : > { %2619 = dma.hbm_to_vmem [thread:$0]  (!%p3055_p10), %s5346_s3, 24576, %s3059_s30, [#allocation9], %s2968_s15, %s2968_s15, %s2969_s16  }
  0x3f   : > { %s2803_s7 = scalar_lea.hbm %s5345_s2, 32 }
  0x40   : > { %p2804_p11 = scmp.ne.s32.totalorder %s5345_s2, %s2803_s7  ;;  %p2810_p1 = scmp.lt.u32.totalorder %s2803_s7, %s5345_s2 }
  0x42   : > { %p2806_p13 = pnand %p2804_p11, %p3071_p12 }
  0x44   : > { %p2807_p2 = pneg %p2806_p13 }
  0x46   : > { %p2812_p4 = pnand %p2810_p1, %p2807_p2 }
  0x48   : > { %2815 = shalt.err (!%p2812_p4)
}
  0x49   : > { %s2816_s13 = scalar_lea.vmem %s189_s8, 32  ;;  %p2824_p3 = scmp.lt.s32.totalorder %s189_s8, %s189_s8 }
  0x4a   : > { %p2817_p6 = scmp.ne.s32.totalorder %s189_s8, %s2816_s13  ;;  %p2825_p5 = scmp.lt.s32.totalorder %s2816_s13, %s2816_s13 }
  0x4c   : > { %p2819_p8 = pnand %p2817_p6, %p3071_p12  ;;  %p2826_p7 = por %p2825_p5, %p2824_p3 }
  0x4e   : > { %p2820_p0 = pneg %p2819_p8 }
  0x50   : > { %p2827_p9 = pnand %p2826_p7, %p2820_p0 }
  0x52   : > { %2830 = shalt.err (!%p2827_p9)
}
  0x53   : > { %2616 = dma.hbm_to_vmem [thread:$0]  (!%p3055_p10), %s5345_s2, 32, %s189_s8, [#allocation6]  }
  0x54   : > { %s2970_s15 = smov [#allocation10]   ;;  %s2831_s27 = scalar_lea.hbm %s5347_s4, 96 }
  0x55   : > { %s212_s16 = sshll.u32 %s2970_s15, 4  ;;  %p2832_p11 = scmp.ne.s32.totalorder %s5347_s4, %s2831_s27  ;;  %s213_s16 = int_to_ptr.vmem [resolvable:$true] %s212_s16 }
  0x56   : > { %p2838_p1 = scmp.lt.u32.totalorder %s2831_s27, %s5347_s4 }
  0x57   : > { %p2834_p13 = pnand %p2832_p11, %p3071_p12 }
  0x59   : > { %p2835_p2 = pneg %p2834_p13 }
  0x5b   : > { %p2840_p4 = pnand %p2838_p1, %p2835_p2 }
  0x5d   : > { %2843 = shalt.err (!%p2840_p4)
}
  0x5e   : > { %s2844_s8 = scalar_lea.vmem %s213_s16, 96  ;;  %p2852_p3 = scmp.lt.s32.totalorder %s213_s16, %s213_s16 }
  0x5f   : > { %p2845_p6 = scmp.ne.s32.totalorder %s213_s16, %s2844_s8  ;;  %p2853_p5 = scmp.lt.s32.totalorder %s2844_s8, %s2844_s8 }
  0x61   : > { %p2847_p8 = pnand %p2845_p6, %p3071_p12  ;;  %p2854_p7 = por %p2853_p5, %p2852_p3 }
  0x63   : > { %p2848_p0 = pneg %p2847_p8 }
  0x65   : > { %p2855_p9 = pnand %p2854_p7, %p2848_p0 }
  0x67   : > { %2858 = shalt.err (!%p2855_p9)
}
  0x68   : > { %2622 = dma.hbm_to_vmem [thread:$0]  (!%p3055_p10), %s5347_s4, 96, %s213_s16, [#allocation9]  }
  0x69   : > { %s3148_s14 = sadd.s32 1, %s2963_s21   ;;  %s30_s13 = sadd.s32 1, %s2959_s20 }
  0x6a   : > { %s27_s6 = ssub.s32 %s2963_s21, %s3148_s14  ;;  %p37_p12 = scmp.ne.s32.totalorder %s2959_s20, %s2955_s19 }
  0x6b   : > { %p28_p11 = scmp.eq.s32.totalorder %s27_s6, 0  ;;  %p38_p13 = scmp.eq.s32.totalorder %s2963_s21, 0 }
  0x6c   : > { %p5564_p2 = scmp.eq.s32.totalorder %s3028_s22, 3  ;;  %p2635_p4 = scmp.lt.s32.totalorder %s2963_s21, 4 }
  0x6d   : > { %s3164_s28 = scalar_select %p28_p11, %s2959_s20, %s30_s13  }
  0x6e   : > { %p3158_p1 = por %p5564_p2, %p37_p12  ;;  %p39_p6 = por %p38_p13, %p37_p12 }
  0x6f   : > { %s223_s15 = sand.u32 1, %s2959_s20   ;;  %s2363_s16 = sshll.u32 %s2963_s21, 13 }
  0x70   : > { %s2347_s17 = sshll.u32 %s223_s15, 9  ;;  %s3171_s29 = scalar_lea.hbm %s5343_s0, %s2363_s16 }
  0x71   : > { %s227_s7 = scalar_lea.vmem [#allocation2], %s2347_s17  ;;  %p3175_p10 = pnand %p2635_p4, %p39_p6 }
  0x72   : > { %s235_s9 = sshll.u32 %s227_s7, 4  ;;  %s3179_s8 = scalar_lea.sflag [#allocation3], %s223_s15  ;;  %s3173_s9 = int_to_ptr.vmem [resolvable:$true] %s235_s9 }
  0x73   : > { %s2859_s11 = scalar_lea.hbm %s3171_s29, 8192  ;;  %p2861_p0 = pneg %p3175_p10 }
  0x74   : > { %p2860_p8 = scmp.ne.s32.totalorder %s3171_s29, %s2859_s11  ;;  %s2864_s6 = scalar_lea.hbm %s5343_s0, 32768 }
  0x75   : > { %p2865_p7 = scmp.lt.u32.totalorder %s3171_s29, %s5343_s0  ;;  %p2866_p9 = scmp.lt.u32.totalorder %s2864_s6, %s2859_s11 }
  0x76   : > { %p2862_p3 = pnand %p2861_p0, %p2860_p8  ;;  %p2868_p11 = scmp.lt.u32.totalorder %s2859_s11, %s3171_s29 }
  0x77   : > { %p2867_p12 = por %p2866_p9, %p2865_p7 }
  0x78   : > { %p2863_p5 = pneg %p2862_p3 }
  0x79   : > { %p2869_p13 = por %p2868_p11, %p2867_p12 }
  0x7b   : > { %p2870_p2 = pnand %p2869_p13, %p2863_p5 }
  0x7d   : > { %2873 = shalt.err (!%p2870_p2)
}
  0x7e   : > { %s2874_s15 = scalar_lea.vmem %s3173_s9, 8192  ;;  %s2971_s23 = smov [#allocation2]  }
  0x7f   : > { %p2875_p4 = scmp.ne.s32.totalorder %s3173_s9, %s2874_s15  ;;  %s2879_s27 = sshll.u32 %s2971_s23, 4  ;;  %s2880_s27 = int_to_ptr.vmem [resolvable:$false] %s2879_s27 }
  0x80   : > { %s2881_s7 = scalar_lea.vmem %s2880_s27, 16384  ;;  %p2882_p3 = scmp.lt.s32.totalorder %s3173_s9, %s2880_s27 }
  0x81   : > { %p2877_p6 = pnand %p2875_p4, %p2861_p0  ;;  %p2883_p7 = scmp.lt.s32.totalorder %s2881_s7, %s2874_s15 }
  0x83   : > { %p2878_p8 = pneg %p2877_p6  ;;  %p2884_p9 = por %p2883_p7, %p2882_p3 }
  0x85   : > { %p2885_p12 = pnand %p2884_p9, %p2878_p8 }
  0x87   : > { %2888 = shalt.err (!%p2885_p12)
}
  0x88   : > { %s2972_s11 = smov 256   ;;  %s2973_s12 = smov 16  }
  0x89   : > { %2626 = dma.hbm_to_vmem [thread:$0]  (!%p3175_p10), %s3171_s29, 8192, %s3173_s9, %s3179_s8, %s2972_s11, %s2972_s11, %s2973_s12  }
  0x8a   : > { %p5567_p0 = scmp.ne.s32.totalorder %s5561_s26, 0 }
  0x8c   : > { %247 = sbr.rel (%p5567_p0) target bundleno = 920 (0x398), region = 40 }
  0x93   : > { %s3210_s13 = sand.u32 1, %s2955_s19   ;;  %p5568_p5 = scmp.ne.s32.totalorder %s5559_s24, 0 }
  0x94   : > { %s2352_s6 = sshll.u32 %s3210_s13, 9  ;;  %s250_s17 = scalar_lea.sflag [#allocation3], %s3210_s13 }
  0x95   : > { %s3214_s16 = scalar_lea.vmem [#allocation2], %s2352_s6 }
  0x96   : > { %2934 = dma.done.wait (%p5568_p5), %s250_s17, 8192  }
  0x97   : > { %2936 = vsyncadd (%p5568_p5), %s250_s17, 4294959104  ;;  %p5569_p10 = scmp.eq.s32.totalorder %s3028_s22, 0 }
  0x99   : > { %2938 = dma.done.wait (%p5569_p10), [#allocation6], 64   ;;  %p5570_p11 = pmov %p5569_p10 }
  0x9a   : > { %p5571_p13 = pmov %p5569_p10 }
  0x9b   : > { %2940 = vsyncadd (%p5570_p11), [#allocation6], 4294967232 }
  0x9c   : > { %2942 = dma.done.wait (%p5571_p13), [#allocation9], 24672   ;;  %p5572_p2 = pmov %p5569_p10 }
  0x9d   : > { %v3229_v0 = vld [vmem:[%s3214_s16] sm:$0xff]  ;;  %v3232_v1 = vld [vmem:[%s3214_s16 + $0x8] sm:$0xff]  ;;  %v3235_v2 = vld [vmem:[%s3214_s16 + $0x10] sm:$0xff]  ;;  %s2588_s24 = smul.u32 1536, %s3210_s13  ;;  %s2974_s27 = smov [#allocation11]  }
  0x9e   : > { %2944 = vsyncadd (%p5572_p2), [#allocation9], 4294942624  ;;  %v364_v3 = vadd.f32 %v3232_v1, %v3229_v0  ;;  %v3240_v4 = vld [vmem:[%s3214_s16 + $0x18] sm:$0xff]  ;;  %v3243_v5 = vld [vmem:[%s3214_s16 + $0x100] sm:$0xff]  ;;  %s2589_s29 = smul.u32 24576, %s3028_s22  ;;  %s2215_s22 = scalar_lea.sflag [#allocation4], %s3210_s13 }
  0x9f   : > { %v3246_v6 = vld [vmem:[%s3214_s16 + $0x108] sm:$0xff]  ;;  %v367_v7 = vadd.f32 %v3240_v4, %v3235_v2  ;;  %v3251_v8 = vld [vmem:[%s3214_s16 + $0x110] sm:$0xff]  ;;  %v3254_v9 = vld [vmem:[%s3214_s16 + $0x118] sm:$0xff]  ;;  %s4893_s26 = scalar_lea.vmem [#allocation11], %s2588_s24  ;;  %s2893_s7 = sshll.u32 %s2974_s27, 4  ;;  %s2894_s7 = int_to_ptr.vmem [resolvable:$false] %s2893_s7 }
  0xa0   : > { %365 = vadd.xlane.f32.xlu0 %v364_v3  ;;  %v412_v10 = vadd.f32 %v3246_v6, %v3243_v5  ;;  %v415_v11 = vadd.f32 %v3254_v9, %v3251_v8  ;;  %v3261_v12 = vld [vmem:[%s3214_s16 + $0x20] sm:$0xff]  ;;  %v3264_v13 = vld [vmem:[%s3214_s16 + $0x28] sm:$0xff]  ;;  %v3277_v18 = vld [vmem:[%s3214_s16 + $0x30] sm:$0xff]  ;;  %s2229_s9 = sshll.u32 %s4893_s26, 4  ;;  %s5295_s15 = scalar_lea.hbm %s5348_s5, %s2589_s29  ;;  %s5297_s9 = int_to_ptr.vmem [resolvable:$true] %s2229_s9 }
  0xa1   : > { %368 = vadd.xlane.f32.xlu1 %v367_v7  ;;  %v3267_v14 = vld [vmem:[%s3214_s16 + $0x120] sm:$0xff]  ;;  %v3270_v15 = vld [vmem:[%s3214_s16 + $0x128] sm:$0xff]  ;;  %v370_v16 = vadd.f32 %v3264_v13, %v3261_v12  ;;  %v3280_v19 = vld [vmem:[%s3214_s16 + $0x38] sm:$0xff]  ;;  %s2889_s23 = scalar_lea.vmem %s5297_s9, 24576  ;;  %s2895_s11 = scalar_lea.vmem %s2894_s7, 49152 }
  0xa2   : > { %v418_v17 = vadd.f32 %v3270_v15, %v3267_v14  ;;  %v3283_v20 = vld [vmem:[%s3214_s16 + $0x130] sm:$0xff]  ;;  %v3286_v21 = vld [vmem:[%s3214_s16 + $0x138] sm:$0xff]  ;;  %v373_v22 = vadd.f32 %v3280_v19, %v3277_v18  ;;  %v3293_v24 = vld [vmem:[%s3214_s16 + $0x40] sm:$0xff]  ;;  %p2890_p4 = scmp.ne.s32.totalorder %s5297_s9, %s2889_s23  ;;  %p2896_p3 = scmp.lt.s32.totalorder %s5297_s9, %s2894_s7 }
  0xa3   : > { %v421_v23 = vadd.f32 %v3286_v21, %v3283_v20  ;;  %v3296_v25 = vld [vmem:[%s3214_s16 + $0x48] sm:$0xff]  ;;  %v3299_v26 = vld [vmem:[%s3214_s16 + $0x140] sm:$0xff]  ;;  %v3309_v30 = vld [vmem:[%s3214_s16 + $0x50] sm:$0xff]  ;;  %p2897_p7 = scmp.lt.s32.totalorder %s2895_s11, %s2889_s23 }
  0xa4   : > { %413 = vadd.xlane.f32.xlu0 %v412_v10  ;;  %v3302_v27 = vld [vmem:[%s3214_s16 + $0x148] sm:$0xff]  ;;  %v376_v28 = vadd.f32 %v3296_v25, %v3293_v24  ;;  %v3312_v31 = vld [vmem:[%s3214_s16 + $0x58] sm:$0xff]  ;;  %v3315_v32 = vld [vmem:[%s3214_s16 + $0x150] sm:$0xff]  ;;  %p2891_p6 = pnand %p2890_p4, %p3158_p1 }
  0xa5   : > { %416 = vadd.xlane.f32.xlu1 %v415_v11  ;;  %v424_v29 = vadd.f32 %v3302_v27, %v3299_v26  ;;  %v3318_v33 = vld [vmem:[%s3214_s16 + $0x158] sm:$0xff]  ;;  %v379_v34 = vadd.f32 %v3312_v31, %v3309_v30  ;;  %v3325_v36 = vld [vmem:[%s3214_s16 + $0x60] sm:$0xff]  ;;  %v3328_v37 = vld [vmem:[%s3214_s16 + $0x68] sm:$0xff]  ;;  %p2898_p9 = por %p2897_p7, %p2896_p3 }
  0xa6   : > { %v427_v35 = vadd.f32 %v3318_v33, %v3315_v32  ;;  %v3331_v38 = vld [vmem:[%s3214_s16 + $0x160] sm:$0xff]  ;;  %v3334_v39 = vld [vmem:[%s3214_s16 + $0x168] sm:$0xff]  ;;  %v382_v40 = vadd.f32 %v3328_v37, %v3325_v36  ;;  %v3341_v42 = vld [vmem:[%s3214_s16 + $0x70] sm:$0xff]  ;;  %p2892_p8 = pneg %p2891_p6 }
  0xa7   : > { %v430_v41 = vadd.f32 %v3334_v39, %v3331_v38  ;;  %v3344_v43 = vld [vmem:[%s3214_s16 + $0x78] sm:$0xff]  ;;  %v3347_v44 = vld [vmem:[%s3214_s16 + $0x170] sm:$0xff]  ;;  %v3357_v48 = vld [vmem:[%s3214_s16 + $0x80] sm:$0xff] }
  0xa8   : > { %371 = vadd.xlane.f32.xlu0 %v370_v16  ;;  %v3350_v45 = vld [vmem:[%s3214_s16 + $0x178] sm:$0xff]  ;;  %v385_v46 = vadd.f32 %v3344_v43, %v3341_v42  ;;  %v3360_v49 = vld [vmem:[%s3214_s16 + $0x88] sm:$0xff]  ;;  %v3363_v50 = vld [vmem:[%s3214_s16 + $0x180] sm:$0xff]  ;;  %p2899_p12 = pnand %p2898_p9, %p2892_p8 }
  0xa9   : > { %419 = vadd.xlane.f32.xlu1 %v418_v17  ;;  %v433_v47 = vadd.f32 %v3350_v45, %v3347_v44  ;;  %v3366_v51 = vld [vmem:[%s3214_s16 + $0x188] sm:$0xff]  ;;  %v388_v52 = vadd.f32 %v3360_v49, %v3357_v48  ;;  %v3373_v54 = vld [vmem:[%s3214_s16 + $0x90] sm:$0xff]  ;;  %v3376_v55 = vld [vmem:[%s3214_s16 + $0x98] sm:$0xff] }
  0xaa   : > { %v436_v53 = vadd.f32 %v3366_v51, %v3363_v50  ;;  %v3379_v56 = vld [vmem:[%s3214_s16 + $0x190] sm:$0xff]  ;;  %v3382_v57 = vld [vmem:[%s3214_s16 + $0x198] sm:$0xff]  ;;  %v391_v58 = vadd.f32 %v3376_v55, %v3373_v54  ;;  %v3389_v60 = vld [vmem:[%s3214_s16 + $0xa0] sm:$0xff] }
  0xab   : > { %v439_v59 = vadd.f32 %v3382_v57, %v3379_v56  ;;  %v3392_v61 = vld [vmem:[%s3214_s16 + $0xa8] sm:$0xff]  ;;  %v3395_v62 = vld [vmem:[%s3214_s16 + $0x1a0] sm:$0xff]  ;;  %v3405_v10 = vld [vmem:[%s3214_s16 + $0xb0] sm:$0xff] }
  0xac   : > { %374 = vadd.xlane.f32.xlu0 %v373_v22  ;;  %v3398_v63 = vld [vmem:[%s3214_s16 + $0x1a8] sm:$0xff]  ;;  %v394_v3 = vadd.f32 %v3392_v61, %v3389_v60  ;;  %v3408_v11 = vld [vmem:[%s3214_s16 + $0xb8] sm:$0xff]  ;;  %v3411_v16 = vld [vmem:[%s3214_s16 + $0x1b0] sm:$0xff] }
  0xad   : > { %422 = vadd.xlane.f32.xlu1 %v421_v23  ;;  %v442_v7 = vadd.f32 %v3398_v63, %v3395_v62  ;;  %5573 = vst [vmem:[#allocation16_spill] sm:$0xff] %v3408_v11  ;;  %5574 = vst [vmem:[#allocation17_spill] sm:$0xff] %v3411_v16  ;;  %v3414_v17 = vld [vmem:[%s3214_s16 + $0x1b8] sm:$0xff]  ;;  %v397_v22 = vadd.f32 %v3408_v11, %v3405_v10  ;;  %v1052_v11 = vld [vmem:[#allocation8 + $0xc8] sm:$0xff] }
  0xae   : > { %5575 = vst [vmem:[#allocation18_spill] sm:$0xff] %v3414_v17  ;;  %v445_v23 = vadd.f32 %v3414_v17, %v3411_v16  ;;  %v1039_v16 = vld [vmem:[#allocation8 + $0x60] sm:$0xff] }
  0xb0   : > { %377 = vadd.xlane.f32.xlu0 %v376_v28  ;;  %v3421_v28 = vld [vmem:[%s3214_s16 + $0xc0] sm:$0xff] }
  0xb1   : > { %425 = vadd.xlane.f32.xlu1 %v424_v29  ;;  %5576 = vst [vmem:[#allocation19_spill] sm:$0xff] %v3421_v28  ;;  %v3424_v29 = vld [vmem:[%s3214_s16 + $0xc8] sm:$0xff] }
  0xb2   : > { %5577 = vst [vmem:[#allocation20_spill] sm:$0xff] %v3424_v29 }
  0xb4   : > { %380 = vadd.xlane.f32.xlu0 %v379_v34  ;;  %v3427_v34 = vld [vmem:[%s3214_s16 + $0x1c0] sm:$0xff] }
  0xb5   : > { %428 = vadd.xlane.f32.xlu1 %v427_v35  ;;  %5578 = vst [vmem:[#allocation21_spill] sm:$0xff] %v3427_v34  ;;  %v3430_v35 = vld [vmem:[%s3214_s16 + $0x1c8] sm:$0xff] }
  0xb6   : > { %5579 = vst [vmem:[#allocation22_spill] sm:$0xff] %v3430_v35 }
  0xb8   : > { %383 = vadd.xlane.f32.xlu0 %v382_v40  ;;  %v400_v40 = vadd.f32 %v3424_v29, %v3421_v28  ;;  %v1046_v29 = vld [vmem:[#allocation8 + $0x98] sm:$0xff] }
  0xb9   : > { %431 = vadd.xlane.f32.xlu1 %v430_v41  ;;  %v448_v41 = vadd.f32 %v3430_v35, %v3427_v34  ;;  %v1040_v34 = vld [vmem:[#allocation8 + $0x68] sm:$0xff] }
  0xba   : > { %v2368_v17 = vpack.c.bf16 %v1046_v29, %v1040_v34  ;;  %v1063_v34 = vld [vmem:[#allocation8 + $0x120] sm:$0xff] }
  0xbc   : > { %386 = vadd.xlane.f32.xlu0 %v385_v46  ;;  %v3437_v46 = vld [vmem:[%s3214_s16 + $0xd0] sm:$0xff] }
  0xbd   : > { %434 = vadd.xlane.f32.xlu1 %v433_v47  ;;  %5580 = vst [vmem:[#allocation23_spill] sm:$0xff] %v3437_v46  ;;  %v3440_v47 = vld [vmem:[%s3214_s16 + $0xd8] sm:$0xff] }
  0xbe   : > { %5581 = vst [vmem:[#allocation24_spill] sm:$0xff] %v3440_v47 }
  0xc0   : > { %389 = vadd.xlane.f32.xlu0 %v388_v52  ;;  %v3443_v52 = vld [vmem:[%s3214_s16 + $0x1d0] sm:$0xff] }
  0xc1   : > { %437 = vadd.xlane.f32.xlu1 %v436_v53  ;;  %5582 = vst [vmem:[#allocation25_spill] sm:$0xff] %v3443_v52  ;;  %v3446_v53 = vld [vmem:[%s3214_s16 + $0x1d8] sm:$0xff] }
  0xc2   : > { %5583 = vst [vmem:[#allocation26_spill] sm:$0xff] %v3446_v53 }
  0xc4   : > { %392 = vadd.xlane.f32.xlu0 %v391_v58  ;;  %v403_v58 = vadd.f32 %v3440_v47, %v3437_v46  ;;  %v3472_v47 = vld [vmem:[%s3214_s16 + $0xf8] sm:$0xff] }
  0xc5   : > { %440 = vadd.xlane.f32.xlu1 %v439_v59  ;;  %v451_v59 = vadd.f32 %v3446_v53, %v3443_v52  ;;  %5588 = vst [vmem:[#allocation31_spill] sm:$0xff] %v3472_v47  ;;  %v3475_v53 = vld [vmem:[%s3214_s16 + $0x1f0] sm:$0xff]  ;;  %v3478_v52 = vld [vmem:[%s3214_s16 + $0x1f8] sm:$0xff] }
  0xc6   : > { %5589 = vst [vmem:[#allocation32_spill] sm:$0xff] %v3475_v53  ;;  %5590 = vst [vmem:[#allocation33_spill] sm:$0xff] %v3478_v52 }
  0xc8   : > { %395 = vadd.xlane.f32.xlu0 %v394_v3  ;;  %v3453_v3 = vld [vmem:[%s3214_s16 + $0xe0] sm:$0xff] }
  0xc9   : > { %443 = vadd.xlane.f32.xlu1 %v442_v7  ;;  %5584 = vst [vmem:[#allocation27_spill] sm:$0xff] %v3453_v3  ;;  %v3456_v7 = vld [vmem:[%s3214_s16 + $0xe8] sm:$0xff] }
  0xca   : > { %5585 = vst [vmem:[#allocation28_spill] sm:$0xff] %v3456_v7  ;;  %v406_v35 = vadd.f32 %v3456_v7, %v3453_v3  ;;  %v1033_v3 = vld [vmem:[#allocation8 + $0x30] sm:$0xff] }
  0xcc   : > { %398 = vadd.xlane.f32.xlu0 %v397_v22  ;;  %v3459_v22 = vld [vmem:[%s3214_s16 + $0x1e0] sm:$0xff] }
  0xcd   : > { %446 = vadd.xlane.f32.xlu1 %v445_v23  ;;  %5586 = vst [vmem:[#allocation29_spill] sm:$0xff] %v3459_v22  ;;  %v3462_v23 = vld [vmem:[%s3214_s16 + $0x1e8] sm:$0xff] }
  0xce   : > { %5587 = vst [vmem:[#allocation30_spill] sm:$0xff] %v3462_v23 }
  0xd0   : > { %401 = vadd.xlane.f32.xlu0 %v400_v40  ;;  %v454_v40 = vadd.f32 %v3462_v23, %v3459_v22  ;;  %v1034_v23 = vld [vmem:[#allocation8 + $0x38] sm:$0xff]  ;;  %v1027_v22 = vld [vmem:[#allocation8] sm:$0xff] }
  0xd1   : > { %449 = vadd.xlane.f32.xlu1 %v448_v41  ;;  %v3469_v41 = vld [vmem:[%s3214_s16 + $0xf0] sm:$0xff]  ;;  %v2366_v28 = vpack.c.bf16 %v1033_v3, %v1027_v22 }
  0xd2   : > { %v409_v46 = vadd.f32 %v3472_v47, %v3469_v41  ;;  %v1069_v22 = vld [vmem:[#allocation8 + $0x150] sm:$0xff]  ;;  %v1082_v47 = vld [vmem:[#allocation8 + $0x1b8] sm:$0xff] }
  0xd4   : > { %404 = vadd.xlane.f32.xlu0 %v403_v58  ;;  %v457_v58 = vadd.f32 %v3478_v52, %v3475_v53  ;;  %v1057_v53 = vld [vmem:[#allocation8 + $0xf0] sm:$0xff] }
  0xd5   : > { %452 = vadd.xlane.f32.xlu1 %v451_v59  ;;  %v1028_v59 = vld [vmem:[#allocation8 + $0x8] sm:$0xff] }
  0xd6   : > { %v2364_v7 = vpack.c.bf16 %v1034_v23, %v1028_v59  ;;  %v1064_v23 = vld [vmem:[#allocation8 + $0x128] sm:$0xff]  ;;  %v1070_v59 = vld [vmem:[#allocation8 + $0x158] sm:$0xff] }
  0xd7   : > { %v2376_v29 = vpack.c.bf16 %v1070_v59, %v1064_v23  ;;  %v1100_v23 = vld [vmem:[#allocation8 + $0x248] sm:$0xff]  ;;  %v1106_v59 = vld [vmem:[#allocation8 + $0x278] sm:$0xff] }
  0xd8   : > { %407 = vadd.xlane.f32.xlu0 %v406_v35  ;;  %v1045_v35 = vld [vmem:[#allocation8 + $0x90] sm:$0xff]  ;;  %2365 = vmatprep.subr.bf16.mxu0 %v2364_v7 }
  0xd9   : > { %455 = vadd.xlane.f32.xlu1 %v454_v40  ;;  %2556 = vmatprep.subr.bf16.mxu1 %v2364_v7  ;;  %v1058_v40 = vld [vmem:[#allocation8 + $0xf8] sm:$0xff]  ;;  %v2370_v52 = vpack.c.bf16 %v1045_v35, %v1039_v16  ;;  %v1076_v7 = vld [vmem:[#allocation8 + $0x188] sm:$0xff]  ;;  %v2378_v16 = vpack.c.bf16 %v1069_v22, %v1063_v34  ;;  %v1105_v34 = vld [vmem:[#allocation8 + $0x270] sm:$0xff] }
  0xda   : > { %2367 = vmatpush1.bf16.msra.mxu0 %v2366_v28  ;;  %2572 = vmatpush1.bf16.msra.mxu1 %v2366_v28  ;;  %v1081_v28 = vld [vmem:[#allocation8 + $0x1b0] sm:$0xff]  ;;  %v1088_v35 = vld [vmem:[#allocation8 + $0x1e8] sm:$0xff] }
  0xdb   : > { %2369 = vmatprep.subr.bf16.mxu0 %v2368_v17  ;;  %2557 = vmatprep.subr.bf16.mxu1 %v2368_v17  ;;  %v1075_v17 = vld [vmem:[#allocation8 + $0x180] sm:$0xff]  ;;  %v1112_v22 = vld [vmem:[#allocation8 + $0x2a8] sm:$0xff] }
  0xdc   : > { %410 = vadd.xlane.f32.xlu0 %v409_v46  ;;  %v2372_v46 = vpack.c.bf16 %v1058_v40, %v1052_v11  ;;  %v2380_v11 = vpack.c.bf16 %v1082_v47, %v1076_v7  ;;  %v1094_v40 = vld [vmem:[#allocation8 + $0x218] sm:$0xff]  ;;  %v2388_v47 = vpack.c.bf16 %v1106_v59, %v1100_v23  ;;  %v1136_v23 = vld [vmem:[#allocation8 + $0x368] sm:$0xff] }
  0xdd   : > { %458 = vadd.xlane.f32.xlu1 %v457_v58  ;;  %v1051_v58 = vld [vmem:[#allocation8 + $0xc0] sm:$0xff]  ;;  %v1118_v7 = vld [vmem:[#allocation8 + $0x2d8] sm:$0xff] }
  0xde   : > { %2371 = vmatpush1.bf16.msra.mxu0 %v2370_v52  ;;  %2573 = vmatpush1.bf16.msra.mxu1 %v2370_v52  ;;  %v2374_v3 = vpack.c.bf16 %v1057_v53, %v1051_v58  ;;  %v2382_v52 = vpack.c.bf16 %v1081_v28, %v1075_v17  ;;  %v2384_v53 = vpack.c.bf16 %v1094_v40, %v1088_v35  ;;  %v1093_v58 = vld [vmem:[#allocation8 + $0x210] sm:$0xff]  ;;  %v1111_v17 = vld [vmem:[#allocation8 + $0x2a0] sm:$0xff]  ;;  %v1124_v35 = vld [vmem:[#allocation8 + $0x308] sm:$0xff] }
  0xdf   : > { %2373 = vmatprep.subr.bf16.mxu0 %v2372_v46  ;;  %2558 = vmatprep.subr.bf16.mxu1 %v2372_v46  ;;  %v1087_v46 = vld [vmem:[#allocation8 + $0x1e0] sm:$0xff]  ;;  %v1117_v28 = vld [vmem:[#allocation8 + $0x2d0] sm:$0xff]  ;;  %v1130_v40 = vld [vmem:[#allocation8 + $0x338] sm:$0xff] }
  0xe0   : > { %v1142_v59 = vld [vmem:[#allocation8 + $0x398] sm:$0xff] }
  0xe2   : > { %2375 = vmatpush1.bf16.msra.mxu0 %v2374_v3  ;;  %2574 = vmatpush1.bf16.msra.mxu1 %v2374_v3  ;;  %v2386_v3 = vpack.c.bf16 %v1093_v58, %v1087_v46  ;;  %v1123_v46 = vld [vmem:[#allocation8 + $0x300] sm:$0xff]  ;;  %v1129_v58 = vld [vmem:[#allocation8 + $0x330] sm:$0xff] }
  0xe3   : > { %2377 = vmatprep.subr.bf16.mxu0 %v2376_v29  ;;  %2559 = vmatprep.subr.bf16.mxu1 %v2376_v29  ;;  %v1099_v29 = vld [vmem:[#allocation8 + $0x240] sm:$0xff] }
  0xe6   : > { %2379 = vmatpush1.bf16.msra.mxu0 %v2378_v16  ;;  %2575 = vmatpush1.bf16.msra.mxu1 %v2378_v16  ;;  %v2390_v16 = vpack.c.bf16 %v1105_v34, %v1099_v29  ;;  %v1135_v29 = vld [vmem:[#allocation8 + $0x360] sm:$0xff]  ;;  %v1141_v34 = vld [vmem:[#allocation8 + $0x390] sm:$0xff] }
  0xe7   : > { %2381 = vmatprep.subr.bf16.mxu0 %v2380_v11  ;;  %2560 = vmatprep.subr.bf16.mxu1 %v2380_v11  ;;  %v2392_v11 = vpack.c.bf16 %v1118_v7, %v1112_v22  ;;  %v1148_v22 = vld [vmem:[#allocation8 + $0x3c8] sm:$0xff]  ;;  %v1154_v7 = vld [vmem:[#allocation8 + $0x3f8] sm:$0xff] }
  0xea   : > { %2383 = vmatpush1.bf16.msra.mxu0 %v2382_v52  ;;  %2576 = vmatpush1.bf16.msra.mxu1 %v2382_v52  ;;  %v2394_v52 = vpack.c.bf16 %v1117_v28, %v1111_v17  ;;  %v1147_v17 = vld [vmem:[#allocation8 + $0x3c0] sm:$0xff]  ;;  %v1153_v28 = vld [vmem:[#allocation8 + $0x3f0] sm:$0xff] }
  0xeb   : > { %2385 = vmatprep.subr.bf16.mxu0 %v2384_v53  ;;  %2561 = vmatprep.subr.bf16.mxu1 %v2384_v53  ;;  %v2396_v53 = vpack.c.bf16 %v1130_v40, %v1124_v35  ;;  %v2406_v35 = vpack.c.bf16 %v1153_v28, %v1147_v17 }
  0xee   : > { %2387 = vmatpush1.bf16.msra.mxu0 %v2386_v3  ;;  %2577 = vmatpush1.bf16.msra.mxu1 %v2386_v3  ;;  %v2398_v3 = vpack.c.bf16 %v1129_v58, %v1123_v46 }
  0xef   : > { %2389 = vmatprep.subr.bf16.mxu0 %v2388_v47  ;;  %2562 = vmatprep.subr.bf16.mxu1 %v2388_v47  ;;  %v2400_v47 = vpack.c.bf16 %v1142_v59, %v1136_v23 }
  0xf2   : > { %2391 = vmatpush1.bf16.msra.mxu0 %v2390_v16  ;;  %2578 = vmatpush1.bf16.msra.mxu1 %v2390_v16  ;;  %v2402_v16 = vpack.c.bf16 %v1141_v34, %v1135_v29 }
  0xf3   : > { %2393 = vmatprep.subr.bf16.mxu0 %v2392_v11  ;;  %2563 = vmatprep.subr.bf16.mxu1 %v2392_v11  ;;  %v2404_v11 = vpack.c.bf16 %v1154_v7, %v1148_v22 }
  0xf6   : > { %2395 = vmatpush1.bf16.msra.mxu0 %v2394_v52  ;;  %2579 = vmatpush1.bf16.msra.mxu1 %v2394_v52 }
  0xf7   : > { %2397 = vmatprep.subr.bf16.mxu0 %v2396_v53  ;;  %2564 = vmatprep.subr.bf16.mxu1 %v2396_v53 }
  0xfa   : > { %2399 = vmatpush1.bf16.msra.mxu0 %v2398_v3  ;;  %2580 = vmatpush1.bf16.msra.mxu1 %v2398_v3 }
  0xfb   : > { %2401 = vmatprep.subr.bf16.mxu0 %v2400_v47  ;;  %2565 = vmatprep.subr.bf16.mxu1 %v2400_v47 }
  0xfe   : > { %2403 = vmatpush1.bf16.msra.mxu0 %v2402_v16  ;;  %2581 = vmatpush1.bf16.msra.mxu1 %v2402_v16 }
  0xff   : > { %2405 = vmatprep.subr.bf16.mxu0 %v2404_v11  ;;  %2566 = vmatprep.subr.bf16.mxu1 %v2404_v11 }
 0x102   : > { %2407 = vmatpush1.bf16.msra.mxu0 %v2406_v35  ;;  %2582 = vmatpush1.bf16.msra.mxu1 %v2406_v35 }
 0x12d   : > { %v366_v40 = vpop.xlane.xlu0 %365 }
 0x12e   : > { %v461_v52 = vmul.f32 0.00390625, %v366_v40  ;;  %v369_v53 = vpop.xlane.xlu1 %368 }
 0x12f   : > { %v462_v46 = vmul.f32 0.00390625, %v369_v53 }
 0x130   : > { %v3485_v58 = vsub.f32 %v3229_v0, %v461_v52  ;;  %v3488_v23 = vsub.f32 %v3232_v1, %v461_v52 }
 0x131   : > { %v3491_v59 = vsub.f32 %v3235_v2, %v462_v46  ;;  %v3494_v3 = vsub.f32 %v3240_v4, %v462_v46  ;;  %v414_v47 = vpop.xlane.xlu0 %413 }
 0x132   : > { %v477_v29 = vmul.f32 0.00390625, %v414_v47  ;;  %v417_v34 = vpop.xlane.xlu1 %416  ;;  %v557_v22 = vmul.f32 %v3485_v58, %v3485_v58  ;;  %v558_v7 = vmul.f32 %v3488_v23, %v3488_v23 }
 0x133   : > { %v478_v0 = vmul.f32 0.00390625, %v417_v34  ;;  %v559_v1 = vmul.f32 %v3491_v59, %v3491_v59  ;;  %v560_v2 = vmul.f32 %v3494_v3, %v3494_v3 }
 0x134   : > { %v3505_v16 = vsub.f32 %v3243_v5, %v477_v29  ;;  %v3508_v4 = vsub.f32 %v3246_v6, %v477_v29  ;;  %v621_v11 = vadd.f32 %v558_v7, %v557_v22 }
 0x135   : > { %v3511_v17 = vsub.f32 %v3251_v8, %v478_v0  ;;  %v3514_v28 = vsub.f32 %v3254_v9, %v478_v0  ;;  %v372_v35 = vpop.xlane.xlu0 %371  ;;  %v624_v53 = vadd.f32 %v560_v2, %v559_v1 }
 0x136   : > { %v463_v40 = vmul.f32 0.00390625, %v372_v35  ;;  %622 = vadd.xlane.f32.xlu0 %v621_v11  ;;  %v420_v52 = vpop.xlane.xlu1 %419  ;;  %v589_v46 = vmul.f32 %v3505_v16, %v3505_v16  ;;  %v590_v5 = vmul.f32 %v3508_v4, %v3508_v4 }
 0x137   : > { %v479_v6 = vmul.f32 0.00390625, %v420_v52  ;;  %v591_v47 = vmul.f32 %v3511_v17, %v3511_v17  ;;  %v592_v8 = vmul.f32 %v3514_v28, %v3514_v28 }
 0x138   : > { %v3525_v9 = vsub.f32 %v3261_v12, %v463_v40  ;;  %v3528_v29 = vsub.f32 %v3264_v13, %v463_v40  ;;  %v669_v34 = vadd.f32 %v590_v5, %v589_v46 }
 0x139   : > { %v3531_v22 = vsub.f32 %v3267_v14, %v479_v6  ;;  %v3534_v7 = vsub.f32 %v3270_v15, %v479_v6  ;;  %v375_v0 = vpop.xlane.xlu0 %374  ;;  %v672_v11 = vadd.f32 %v592_v8, %v591_v47 }
 0x13a   : > { %v464_v1 = vmul.f32 0.00390625, %v375_v0  ;;  %625 = vadd.xlane.f32.xlu0 %v624_v53  ;;  %670 = vadd.xlane.f32.xlu1 %v669_v34  ;;  %v423_v2 = vpop.xlane.xlu1 %422  ;;  %v561_v12 = vmul.f32 %v3525_v9, %v3525_v9  ;;  %v562_v13 = vmul.f32 %v3528_v29, %v3528_v29 }
 0x13b   : > { %5591 = vst [vmem:[#allocation34_spill] sm:$0xff] %v3531_v22  ;;  %5592 = vst [vmem:[#allocation35_spill] sm:$0xff] %v3534_v7  ;;  %v480_v35 = vmul.f32 0.00390625, %v423_v2  ;;  %v593_v14 = vmul.f32 %v3531_v22, %v3531_v22  ;;  %v594_v15 = vmul.f32 %v3534_v7, %v3534_v7  ;;  %v3920_v22 = vld [vmem:[#allocation8 + $0x228] sm:$0xff] }
 0x13c   : > { %v3545_v40 = vsub.f32 %v3277_v18, %v464_v1  ;;  %v3548_v52 = vsub.f32 %v3280_v19, %v464_v1  ;;  %v627_v53 = vadd.f32 %v562_v13, %v561_v12  ;;  %5697 = vst [vmem:[#allocation104_spill] sm:$0xff] %v3920_v22  ;;  %v4024_v22 = vld [vmem:[#allocation8 + $0x370] sm:$0xff] }
 0x13d   : > { %v3551_v46 = vsub.f32 %v3283_v20, %v480_v35  ;;  %v3554_v5 = vsub.f32 %v3286_v21, %v480_v35  ;;  %v378_v6 = vpop.xlane.xlu0 %377  ;;  %v675_v34 = vadd.f32 %v594_v15, %v593_v14  ;;  %5722 = vst [vmem:[#allocation129_spill] sm:$0xff] %v4024_v22  ;;  %v4100_v22 = vld [vmem:[#allocation8 + $0x498] sm:$0xff] }
 0x13e   : > { %5593 = vst [vmem:[#allocation36_spill] sm:$0xff] %v3545_v40  ;;  %5594 = vst [vmem:[#allocation37_spill] sm:$0xff] %v3548_v52  ;;  %v465_v47 = vmul.f32 0.00390625, %v378_v6  ;;  %673 = vadd.xlane.f32.xlu1 %v672_v11  ;;  %628 = vadd.xlane.f32.xlu0 %v627_v53  ;;  %v426_v8 = vpop.xlane.xlu1 %425  ;;  %v563_v18 = vmul.f32 %v3545_v40, %v3545_v40  ;;  %v564_v19 = vmul.f32 %v3548_v52, %v3548_v52  ;;  %v3922_v40 = vld [vmem:[#allocation8 + $0x268] sm:$0xff]  ;;  %v3924_v52 = vld [vmem:[#allocation8 + $0x298] sm:$0xff] }
 0x13f   : > { %5595 = vst [vmem:[#allocation38_spill] sm:$0xff] %v3551_v46  ;;  %5596 = vst [vmem:[#allocation39_spill] sm:$0xff] %v3554_v5  ;;  %v481_v0 = vmul.f32 0.00390625, %v426_v8  ;;  %v595_v20 = vmul.f32 %v3551_v46, %v3551_v46  ;;  %v596_v21 = vmul.f32 %v3554_v5, %v3554_v5  ;;  %v1166_v8 = vld [vmem:[#allocation8 + $0x458] sm:$0xff]  ;;  %v3932_v5 = vld [vmem:[#allocation8 + $0x1f0] sm:$0xff] }
 0x140   : > { %v3565_v1 = vsub.f32 %v3293_v24, %v465_v47  ;;  %v3568_v2 = vsub.f32 %v3296_v25, %v465_v47  ;;  %v630_v11 = vadd.f32 %v564_v19, %v563_v18  ;;  %v1160_v47 = vld [vmem:[#allocation8 + $0x428] sm:$0xff]  ;;  %5698 = vst [vmem:[#allocation105_spill] sm:$0xff] %v3922_v40  ;;  %5699 = vst [vmem:[#allocation106_spill] sm:$0xff] %v3924_v52  ;;  %v4020_v40 = vld [vmem:[#allocation8 + $0x378] sm:$0xff] }
 0x141   : > { %v3571_v12 = vsub.f32 %v3299_v26, %v481_v0  ;;  %v3574_v13 = vsub.f32 %v3302_v27, %v481_v0  ;;  %v381_v35 = vpop.xlane.xlu0 %380  ;;  %v678_v53 = vadd.f32 %v596_v21, %v595_v20  ;;  %v2408_v0 = vpack.c.bf16 %v1166_v8, %v1160_v47  ;;  %v1159_v20 = vld [vmem:[#allocation8 + $0x420] sm:$0xff]  ;;  %v1165_v21 = vld [vmem:[#allocation8 + $0x450] sm:$0xff]  ;;  %5700 = vst [vmem:[#allocation107_spill] sm:$0xff] %v3932_v5  ;;  %v4022_v52 = vld [vmem:[#allocation8 + $0x3a8] sm:$0xff] }
 0x142   : > { %5597 = vst [vmem:[#allocation40_spill] sm:$0xff] %v3565_v1  ;;  %5598 = vst [vmem:[#allocation41_spill] sm:$0xff] %v3568_v2  ;;  %v466_v14 = vmul.f32 0.00390625, %v381_v35  ;;  %676 = vadd.xlane.f32.xlu1 %v675_v34  ;;  %631 = vadd.xlane.f32.xlu0 %v630_v11  ;;  %v429_v15 = vpop.xlane.xlu1 %428  ;;  %v565_v24 = vmul.f32 %v3565_v1, %v3565_v1  ;;  %v566_v25 = vmul.f32 %v3568_v2, %v3568_v2  ;;  %v3906_v1 = vld [vmem:[#allocation8 + $0x200] sm:$0xff] }
 0x143   : > { %5599 = vst [vmem:[#allocation42_spill] sm:$0xff] %v3571_v12  ;;  %5600 = vst [vmem:[#allocation43_spill] sm:$0xff] %v3574_v13  ;;  %v482_v6 = vmul.f32 0.00390625, %v429_v15  ;;  %v597_v26 = vmul.f32 %v3571_v12, %v3571_v12  ;;  %v598_v27 = vmul.f32 %v3574_v13, %v3574_v13  ;;  %v2410_v12 = vpack.c.bf16 %v1165_v21, %v1159_v20  ;;  %v1171_v21 = vld [vmem:[#allocation8 + $0x480] sm:$0xff] }
 0x144   : > { %v3585_v34 = vsub.f32 %v3309_v30, %v466_v14  ;;  %v3588_v18 = vsub.f32 %v3312_v31, %v466_v14  ;;  %v633_v19 = vadd.f32 %v566_v25, %v565_v24  ;;  %2409 = vmatprep.subr.bf16.mxu0 %v2408_v0  ;;  %2567 = vmatprep.subr.bf16.mxu1 %v2408_v0  ;;  %v3936_v2 = vld [vmem:[#allocation8 + $0x260] sm:$0xff] }
 0x145   : > { %v3591_v11 = vsub.f32 %v3315_v32, %v482_v6  ;;  %v3594_v35 = vsub.f32 %v3318_v33, %v482_v6  ;;  %v384_v15 = vpop.xlane.xlu0 %383  ;;  %v681_v46 = vadd.f32 %v598_v27, %v597_v26  ;;  %2411 = vmatpush1.bf16.msra.mxu0 %v2410_v12  ;;  %2583 = vmatpush1.bf16.msra.mxu1 %v2410_v12  ;;  %v1172_v26 = vld [vmem:[#allocation8 + $0x488] sm:$0xff]  ;;  %v1178_v27 = vld [vmem:[#allocation8 + $0x4b8] sm:$0xff] }
 0x146   : > { %5601 = vst [vmem:[#allocation44_spill] sm:$0xff] %v3585_v34  ;;  %5602 = vst [vmem:[#allocation45_spill] sm:$0xff] %v3588_v18  ;;  %v467_v13 = vmul.f32 0.00390625, %v384_v15  ;;  %679 = vadd.xlane.f32.xlu1 %v678_v53  ;;  %634 = vadd.xlane.f32.xlu0 %v633_v19  ;;  %v432_v30 = vpop.xlane.xlu1 %431  ;;  %v567_v31 = vmul.f32 %v3585_v34, %v3585_v34  ;;  %v568_v14 = vmul.f32 %v3588_v18, %v3588_v18  ;;  %v3902_v34 = vld [vmem:[#allocation8 + $0x208] sm:$0xff]  ;;  %v3904_v18 = vld [vmem:[#allocation8 + $0x238] sm:$0xff] }
 0x147   : > { %5603 = vst [vmem:[#allocation46_spill] sm:$0xff] %v3591_v11  ;;  %5604 = vst [vmem:[#allocation47_spill] sm:$0xff] %v3594_v35  ;;  %v483_v24 = vmul.f32 0.00390625, %v432_v30  ;;  %v599_v32 = vmul.f32 %v3591_v11, %v3591_v11  ;;  %v600_v33 = vmul.f32 %v3594_v35, %v3594_v35  ;;  %v2412_v0 = vpack.c.bf16 %v1178_v27, %v1172_v26  ;;  %v3898_v35 = vld [vmem:[#allocation8 + $0x190] sm:$0xff] }
 0x148   : > { %v3605_v53 = vsub.f32 %v3325_v36, %v467_v13  ;;  %v3608_v25 = vsub.f32 %v3328_v37, %v467_v13  ;;  %v636_v6 = vadd.f32 %v568_v14, %v567_v31  ;;  %v1177_v36 = vld [vmem:[#allocation8 + $0x4b0] sm:$0xff]  ;;  %5691 = vst [vmem:[#allocation98_spill] sm:$0xff] %v3898_v35  ;;  %5693 = vst [vmem:[#allocation100_spill] sm:$0xff] %v3902_v34 }
 0x149   : > { %v3611_v47 = vsub.f32 %v3331_v38, %v483_v24  ;;  %v3614_v8 = vsub.f32 %v3334_v39, %v483_v24  ;;  %v387_v19 = vpop.xlane.xlu0 %386  ;;  %v684_v20 = vadd.f32 %v600_v33, %v599_v32  ;;  %v2414_v38 = vpack.c.bf16 %v1177_v36, %v1171_v21  ;;  %2413 = vmatprep.subr.bf16.mxu0 %v2412_v0  ;;  %v1184_v32 = vld [vmem:[#allocation8 + $0x4e8] sm:$0xff]  ;;  %v1190_v33 = vld [vmem:[#allocation8 + $0x518] sm:$0xff]  ;;  %v1183_v21 = vld [vmem:[#allocation8 + $0x4e0] sm:$0xff] }
 0x14a   : > { %5605 = vst [vmem:[#allocation48_spill] sm:$0xff] %v3605_v53  ;;  %5606 = vst [vmem:[#allocation49_spill] sm:$0xff] %v3608_v25  ;;  %v468_v15 = vmul.f32 0.00390625, %v387_v19  ;;  %682 = vadd.xlane.f32.xlu1 %v681_v46  ;;  %637 = vadd.xlane.f32.xlu0 %v636_v6  ;;  %v435_v37 = vpop.xlane.xlu1 %434  ;;  %v569_v12 = vmul.f32 %v3605_v53, %v3605_v53  ;;  %v570_v13 = vmul.f32 %v3608_v25, %v3608_v25  ;;  %v3900_v25 = vld [vmem:[#allocation8 + $0x1c0] sm:$0xff]  ;;  %v4000_v35 = vld [vmem:[#allocation8 + $0x310] sm:$0xff] }
 0x14b   : > { %5607 = vst [vmem:[#allocation50_spill] sm:$0xff] %v3611_v47  ;;  %5608 = vst [vmem:[#allocation51_spill] sm:$0xff] %v3614_v8  ;;  %v484_v30 = vmul.f32 0.00390625, %v435_v37  ;;  %v601_v39 = vmul.f32 %v3611_v47, %v3611_v47  ;;  %v602_v31 = vmul.f32 %v3614_v8, %v3614_v8  ;;  %2568 = vmatprep.subr.bf16.mxu1 %v2412_v0  ;;  %2415 = vmatpush1.bf16.msra.mxu0 %v2414_v38  ;;  %v3881_v47 = vld [vmem:[#allocation8 + $0x1a0] sm:$0xff]  ;;  %v3885_v8 = vld [vmem:[#allocation8 + $0x198] sm:$0xff] }
 0x14c   : > { %v3625_v46 = vsub.f32 %v3341_v42, %v468_v15  ;;  %v3628_v14 = vsub.f32 %v3344_v43, %v468_v15  ;;  %v639_v24 = vadd.f32 %v570_v13, %v569_v12  ;;  %2584 = vmatpush1.bf16.msra.mxu1 %v2414_v38  ;;  %v2416_v0 = vpack.c.bf16 %v1190_v33, %v1184_v32  ;;  %v1189_v42 = vld [vmem:[#allocation8 + $0x510] sm:$0xff]  ;;  %v4036_v53 = vld [vmem:[#allocation8 + $0x3e0] sm:$0xff] }
 0x14d   : > { %v3631_v6 = vsub.f32 %v3347_v44, %v484_v30  ;;  %v3634_v26 = vsub.f32 %v3350_v45, %v484_v30  ;;  %v390_v27 = vpop.xlane.xlu0 %389  ;;  %v687_v19 = vadd.f32 %v602_v31, %v601_v39  ;;  %v2418_v44 = vpack.c.bf16 %v1189_v42, %v1183_v21  ;;  %v1196_v39 = vld [vmem:[#allocation8 + $0x548] sm:$0xff]  ;;  %v1202_v31 = vld [vmem:[#allocation8 + $0x578] sm:$0xff]  ;;  %v1195_v21 = vld [vmem:[#allocation8 + $0x540] sm:$0xff]  ;;  %5687 = vst [vmem:[#allocation94_spill] sm:$0xff] %v3881_v47 }
 0x14e   : > { %5609 = vst [vmem:[#allocation52_spill] sm:$0xff] %v3625_v46  ;;  %5610 = vst [vmem:[#allocation53_spill] sm:$0xff] %v3628_v14  ;;  %v469_v36 = vmul.f32 0.00390625, %v390_v27  ;;  %685 = vadd.xlane.f32.xlu1 %v684_v20  ;;  %640 = vadd.xlane.f32.xlu0 %v639_v24  ;;  %v438_v43 = vpop.xlane.xlu1 %437  ;;  %v571_v15 = vmul.f32 %v3625_v46, %v3625_v46  ;;  %v572_v37 = vmul.f32 %v3628_v14, %v3628_v14  ;;  %v3883_v46 = vld [vmem:[#allocation8 + $0x1d0] sm:$0xff]  ;;  %v3887_v14 = vld [vmem:[#allocation8 + $0x1c8] sm:$0xff] }
 0x14f   : > { %5611 = vst [vmem:[#allocation54_spill] sm:$0xff] %v3631_v6  ;;  %5612 = vst [vmem:[#allocation55_spill] sm:$0xff] %v3634_v26  ;;  %v485_v12 = vmul.f32 0.00390625, %v438_v43  ;;  %v603_v45 = vmul.f32 %v3631_v6, %v3631_v6  ;;  %v604_v13 = vmul.f32 %v3634_v26, %v3634_v26  ;;  %2417 = vmatprep.subr.bf16.mxu0 %v2416_v0  ;;  %2569 = vmatprep.subr.bf16.mxu1 %v2416_v0  ;;  %v3877_v26 = vld [vmem:[#allocation8 + $0x130] sm:$0xff] }
 0x150   : > { %v3645_v20 = vsub.f32 %v3357_v48, %v469_v36  ;;  %v3648_v38 = vsub.f32 %v3360_v49, %v469_v36  ;;  %v642_v30 = vadd.f32 %v572_v37, %v571_v15  ;;  %2419 = vmatpush1.bf16.msra.mxu0 %v2418_v44  ;;  %2585 = vmatpush1.bf16.msra.mxu1 %v2418_v44  ;;  %v1201_v48 = vld [vmem:[#allocation8 + $0x570] sm:$0xff] }
 0x151   : > { %v3651_v24 = vsub.f32 %v3363_v50, %v485_v12  ;;  %v3654_v32 = vsub.f32 %v3366_v51, %v485_v12  ;;  %v393_v33 = vpop.xlane.xlu0 %392  ;;  %v690_v27 = vadd.f32 %v604_v13, %v603_v45  ;;  %v2420_v0 = vpack.c.bf16 %v1202_v31, %v1196_v39  ;;  %v1208_v45 = vld [vmem:[#allocation8 + $0x5a8] sm:$0xff]  ;;  %v1214_v13 = vld [vmem:[#allocation8 + $0x5d8] sm:$0xff]  ;;  %5685 = vst [vmem:[#allocation92_spill] sm:$0xff] %v3877_v26  ;;  %v3992_v47 = vld [vmem:[#allocation8 + $0x350] sm:$0xff] }
 0x152   : > { %5613 = vst [vmem:[#allocation56_spill] sm:$0xff] %v3645_v20  ;;  %5614 = vst [vmem:[#allocation57_spill] sm:$0xff] %v3648_v38  ;;  %v470_v42 = vmul.f32 0.00390625, %v393_v33  ;;  %688 = vadd.xlane.f32.xlu1 %v687_v19  ;;  %643 = vadd.xlane.f32.xlu0 %v642_v30  ;;  %v441_v49 = vpop.xlane.xlu1 %440  ;;  %v573_v36 = vmul.f32 %v3645_v20, %v3645_v20  ;;  %v574_v43 = vmul.f32 %v3648_v38, %v3648_v38  ;;  %v3879_v38 = vld [vmem:[#allocation8 + $0x160] sm:$0xff] }
 0x153   : > { %5615 = vst [vmem:[#allocation58_spill] sm:$0xff] %v3651_v24  ;;  %5616 = vst [vmem:[#allocation59_spill] sm:$0xff] %v3654_v32  ;;  %v2422_v50 = vpack.c.bf16 %v1201_v48, %v1195_v21  ;;  %v486_v15 = vmul.f32 0.00390625, %v441_v49  ;;  %v605_v51 = vmul.f32 %v3651_v24, %v3651_v24  ;;  %v606_v37 = vmul.f32 %v3654_v32, %v3654_v32  ;;  %v1207_v21 = vld [vmem:[#allocation8 + $0x5a0] sm:$0xff]  ;;  %v3862_v24 = vld [vmem:[#allocation8 + $0x168] sm:$0xff] }
 0x154   : > { %2421 = vmatprep.subr.bf16.mxu0 %v2420_v0  ;;  %2570 = vmatprep.subr.bf16.mxu1 %v2420_v0  ;;  %v3665_v19 = vsub.f32 %v3373_v54, %v470_v42  ;;  %v3668_v44 = vsub.f32 %v3376_v55, %v470_v42  ;;  %v645_v12 = vadd.f32 %v574_v43, %v573_v36  ;;  %v1213_v54 = vld [vmem:[#allocation8 + $0x5d0] sm:$0xff]  ;;  %v3866_v32 = vld [vmem:[#allocation8 + $0x1d8] sm:$0xff] }
 0x155   : > { %2423 = vmatpush1.bf16.msra.mxu0 %v2422_v50  ;;  %2586 = vmatpush1.bf16.msra.mxu1 %v2422_v50  ;;  %v3671_v30 = vsub.f32 %v3379_v56, %v486_v15  ;;  %v3674_v39 = vsub.f32 %v3382_v57, %v486_v15  ;;  %v396_v31 = vpop.xlane.xlu0 %395  ;;  %v693_v33 = vadd.f32 %v606_v37, %v605_v51 }
 0x156   : > { %5617 = vst [vmem:[#allocation60_spill] sm:$0xff] %v3665_v19  ;;  %5618 = vst [vmem:[#allocation61_spill] sm:$0xff] %v3668_v44  ;;  %v2424_v0 = vpack.c.bf16 %v1214_v13, %v1208_v45  ;;  %v471_v48 = vmul.f32 0.00390625, %v396_v31  ;;  %691 = vadd.xlane.f32.xlu1 %v690_v27  ;;  %646 = vadd.xlane.f32.xlu0 %v645_v12  ;;  %v444_v55 = vpop.xlane.xlu1 %443  ;;  %v575_v42 = vmul.f32 %v3665_v19, %v3665_v19  ;;  %v3864_v19 = vld [vmem:[#allocation8 + $0x1a8] sm:$0xff] }
 0x157   : > { %5619 = vst [vmem:[#allocation62_spill] sm:$0xff] %v3671_v30  ;;  %5620 = vst [vmem:[#allocation63_spill] sm:$0xff] %v3674_v39  ;;  %v576_v49 = vmul.f32 %v3668_v44, %v3668_v44  ;;  %v2426_v56 = vpack.c.bf16 %v1213_v54, %v1207_v21  ;;  %v487_v36 = vmul.f32 0.00390625, %v444_v55  ;;  %v607_v57 = vmul.f32 %v3671_v30, %v3671_v30  ;;  %v5628_v55 = vld [vmem:[#allocation17_spill] sm:$0xff]  ;;  %v3854_v30 = vld [vmem:[#allocation8 + $0x178] sm:$0xff] }
 0x158   : > { %v608_v43 = vmul.f32 %v3674_v39, %v3674_v39  ;;  %2425 = vmatprep.subr.bf16.mxu0 %v2424_v0  ;;  %2571 = vmatprep.subr.bf16.mxu1 %v2424_v0  ;;  %v3685_v27 = vsub.f32 %v3389_v60, %v471_v48  ;;  %v3688_v50 = vsub.f32 %v3392_v61, %v471_v48  ;;  %v3858_v39 = vld [vmem:[#allocation8 + $0x170] sm:$0xff] }
 0x159   : > { %v648_v15 = vadd.f32 %v576_v49, %v575_v42  ;;  %2427 = vmatpush1.bf16.msra.mxu0 %v2426_v56  ;;  %2587 = vmatpush1.bf16.msra.mxu1 %v2426_v56  ;;  %v3691_v51 = vsub.f32 %v3395_v62, %v487_v36  ;;  %v3694_v37 = vsub.f32 %v3398_v63, %v487_v36  ;;  %v399_v12 = vpop.xlane.xlu0 %398  ;;  %v5630_v49 = vld [vmem:[#allocation18_spill] sm:$0xff] }
 0x15a   : > { %5621 = vst [vmem:[#allocation64_spill] sm:$0xff] %v3685_v27  ;;  %5622 = vst [vmem:[#allocation65_spill] sm:$0xff] %v3688_v50  ;;  %v472_v45 = vmul.f32 0.00390625, %v399_v12  ;;  %694 = vadd.xlane.f32.xlu1 %v693_v33  ;;  %v447_v13 = vpop.xlane.xlu1 %446  ;;  %v696_v31 = vadd.f32 %v608_v43, %v607_v57  ;;  %v577_v60 = vmul.f32 %v3685_v27, %v3685_v27  ;;  %v5626_v33 = vld [vmem:[#allocation16_spill] sm:$0xff] }
 0x15b   : > { %5623 = vst [vmem:[#allocation66_spill] sm:$0xff] %v3691_v51  ;;  %5624 = vst [vmem:[#allocation67_spill] sm:$0xff] %v3694_v37  ;;  %649 = vadd.xlane.f32.xlu0 %v648_v15  ;;  %v578_v61 = vmul.f32 %v3688_v50, %v3688_v50  ;;  %v488_v0 = vmul.f32 0.00390625, %v447_v13  ;;  %v609_v62 = vmul.f32 %v3691_v51, %v3691_v51  ;;  %v1038_v13 = vld [vmem:[#allocation8 + $0x58] sm:$0xff]  ;;  %v3856_v27 = vld [vmem:[#allocation8 + $0x140] sm:$0xff] }
 0x15c   : > { %v610_v63 = vmul.f32 %v3694_v37, %v3694_v37  ;;  %v3705_v21 = vsub.f32 %v3405_v10, %v472_v45  ;;  %v3708_v54 = vsub.f32 %v5626_v33, %v472_v45  ;;  %v1032_v45 = vld [vmem:[#allocation8 + $0x28] sm:$0xff]  ;;  %v5632_v33 = vld [vmem:[#allocation19_spill] sm:$0xff]  ;;  %5679 = vst [vmem:[#allocation86_spill] sm:$0xff] %v3856_v27  ;;  %5680 = vst [vmem:[#allocation87_spill] sm:$0xff] %v3858_v39 }
 0x15d   : > { %v651_v48 = vadd.f32 %v578_v61, %v577_v60  ;;  %v3711_v42 = vsub.f32 %v5628_v55, %v488_v0  ;;  %v3714_v56 = vsub.f32 %v5630_v49, %v488_v0  ;;  %v402_v36 = vpop.xlane.xlu0 %401  ;;  %v1030_v55 = vld [vmem:[#allocation8 + $0x18] sm:$0xff]  ;;  %v1036_v49 = vld [vmem:[#allocation8 + $0x48] sm:$0xff]  ;;  %5682 = vst [vmem:[#allocation89_spill] sm:$0xff] %v3862_v24  ;;  %5683 = vst [vmem:[#allocation90_spill] sm:$0xff] %v3864_v19 }
 0x15e   : > { %5625 = vst [vmem:[#allocation68_spill] sm:$0xff] %v3705_v21  ;;  %5627 = vst [vmem:[#allocation16_spill] sm:$0xff] %v3708_v54  ;;  %v473_v57 = vmul.f32 0.00390625, %v402_v36  ;;  %697 = vadd.xlane.f32.xlu1 %v696_v31  ;;  %v450_v43 = vpop.xlane.xlu1 %449  ;;  %v699_v15 = vadd.f32 %v610_v63, %v609_v62  ;;  %v579_v10 = vmul.f32 %v3705_v21, %v3705_v21  ;;  %v5636_v36 = vld [vmem:[#allocation21_spill] sm:$0xff]  ;;  %v5638_v21 = vld [vmem:[#allocation22_spill] sm:$0xff] }
 0x15f   : > { %5629 = vst [vmem:[#allocation17_spill] sm:$0xff] %v3711_v42  ;;  %5631 = vst [vmem:[#allocation18_spill] sm:$0xff] %v3714_v56  ;;  %652 = vadd.xlane.f32.xlu0 %v651_v48  ;;  %v580_v12 = vmul.f32 %v3708_v54, %v3708_v54  ;;  %v489_v60 = vmul.f32 0.00390625, %v450_v43  ;;  %v611_v61 = vmul.f32 %v3711_v42, %v3711_v42  ;;  %v5634_v48 = vld [vmem:[#allocation20_spill] sm:$0xff]  ;;  %v3860_v50 = vld [vmem:[#allocation8 + $0x138] sm:$0xff] }
 0x160   : > { %v612_v0 = vmul.f32 %v3714_v56, %v3714_v56  ;;  %v3725_v31 = vsub.f32 %v5632_v33, %v473_v57  ;;  %v3728_v62 = vsub.f32 %v5634_v48, %v473_v57  ;;  %v2492_v42 = vpack.c.bf16 %v1038_v13, %v1032_v45  ;;  %v5642_v13 = vld [vmem:[#allocation24_spill] sm:$0xff]  ;;  %5681 = vst [vmem:[#allocation88_spill] sm:$0xff] %v3860_v50  ;;  %v3970_v27 = vld [vmem:[#allocation8 + $0x2b8] sm:$0xff]  ;;  %v3974_v19 = vld [vmem:[#allocation8 + $0x2b0] sm:$0xff] }
 0x161   : > { %v654_v63 = vadd.f32 %v580_v12, %v579_v10  ;;  %v3731_v51 = vsub.f32 %v5636_v36, %v489_v60  ;;  %v3734_v43 = vsub.f32 %v5638_v21, %v489_v60  ;;  %v405_v37 = vpop.xlane.xlu0 %404  ;;  %v2428_v45 = vpack.c.bf16 %v1036_v49, %v1030_v55  ;;  %v5646_v36 = vld [vmem:[#allocation26_spill] sm:$0xff]  ;;  %5684 = vst [vmem:[#allocation91_spill] sm:$0xff] %v3866_v32  ;;  %v3976_v32 = vld [vmem:[#allocation8 + $0x2e0] sm:$0xff]  ;;  %v3978_v39 = vld [vmem:[#allocation8 + $0x328] sm:$0xff] }
 0x162   : > { %5633 = vst [vmem:[#allocation19_spill] sm:$0xff] %v3725_v31  ;;  %5635 = vst [vmem:[#allocation20_spill] sm:$0xff] %v3728_v62  ;;  %v474_v54 = vmul.f32 0.00390625, %v405_v37  ;;  %700 = vadd.xlane.f32.xlu1 %v699_v15  ;;  %v453_v56 = vpop.xlane.xlu1 %452  ;;  %v702_v33 = vadd.f32 %v612_v0, %v611_v61  ;;  %v581_v57 = vmul.f32 %v3725_v31, %v3725_v31  ;;  %2493 = vmatprep.subr.bf16.mxu0 %v2492_v42  ;;  %v5640_v37 = vld [vmem:[#allocation23_spill] sm:$0xff]  ;;  %v5644_v0 = vld [vmem:[#allocation25_spill] sm:$0xff] }
 0x163   : > { %5637 = vst [vmem:[#allocation21_spill] sm:$0xff] %v3731_v51  ;;  %5639 = vst [vmem:[#allocation22_spill] sm:$0xff] %v3734_v43  ;;  %655 = vadd.xlane.f32.xlu0 %v654_v63  ;;  %v582_v10 = vmul.f32 %v3728_v62, %v3728_v62  ;;  %v490_v12 = vmul.f32 0.00390625, %v453_v56  ;;  %v613_v48 = vmul.f32 %v3731_v51, %v3731_v51  ;;  %2429 = vmatprep.subr.bf16.mxu1 %v2428_v45  ;;  %v3852_v62 = vld [vmem:[#allocation8 + $0x148] sm:$0xff]  ;;  %v3982_v50 = vld [vmem:[#allocation8 + $0x320] sm:$0xff] }
 0x164   : > { %v614_v21 = vmul.f32 %v3734_v43, %v3734_v43  ;;  %v3745_v15 = vsub.f32 %v5640_v37, %v474_v54  ;;  %v3748_v60 = vsub.f32 %v5642_v13, %v474_v54  ;;  %v5648_v37 = vld [vmem:[#allocation27_spill] sm:$0xff]  ;;  %v3848_v43 = vld [vmem:[#allocation8 + $0xd0] sm:$0xff]  ;;  %5678 = vst [vmem:[#allocation85_spill] sm:$0xff] %v3852_v62  ;;  %5686 = vst [vmem:[#allocation93_spill] sm:$0xff] %v3879_v38 }
 0x165   : > { %v657_v61 = vadd.f32 %v582_v10, %v581_v57  ;;  %v3751_v63 = vsub.f32 %v5644_v0, %v490_v12  ;;  %v3754_v56 = vsub.f32 %v5646_v36, %v490_v12  ;;  %v408_v31 = vpop.xlane.xlu0 %407  ;;  %5676 = vst [vmem:[#allocation83_spill] sm:$0xff] %v3848_v43  ;;  %5688 = vst [vmem:[#allocation95_spill] sm:$0xff] %v3883_v46  ;;  %v3994_v46 = vld [vmem:[#allocation8 + $0x318] sm:$0xff]  ;;  %v3996_v38 = vld [vmem:[#allocation8 + $0x348] sm:$0xff] }
 0x166   : > { %5641 = vst [vmem:[#allocation23_spill] sm:$0xff] %v3745_v15  ;;  %5643 = vst [vmem:[#allocation24_spill] sm:$0xff] %v3748_v60  ;;  %v475_v51 = vmul.f32 0.00390625, %v408_v31  ;;  %703 = vadd.xlane.f32.xlu1 %v702_v33  ;;  %v456_v42 = vpop.xlane.xlu1 %455  ;;  %v705_v55 = vadd.f32 %v614_v21, %v613_v48  ;;  %v583_v49 = vmul.f32 %v3745_v15, %v3745_v15  ;;  %v5650_v31 = vld [vmem:[#allocation28_spill] sm:$0xff]  ;;  %v5652_v21 = vld [vmem:[#allocation29_spill] sm:$0xff] }
 0x167   : > { %5645 = vst [vmem:[#allocation25_spill] sm:$0xff] %v3751_v63  ;;  %5647 = vst [vmem:[#allocation26_spill] sm:$0xff] %v3754_v56  ;;  %658 = vadd.xlane.f32.xlu0 %v657_v61  ;;  %v584_v54 = vmul.f32 %v3748_v60, %v3748_v60  ;;  %v491_v57 = vmul.f32 0.00390625, %v456_v42  ;;  %v615_v10 = vmul.f32 %v3751_v63, %v3751_v63  ;;  %v5654_v61 = vld [vmem:[#allocation30_spill] sm:$0xff]  ;;  %v3850_v60 = vld [vmem:[#allocation8 + $0x100] sm:$0xff] }
 0x168   : > { %v616_v12 = vmul.f32 %v3754_v56, %v3754_v56  ;;  %v3765_v45 = vsub.f32 %v5648_v37, %v475_v51  ;;  %v3768_v33 = vsub.f32 %v5650_v31, %v475_v51  ;;  %v3844_v56 = vld [vmem:[#allocation8 + $0xd8] sm:$0xff]  ;;  %5677 = vst [vmem:[#allocation84_spill] sm:$0xff] %v3850_v60  ;;  %5689 = vst [vmem:[#allocation96_spill] sm:$0xff] %v3885_v8  ;;  %v3972_v60 = vld [vmem:[#allocation8 + $0x2e8] sm:$0xff] }
 0x169   : > { %v660_v48 = vadd.f32 %v584_v54, %v583_v49  ;;  %v3771_v13 = vsub.f32 %v5652_v21, %v491_v57  ;;  %v3774_v0 = vsub.f32 %v5654_v61, %v491_v57  ;;  %v411_v36 = vpop.xlane.xlu0 %410  ;;  %v5661_v61 = vld [vmem:[#allocation33_spill] sm:$0xff]  ;;  %5674 = vst [vmem:[#allocation81_spill] sm:$0xff] %v3844_v56  ;;  %5690 = vst [vmem:[#allocation97_spill] sm:$0xff] %v3887_v14  ;;  %v3960_v56 = vld [vmem:[#allocation8 + $0x2c0] sm:$0xff] }
 0x16a   : > { %5649 = vst [vmem:[#allocation27_spill] sm:$0xff] %v3765_v45  ;;  %5651 = vst [vmem:[#allocation28_spill] sm:$0xff] %v3768_v33  ;;  %v476_v42 = vmul.f32 0.00390625, %v411_v36  ;;  %706 = vadd.xlane.f32.xlu1 %v705_v55  ;;  %v459_v63 = vpop.xlane.xlu1 %458  ;;  %v708_v15 = vadd.f32 %v616_v12, %v615_v10  ;;  %v585_v37 = vmul.f32 %v3765_v45, %v3765_v45  ;;  %v5657_v55 = vld [vmem:[#allocation31_spill] sm:$0xff]  ;;  %v5659_v12 = vld [vmem:[#allocation32_spill] sm:$0xff] }
 0x16b   : > { %5653 = vst [vmem:[#allocation29_spill] sm:$0xff] %v3771_v13  ;;  %5655 = vst [vmem:[#allocation30_spill] sm:$0xff] %v3774_v0  ;;  %661 = vadd.xlane.f32.xlu0 %v660_v48  ;;  %v586_v51 = vmul.f32 %v3768_v33, %v3768_v33  ;;  %v492_v31 = vmul.f32 0.00390625, %v459_v63  ;;  %v617_v49 = vmul.f32 %v3771_v13, %v3771_v13  ;;  %v3842_v45 = vld [vmem:[#allocation8 + $0x110] sm:$0xff]  ;;  %v3846_v33 = vld [vmem:[#allocation8 + $0x108] sm:$0xff] }
 0x16c   : > { %v618_v54 = vmul.f32 %v3774_v0, %v3774_v0  ;;  %v3785_v57 = vsub.f32 %v3469_v41, %v476_v42  ;;  %v3788_v48 = vsub.f32 %v5657_v55, %v476_v42  ;;  %v3838_v0 = vld [vmem:[#allocation8 + $0x118] sm:$0xff]  ;;  %5673 = vst [vmem:[#allocation80_spill] sm:$0xff] %v3842_v45  ;;  %5675 = vst [vmem:[#allocation82_spill] sm:$0xff] %v3846_v33  ;;  %v3958_v45 = vld [vmem:[#allocation8 + $0x280] sm:$0xff] }
 0x16d   : > { %v663_v10 = vadd.f32 %v586_v51, %v585_v37  ;;  %v3791_v21 = vsub.f32 %v5659_v12, %v492_v31  ;;  %v3794_v36 = vsub.f32 %v5661_v61, %v492_v31  ;;  %v3812_v61 = vld [vmem:[#allocation8 + $0x20] sm:$0xff]  ;;  %5671 = vst [vmem:[#allocation78_spill] sm:$0xff] %v3838_v0  ;;  %5692 = vst [vmem:[#allocation99_spill] sm:$0xff] %v3900_v25  ;;  %v3944_v0 = vld [vmem:[#allocation8 + $0x2c8] sm:$0xff] }
 0x16e   : > { %5656 = vst [vmem:[#allocation69_spill] sm:$0xff] %v3785_v57  ;;  %5658 = vst [vmem:[#allocation31_spill] sm:$0xff] %v3788_v48  ;;  %709 = vadd.xlane.f32.xlu1 %v708_v15  ;;  %v711_v63 = vadd.f32 %v618_v54, %v617_v49  ;;  %v587_v13 = vmul.f32 %v3785_v57, %v3785_v57  ;;  %v588_v41 = vmul.f32 %v3788_v48, %v3788_v48  ;;  %v878_v15 = vlaneseq  ;;  %v362_v49 = vld [vmem:[#allocation5] sm:$0x3]  ;;  %v363_v54 = vld [vmem:[#allocation7] sm:$0x3] }
 0x16f   : > { %5660 = vst [vmem:[#allocation32_spill] sm:$0xff] %v3791_v21  ;;  %5662 = vst [vmem:[#allocation33_spill] sm:$0xff] %v3794_v36  ;;  %664 = vadd.xlane.f32.xlu0 %v663_v10  ;;  %v619_v42 = vmul.f32 %v3791_v21, %v3791_v21  ;;  %v620_v37 = vmul.f32 %v3794_v36, %v3794_v36  ;;  %v3814_v21 = vld [vmem:[#allocation8 + $0x50] sm:$0xff]  ;;  %v3834_v36 = vld [vmem:[#allocation8 + $0xa0] sm:$0xff] }
 0x170   : > { %v666_v51 = vadd.f32 %v588_v41, %v587_v13  ;;  %v3804_v55 = vshrl.u32 %v878_v15, 7  ;;  %v3816_v13 = vld [vmem:[#allocation8 + $0x10] sm:$0xff]  ;;  %v3820_v41 = vld [vmem:[#allocation8 + $0x88] sm:$0xff]  ;;  %5669 = vst [vmem:[#allocation76_spill] sm:$0xff] %v3834_v36  ;;  %v3840_v48 = vld [vmem:[#allocation8 + $0xe0] sm:$0xff] }
 0x171   : > { %v714_v31 = vadd.f32 %v620_v37, %v619_v42  ;;  %5666 = vst [vmem:[#allocation73_spill] sm:$0xff] %v3816_v13  ;;  %v3822_v42 = vld [vmem:[#allocation8 + $0xb8] sm:$0xff]  ;;  %v3824_v37 = vld [vmem:[#allocation8 + $0x80] sm:$0xff]  ;;  %v3830_v15 = vld [vmem:[#allocation8 + $0xa8] sm:$0xff] }
 0x172   : > { %712 = vadd.xlane.f32.xlu1 %v711_v63  ;;  %5663 = vst [vmem:[#allocation70_spill] sm:$0xff] %v3804_v55  ;;  %v3807_v10 = vsub.s32 1, %v3804_v55  ;;  %v3810_v12 = vsub.s32 0, %v3804_v55  ;;  %v3818_v63 = vld [vmem:[#allocation8 + $0x40] sm:$0xff]  ;;  %v3832_v55 = vld [vmem:[#allocation8 + $0x70] sm:$0xff]  ;;  %v3836_v57 = vld [vmem:[#allocation8 + $0xe8] sm:$0xff] }
 0x173   : > { %667 = vadd.xlane.f32.xlu0 %v666_v51  ;;  %v3826_v51 = vld [vmem:[#allocation8 + $0xb0] sm:$0xff]  ;;  %5668 = vst [vmem:[#allocation75_spill] sm:$0xff] %v3832_v55  ;;  %5670 = vst [vmem:[#allocation77_spill] sm:$0xff] %v3836_v57  ;;  %v3934_v55 = vld [vmem:[#allocation8 + $0x220] sm:$0xff] }
 0x174   : > { %5664 = vst [vmem:[#allocation71_spill] sm:$0xff] %v3807_v10  ;;  %5665 = vst [vmem:[#allocation72_spill] sm:$0xff] %v3810_v12  ;;  %v3869_v44 = vrot.slane %v362_v49, %v3807_v10  ;;  %v3872_v6 = vrot.slane %v363_v54, %v3807_v10  ;;  %v3875_v20 = vrot.slane %v362_v49, %v3810_v12  ;;  %v3938_v36 = vld [vmem:[#allocation8 + $0x290] sm:$0xff]  ;;  %v3940_v57 = vld [vmem:[#allocation8 + $0x258] sm:$0xff] }
 0x175   : > { %5672 = vst [vmem:[#allocation79_spill] sm:$0xff] %v3840_v48  ;;  %v3890_v11 = vrot.slane %v363_v54, %v3810_v12  ;;  %5694 = vst [vmem:[#allocation101_spill] sm:$0xff] %v3906_v1  ;;  %v3908_v54 = vld [vmem:[#allocation8 + $0x230] sm:$0xff]  ;;  %v3910_v12 = vld [vmem:[#allocation8 + $0x1f8] sm:$0xff] }
 0x176   : > { %715 = vadd.xlane.f32.xlu1 %v714_v31  ;;  %v3828_v31 = vld [vmem:[#allocation8 + $0x78] sm:$0xff]  ;;  %5695 = vst [vmem:[#allocation102_spill] sm:$0xff] %v3908_v54  ;;  %5696 = vst [vmem:[#allocation103_spill] sm:$0xff] %v3910_v12  ;;  %v3956_v48 = vld [vmem:[#allocation8 + $0x250] sm:$0xff] }
 0x177   : > { %5667 = vst [vmem:[#allocation74_spill] sm:$0xff] %v3828_v31  ;;  %5701 = vst [vmem:[#allocation108_spill] sm:$0xff] %v3934_v55  ;;  %v3946_v13 = vld [vmem:[#allocation8 + $0x2f8] sm:$0xff]  ;;  %v3962_v33 = vld [vmem:[#allocation8 + $0x2f0] sm:$0xff] }
 0x178   : > { %5702 = vst [vmem:[#allocation109_spill] sm:$0xff] %v3936_v2  ;;  %5703 = vst [vmem:[#allocation110_spill] sm:$0xff] %v3938_v36  ;;  %v4002_v43 = vld [vmem:[#allocation8 + $0x340] sm:$0xff]  ;;  %v4004_v8 = vld [vmem:[#allocation8 + $0x388] sm:$0xff] }
 0x179   : > { %5704 = vst [vmem:[#allocation111_spill] sm:$0xff] %v3940_v57  ;;  %5706 = vst [vmem:[#allocation113_spill] sm:$0xff] %v3944_v0  ;;  %v4006_v1 = vld [vmem:[#allocation8 + $0x3b8] sm:$0xff]  ;;  %v4008_v14 = vld [vmem:[#allocation8 + $0x380] sm:$0xff] }
 0x17a   : > { %5707 = vst [vmem:[#allocation114_spill] sm:$0xff] %v3946_v13  ;;  %5708 = vst [vmem:[#allocation115_spill] sm:$0xff] %v3956_v48  ;;  %v4010_v12 = vld [vmem:[#allocation8 + $0x3b0] sm:$0xff]  ;;  %v4026_v54 = vld [vmem:[#allocation8 + $0x3a0] sm:$0xff] }
 0x17b   : > { %5709 = vst [vmem:[#allocation116_spill] sm:$0xff] %v3958_v45  ;;  %5710 = vst [vmem:[#allocation117_spill] sm:$0xff] %v3960_v56  ;;  %v4034_v57 = vld [vmem:[#allocation8 + $0x418] sm:$0xff]  ;;  %v4038_v0 = vld [vmem:[#allocation8 + $0x410] sm:$0xff] }
 0x17c   : > { %5711 = vst [vmem:[#allocation118_spill] sm:$0xff] %v3962_v33  ;;  %5712 = vst [vmem:[#allocation119_spill] sm:$0xff] %v3970_v27  ;;  %v4040_v13 = vld [vmem:[#allocation8 + $0x3d8] sm:$0xff]  ;;  %v4054_v48 = vld [vmem:[#allocation8 + $0x3d0] sm:$0xff] }
 0x17d   : > { %5713 = vst [vmem:[#allocation120_spill] sm:$0xff] %v3974_v19  ;;  %5714 = vst [vmem:[#allocation121_spill] sm:$0xff] %v3994_v46  ;;  %v4056_v45 = vld [vmem:[#allocation8 + $0x400] sm:$0xff]  ;;  %v4058_v36 = vld [vmem:[#allocation8 + $0x478] sm:$0xff] }
 0x17e   : > { %5715 = vst [vmem:[#allocation122_spill] sm:$0xff] %v3996_v38  ;;  %5716 = vst [vmem:[#allocation123_spill] sm:$0xff] %v4000_v35  ;;  %v4062_v27 = vld [vmem:[#allocation8 + $0x440] sm:$0xff]  ;;  %v4066_v56 = vld [vmem:[#allocation8 + $0x438] sm:$0xff] }
 0x17f   : > { %5717 = vst [vmem:[#allocation124_spill] sm:$0xff] %v4002_v43  ;;  %5718 = vst [vmem:[#allocation125_spill] sm:$0xff] %v4008_v14  ;;  %v4084_v35 = vld [vmem:[#allocation8 + $0x430] sm:$0xff]  ;;  %v4086_v19 = vld [vmem:[#allocation8 + $0x460] sm:$0xff] }
 0x180   : > { %5719 = vst [vmem:[#allocation126_spill] sm:$0xff] %v4010_v12  ;;  %5720 = vst [vmem:[#allocation127_spill] sm:$0xff] %v4020_v40  ;;  %v4098_v33 = vld [vmem:[#allocation8 + $0x4d0] sm:$0xff]  ;;  %v4106_v12 = vld [vmem:[#allocation8 + $0x508] sm:$0xff] }
 0x181   : > { %5721 = vst [vmem:[#allocation128_spill] sm:$0xff] %v4022_v52  ;;  %5723 = vst [vmem:[#allocation130_spill] sm:$0xff] %v4026_v54  ;;  %v4104_v52 = vld [vmem:[#allocation8 + $0x4c8] sm:$0xff]  ;;  %v4120_v14 = vld [vmem:[#allocation8 + $0x500] sm:$0xff] }
 0x182   : > { %5724 = vst [vmem:[#allocation131_spill] sm:$0xff] %v4040_v13  ;;  %5726 = vst [vmem:[#allocation133_spill] sm:$0xff] %v4054_v48  ;;  %v4128_v13 = vld [vmem:[#allocation8 + $0x4f8] sm:$0xff] }
 0x183   : > { %5727 = vst [vmem:[#allocation134_spill] sm:$0xff] %v4056_v45  ;;  %5728 = vst [vmem:[#allocation135_spill] sm:$0xff] %v4062_v27  ;;  %v4126_v27 = vld [vmem:[#allocation8 + $0x530] sm:$0xff] }
 0x184   : > { %5729 = vst [vmem:[#allocation136_spill] sm:$0xff] %v4066_v56  ;;  %5732 = vst [vmem:[#allocation139_spill] sm:$0xff] %v4084_v35  ;;  %v4138_v35 = vld [vmem:[#allocation8 + $0x568] sm:$0xff] }
 0x185   : > { %5734 = vst [vmem:[#allocation141_spill] sm:$0xff] %v4098_v33  ;;  %5735 = vst [vmem:[#allocation142_spill] sm:$0xff] %v4100_v22  ;;  %v4164_v22 = vld [vmem:[#allocation8 + $0x560] sm:$0xff] }
 0x186   : > { %5736 = vst [vmem:[#allocation143_spill] sm:$0xff] %v4106_v12  ;;  %5738 = vst [vmem:[#allocation145_spill] sm:$0xff] %v4120_v14 }
 0x187   : > { %5739 = vst [vmem:[#allocation146_spill] sm:$0xff] %v4128_v13  ;;  %5741 = vst [vmem:[#allocation148_spill] sm:$0xff] %v4138_v35  ;;  %v4166_v13 = vld [vmem:[#allocation8 + $0x590] sm:$0xff] }
 0x1c3   : > { %v623_v10 = vpop.xlane.xlu0 %622 }
 0x1c4   : > { %v717_v7 = vmul.f32 0.00390625, %v623_v10  ;;  %v3942_v10 = vld [vmem:[#allocation8 + $0x288] sm:$0xff] }
 0x1c5   : > { %5705 = vst [vmem:[#allocation112_spill] sm:$0xff] %v3942_v10  ;;  %v4042_v10 = vld [vmem:[#allocation8 + $0x408] sm:$0xff] }
 0x1c6   : > { %v749_v31 = vadd.f32 1e-05, %v717_v7  ;;  %v3980_v7 = vld [vmem:[#allocation8 + $0x358] sm:$0xff]  ;;  %5725 = vst [vmem:[#allocation132_spill] sm:$0xff] %v4042_v10 }
 0x1c7   : > { %v671_v49 = vpop.xlane.xlu1 %670  ;;  %v626_v26 = vpop.xlane.xlu0 %625 }
 0x1c8   : > { %2683 = vrsqrt.f32 %v749_v31  ;;  %v733_v24 = vmul.f32 0.00390625, %v671_v49  ;;  %v718_v62 = vmul.f32 0.00390625, %v626_v26  ;;  %v4032_v49 = vld [vmem:[#allocation8 + $0x3e8] sm:$0xff]  ;;  %v4064_v26 = vld [vmem:[#allocation8 + $0x470] sm:$0xff]  ;;  %v4078_v31 = vld [vmem:[#allocation8 + $0x4d8] sm:$0xff] }
 0x1c9   : > { %5731 = vst [vmem:[#allocation138_spill] sm:$0xff] %v4078_v31 }
 0x1ca   : > { %v765_v25 = vadd.f32 1e-05, %v733_v24  ;;  %v750_v34 = vadd.f32 1e-05, %v718_v62  ;;  %v4044_v24 = vld [vmem:[#allocation8 + $0x448] sm:$0xff] }
 0x1cb   : > { %v674_v62 = vpop.xlane.xlu1 %673  ;;  %v629_v2 = vpop.xlane.xlu0 %628 }
 0x1cc   : > { %2685 = vrsqrt.f32 %v765_v25  ;;  %v734_v5 = vmul.f32 0.00390625, %v674_v62  ;;  %v719_v55 = vmul.f32 0.00390625, %v629_v2  ;;  %v4074_v2 = vld [vmem:[#allocation8 + $0x468] sm:$0xff] }
 0x1cd   : > { %2687 = vrsqrt.f32 %v750_v34  ;;  %v4076_v62 = vld [vmem:[#allocation8 + $0x4a8] sm:$0xff]  ;;  %v4096_v34 = vld [vmem:[#allocation8 + $0x4a0] sm:$0xff] }
 0x1ce   : > { %5730 = vst [vmem:[#allocation137_spill] sm:$0xff] %v4076_v62  ;;  %v766_v46 = vadd.f32 1e-05, %v734_v5  ;;  %v751_v38 = vadd.f32 1e-05, %v719_v55  ;;  %5733 = vst [vmem:[#allocation140_spill] sm:$0xff] %v4096_v34 }
 0x1cf   : > { %v677_v43 = vpop.xlane.xlu1 %676  ;;  %v632_v25 = vpop.xlane.xlu0 %631  ;;  %v4108_v5 = vld [vmem:[#allocation8 + $0x538] sm:$0xff] }
 0x1d0   : > { %2689 = vrsqrt.f32 %v766_v46  ;;  %v735_v54 = vmul.f32 0.00390625, %v677_v43  ;;  %v720_v40 = vmul.f32 0.00390625, %v632_v25  ;;  %5737 = vst [vmem:[#allocation144_spill] sm:$0xff] %v4108_v5  ;;  %v4116_v43 = vld [vmem:[#allocation8 + $0x490] sm:$0xff]  ;;  %v4118_v25 = vld [vmem:[#allocation8 + $0x4c0] sm:$0xff]  ;;  %v4140_v55 = vld [vmem:[#allocation8 + $0x598] sm:$0xff] }
 0x1d1   : > { %2691 = vrsqrt.f32 %v751_v38  ;;  %v4136_v38 = vld [vmem:[#allocation8 + $0x528] sm:$0xff]  ;;  %5742 = vst [vmem:[#allocation149_spill] sm:$0xff] %v4140_v55 }
 0x1d2   : > { %v2684_v48 = vpop.eup %2683  ;;  %v767_v45 = vadd.f32 1e-05, %v735_v54  ;;  %v752_v10 = vadd.f32 1e-05, %v720_v40  ;;  %5740 = vst [vmem:[#allocation147_spill] sm:$0xff] %v4136_v38  ;;  %v4162_v40 = vld [vmem:[#allocation8 + $0x520] sm:$0xff] }
 0x1d3   : > { %v680_v46 = vpop.xlane.xlu1 %679  ;;  %v635_v62 = vpop.xlane.xlu0 %634  ;;  %v814_v31 = vmul.f32 %v2684_v48, %v3488_v23  ;;  %v813_v56 = vmul.f32 %v2684_v48, %v3485_v58 }
 0x1d4   : > { %2693 = vrsqrt.f32 %v767_v45  ;;  %v736_v34 = vmul.f32 0.00390625, %v680_v46  ;;  %v721_v33 = vmul.f32 0.00390625, %v635_v62  ;;  %v4150_v45 = vld [vmem:[#allocation8 + $0x4f0] sm:$0xff] }
 0x1d5   : > { %2695 = vrsqrt.f32 %v752_v10  ;;  %v889_v58 = vmul.f32 %v3869_v44, %v814_v31  ;;  %v888_v48 = vmul.f32 %v3875_v20, %v813_v56 }
 0x1d6   : > { %v2686_v54 = vpop.eup %2685  ;;  %v768_v12 = vadd.f32 1e-05, %v736_v34  ;;  %v753_v5 = vadd.f32 1e-05, %v721_v33 }
 0x1d7   : > { %v2688_v46 = vpop.eup %2687  ;;  %v683_v10 = vpop.xlane.xlu1 %682  ;;  %v4155_v31 = vadd.f32 %v3872_v6, %v889_v58  ;;  %v4158_v56 = vadd.f32 %v3890_v11, %v888_v48  ;;  %v846_v34 = vmul.f32 %v2686_v54, %v3508_v4  ;;  %v845_v33 = vmul.f32 %v2686_v54, %v3505_v16  ;;  %v4173_v54 = vld [vmem:[#allocation8 + $0x558] sm:$0xff]  ;;  %v4175_v48 = vld [vmem:[#allocation8 + $0x588] sm:$0xff] }
 0x1d8   : > { %v638_v23 = vpop.xlane.xlu0 %637  ;;  %2697 = vrsqrt.f32 %v768_v12  ;;  %v737_v62 = vmul.f32 0.00390625, %v683_v10  ;;  %v816_v55 = vmul.f32 %v2688_v46, %v3494_v3  ;;  %v815_v4 = vmul.f32 %v2688_v46, %v3491_v59 }
 0x1d9   : > { %5743 = vst [vmem:[#allocation150_spill] sm:$0xff] %v4155_v31  ;;  %5744 = vst [vmem:[#allocation151_spill] sm:$0xff] %v4158_v56  ;;  %v722_v35 = vmul.f32 0.00390625, %v638_v23  ;;  %2699 = vrsqrt.f32 %v753_v5  ;;  %1315 = vmatprep.mubr.f32.mxu0 %v4155_v31  ;;  %v921_v58 = vmul.f32 %v3869_v44, %v846_v34  ;;  %v920_v16 = vmul.f32 %v3875_v20, %v845_v33 }
 0x1da   : > { %v2690_v38 = vpop.eup %2689  ;;  %1316 = vmatmul.mubr.f32.vlgmr.msra.gmra.mrb[0].mxu0 %v4158_v56  ;;  %v891_v12 = vmul.f32 %v3869_v44, %v816_v55  ;;  %v5745_v46 = vpack.c.bf16 %v3814_v21, %v3812_v61  ;;  %v769_v3 = vadd.f32 1e-05, %v737_v62  ;;  %v5749_v21 = vpack.c.bf16 %v3822_v42, %v3820_v41 }
 0x1db   : > { %v754_v14 = vadd.f32 1e-05, %v722_v35  ;;  %v2692_v23 = vpop.eup %2691  ;;  %v686_v59 = vpop.xlane.xlu1 %685  ;;  %v4187_v34 = vadd.f32 %v3872_v6, %v921_v58  ;;  %v890_v35 = vmul.f32 %v3875_v20, %v815_v4  ;;  %v4191_v55 = vadd.f32 %v3890_v11, %v920_v16 }
 0x1dc   : > { %2495 = vmatpush1.bf16.msra.mxu0 %v5745_v46  ;;  %v641_v10 = vpop.xlane.xlu0 %640  ;;  %v848_v33 = vmul.f32 %v2690_v38, %v3514_v28  ;;  %v4195_v5 = vadd.f32 %v3872_v6, %v891_v12  ;;  %v738_v58 = vmul.f32 0.00390625, %v686_v59  ;;  %v818_v28 = vmul.f32 %v2692_v23, %v3528_v29  ;;  %v5751_v46 = vld [vmem:[#allocation73_spill] sm:$0xff] }
 0x1dd   : > { %5746 = vst [vmem:[#allocation152_spill] sm:$0xff] %v4187_v34  ;;  %5747 = vst [vmem:[#allocation153_spill] sm:$0xff] %v4191_v55  ;;  %v723_v56 = vmul.f32 0.00390625, %v641_v10  ;;  %2497 = vmatprep.subr.bf16.mxu0 %v5749_v21  ;;  %1411 = vmatprep.mubr.f32.mxu1 %v4187_v34  ;;  %v4204_v4 = vadd.f32 %v3890_v11, %v890_v35  ;;  %2701 = vrsqrt.f32 %v754_v14  ;;  %v4272_v34 = vld [vmem:[#allocation8 + $0x580] sm:$0xff] }
 0x1de   : > { %5748 = vst [vmem:[#allocation154_spill] sm:$0xff] %v4195_v5  ;;  %v923_v62 = vmul.f32 %v3869_v44, %v848_v33  ;;  %v2694_v16 = vpop.eup %2693  ;;  %1321 = vmatprep.mubr.f32.mxu0 %v4195_v5  ;;  %1412 = vmatmul.mubr.f32.vlgmr.msra.gmra.mrb[0].mxu1 %v4191_v55  ;;  %v817_v41 = vmul.f32 %v2692_v23, %v3525_v9  ;;  %v5754_v33 = vld [vmem:[#allocation35_spill] sm:$0xff]  ;;  %2703 = vrsqrt.f32 %v769_v3  ;;  %v5756_v23 = vld [vmem:[#allocation74_spill] sm:$0xff] }
 0x1df   : > { %5750 = vst [vmem:[#allocation155_spill] sm:$0xff] %v4204_v4  ;;  %v755_v12 = vadd.f32 1e-05, %v723_v56  ;;  %v847_v42 = vmul.f32 %v2690_v38, %v3511_v17  ;;  %v2696_v59 = vpop.eup %2695  ;;  %1322 = vmatmul.mubr.f32.gmra.mrb[2].mxu0 %v4204_v4  ;;  %v5752_v10 = vpack.c.bf16 %v3818_v63, %v5751_v46  ;;  %v689_v29 = vpop.xlane.xlu1 %688  ;;  %v893_v14 = vmul.f32 %v3869_v44, %v818_v28 }
 0x1e0   : > { %v644_v35 = vpop.xlane.xlu0 %643  ;;  %v4218_v56 = vadd.f32 %v3872_v6, %v923_v62  ;;  %v850_v21 = vmul.f32 %v2694_v16, %v5754_v33  ;;  %v739_v9 = vmul.f32 0.00390625, %v689_v29  ;;  %v5755_v17 = vpack.c.bf16 %v3826_v51, %v3824_v37  ;;  %v5759_v62 = vld [vmem:[#allocation78_spill] sm:$0xff]  ;;  %v5760_v29 = vld [vmem:[#allocation77_spill] sm:$0xff] }
 0x1e1   : > { %2431 = vmatpush1.bf16.msra.mxu1 %v5752_v10  ;;  %v724_v38 = vmul.f32 0.00390625, %v644_v35  ;;  %v5757_v63 = vpack.c.bf16 %v3830_v15, %v5756_v23  ;;  %v892_v46 = vmul.f32 %v3875_v20, %v817_v41  ;;  %v770_v10 = vadd.f32 1e-05, %v738_v58  ;;  %v5762_v37 = vld [vmem:[#allocation37_spill] sm:$0xff]  ;;  %v5766_v23 = vld [vmem:[#allocation75_spill] sm:$0xff] }
 0x1e2   : > { %5753 = vst [vmem:[#allocation73_spill] sm:$0xff] %v4218_v56  ;;  %2499 = vmatpush1.bf16.msra.mxu0 %v5755_v17  ;;  %v4229_v28 = vadd.f32 %v3872_v6, %v893_v14  ;;  %1417 = vmatprep.mubr.f32.mxu1 %v4218_v56  ;;  %v922_v3 = vmul.f32 %v3875_v20, %v847_v42  ;;  %v2698_v35 = vpop.eup %2697  ;;  %2705 = vrsqrt.f32 %v755_v12  ;;  %v771_v15 = vadd.f32 1e-05, %v739_v9  ;;  %v5765_v42 = vld [vmem:[#allocation76_spill] sm:$0xff] }
 0x1e3   : > { %2433 = vmatprep.subr.bf16.mxu1 %v5757_v63  ;;  %v5761_v33 = vpack.c.bf16 %v5759_v62, %v5760_v29  ;;  %v820_v51 = vmul.f32 %v2696_v59, %v5762_v37  ;;  %v4238_v17 = vadd.f32 %v3890_v11, %v892_v46  ;;  %v925_v58 = vmul.f32 %v3869_v44, %v850_v21  ;;  %v2700_v41 = vpop.eup %2699  ;;  %v692_v62 = vpop.xlane.xlu1 %691  ;;  %v5768_v9 = vld [vmem:[#allocation36_spill] sm:$0xff]  ;;  %v4252_v37 = vld [vmem:[#allocation8 + $0x5f8] sm:$0xff] }
 0x1e4   : > { %5758 = vst [vmem:[#allocation35_spill] sm:$0xff] %v4229_v28  ;;  %1327 = vmatprep.mubr.f32.mxu0 %v4229_v28  ;;  %v4243_v14 = vadd.f32 %v3890_v11, %v922_v3  ;;  %v5767_v63 = vpack.c.bf16 %v5765_v42, %v5766_v23  ;;  %v647_v29 = vpop.xlane.xlu0 %646  ;;  %v4250_v46 = vld [vmem:[#allocation8 + $0x5c8] sm:$0xff]  ;;  %v756_v21 = vadd.f32 1e-05, %v724_v38  ;;  %v740_v61 = vmul.f32 0.00390625, %v692_v62  ;;  %v5770_v42 = vld [vmem:[#allocation82_spill] sm:$0xff] }
 0x1e5   : > { %2501 = vmatprep.subr.bf16.mxu0 %v5761_v33  ;;  %5763 = vst [vmem:[#allocation74_spill] sm:$0xff] %v4238_v17  ;;  %v895_v12 = vmul.f32 %v3869_v44, %v820_v51  ;;  %v819_v33 = vmul.f32 %v2696_v59, %v5768_v9  ;;  %1328 = vmatmul.mubr.f32.gmra.mrb[4].mxu0 %v4238_v17  ;;  %v725_v3 = vmul.f32 0.00390625, %v647_v29  ;;  %v5771_v23 = vld [vmem:[#allocation81_spill] sm:$0xff]  ;;  %2707 = vrsqrt.f32 %v770_v10  ;;  %v5773_v59 = vld [vmem:[#allocation80_spill] sm:$0xff]  ;;  %v5774_v51 = vld [vmem:[#allocation79_spill] sm:$0xff] }
 0x1e6   : > { %5764 = vst [vmem:[#allocation78_spill] sm:$0xff] %v4243_v14  ;;  %2435 = vmatpush1.bf16.msra.mxu1 %v5767_v63  ;;  %v4256_v56 = vadd.f32 %v3872_v6, %v925_v58  ;;  %v5772_v63 = vpack.c.bf16 %v5770_v42, %v5771_v23  ;;  %v5775_v9 = vpack.c.bf16 %v5773_v59, %v5774_v51  ;;  %v5777_v29 = vld [vmem:[#allocation34_spill] sm:$0xff]  ;;  %2709 = vrsqrt.f32 %v771_v15  ;;  %v5778_v10 = vld [vmem:[#allocation85_spill] sm:$0xff]  ;;  %v5781_v59 = vld [vmem:[#allocation39_spill] sm:$0xff] }
 0x1e7   : > { %1418 = vmatmul.mubr.f32.gmra.mrb[2].mxu1 %v4243_v14  ;;  %v4266_v38 = vadd.f32 %v3872_v6, %v895_v12  ;;  %v894_v62 = vmul.f32 %v3875_v20, %v819_v33  ;;  %v849_v55 = vmul.f32 %v2694_v16, %v5777_v29  ;;  %v4270_v58 = vld [vmem:[#allocation8 + $0x550] sm:$0xff]  ;;  %v5779_v42 = vpack.c.bf16 %v3854_v30, %v5778_v10  ;;  %v5784_v29 = vld [vmem:[#allocation83_spill] sm:$0xff]  ;;  %v695_v30 = vpop.xlane.xlu1 %694  ;;  %v5788_v17 = vld [vmem:[#allocation88_spill] sm:$0xff] }
 0x1e8   : > { %5769 = vst [vmem:[#allocation77_spill] sm:$0xff] %v4256_v56  ;;  %2437 = vmatprep.subr.bf16.mxu1 %v5772_v63  ;;  %2503 = vmatpush1.bf16.msra.mxu0 %v5775_v9  ;;  %v5780_v23 = vld [vmem:[#allocation41_spill] sm:$0xff]  ;;  %v852_v12 = vmul.f32 %v2698_v35, %v5781_v59  ;;  %v772_v51 = vadd.f32 1e-05, %v740_v61  ;;  %v5783_v9 = vld [vmem:[#allocation84_spill] sm:$0xff]  ;;  %v650_v10 = vpop.xlane.xlu0 %649  ;;  %v2702_v61 = vpop.eup %2701  ;;  %2711 = vrsqrt.f32 %v756_v21  ;;  %v5792_v28 = vld [vmem:[#allocation86_spill] sm:$0xff] }
 0x1e9   : > { %5776 = vst [vmem:[#allocation37_spill] sm:$0xff] %v4266_v38  ;;  %1423 = vmatprep.mubr.f32.mxu1 %v4256_v56  ;;  %2505 = vmatprep.subr.bf16.mxu0 %v5779_v42  ;;  %v822_v63 = vmul.f32 %v2700_v41, %v5780_v23  ;;  %v4284_v16 = vadd.f32 %v3890_v11, %v894_v62  ;;  %v5786_v42 = vld [vmem:[#allocation40_spill] sm:$0xff]  ;;  %v4293_v14 = vld [vmem:[#allocation8 + $0x5f0] sm:$0xff]  ;;  %v757_v33 = vadd.f32 1e-05, %v725_v3  ;;  %v2704_v3 = vpop.eup %2703 }
 0x1ea   : > { %1333 = vmatprep.mubr.f32.mxu0 %v4266_v38  ;;  %v924_v15 = vmul.f32 %v3875_v20, %v849_v55  ;;  %v5785_v56 = vpack.c.bf16 %v5783_v9, %v5784_v29  ;;  %v821_v23 = vmul.f32 %v2700_v41, %v5786_v42  ;;  %v4291_v59 = vld [vmem:[#allocation8 + $0x5c0] sm:$0xff]  ;;  %v5787_v38 = vld [vmem:[#allocation89_spill] sm:$0xff]  ;;  %v726_v9 = vmul.f32 0.00390625, %v650_v10 }
 0x1eb   : > { %5782 = vst [vmem:[#allocation76_spill] sm:$0xff] %v4284_v16  ;;  %v897_v62 = vmul.f32 %v3869_v44, %v822_v63  ;;  %v5789_v55 = vpack.c.bf16 %v5787_v38, %v5788_v17  ;;  %1334 = vmatmul.mubr.f32.gmra.mrb[6].mxu0 %v4284_v16  ;;  %v927_v29 = vmul.f32 %v3869_v44, %v852_v12  ;;  %v741_v42 = vmul.f32 0.00390625, %v695_v30  ;;  %v5791_v63 = vld [vmem:[#allocation87_spill] sm:$0xff]  ;;  %v5795_v38 = vld [vmem:[#allocation38_spill] sm:$0xff] }
 0x1ec   : > { %2439 = vmatpush1.bf16.msra.mxu1 %v5785_v56  ;;  %v4303_v41 = vadd.f32 %v3890_v11, %v924_v15  ;;  %v896_v21 = vmul.f32 %v3875_v20, %v821_v23  ;;  %v5793_v4 = vpack.c.bf16 %v5791_v63, %v5792_v28  ;;  %2713 = vrsqrt.f32 %v772_v51  ;;  %v5798_v10 = vld [vmem:[#allocation91_spill] sm:$0xff]  ;;  %v5799_v28 = vld [vmem:[#allocation90_spill] sm:$0xff]  ;;  %v698_v23 = vpop.xlane.xlu1 %697  ;;  %v5801_v63 = vld [vmem:[#allocation45_spill] sm:$0xff] }
 0x1ed   : > { %2441 = vmatprep.subr.bf16.mxu1 %v5789_v55  ;;  %v4311_v17 = vadd.f32 %v3872_v6, %v897_v62  ;;  %v851_v55 = vmul.f32 %v2698_v35, %v5795_v38  ;;  %v4318_v12 = vadd.f32 %v3872_v6, %v927_v29  ;;  %v653_v62 = vpop.xlane.xlu0 %652  ;;  %v824_v35 = vmul.f32 %v2702_v61, %v5801_v63  ;;  %v2706_v38 = vpop.eup %2705  ;;  %v5802_v15 = vld [vmem:[#allocation93_spill] sm:$0xff]  ;;  %v5803_v29 = vld [vmem:[#allocation92_spill] sm:$0xff] }
 0x1ee   : > { %5790 = vst [vmem:[#allocation75_spill] sm:$0xff] %v4303_v41  ;;  %2507 = vmatpush1.bf16.msra.mxu0 %v5793_v4  ;;  %1424 = vmatmul.mubr.f32.gmra.mrb[4].mxu1 %v4303_v41  ;;  %v4321_v30 = vadd.f32 %v3890_v11, %v896_v21  ;;  %v5800_v4 = vpack.c.bf16 %v5798_v10, %v5799_v28  ;;  %2715 = vrsqrt.f32 %v757_v33  ;;  %v742_v21 = vmul.f32 0.00390625, %v698_v23  ;;  %v5805_v28 = vld [vmem:[#allocation43_spill] sm:$0xff]  ;;  %v5806_v33 = vld [vmem:[#allocation44_spill] sm:$0xff] }
 0x1ef   : > { %5794 = vst [vmem:[#allocation36_spill] sm:$0xff] %v4311_v17  ;;  %5796 = vst [vmem:[#allocation82_spill] sm:$0xff] %v4318_v12  ;;  %1339 = vmatprep.mubr.f32.mxu0 %v4311_v17  ;;  %v926_v51 = vmul.f32 %v3875_v20, %v851_v55  ;;  %v5804_v56 = vpack.c.bf16 %v5802_v15, %v5803_v29  ;;  %v727_v41 = vmul.f32 0.00390625, %v653_v62  ;;  %v758_v16 = vadd.f32 1e-05, %v726_v9  ;;  %v5808_v15 = vld [vmem:[#allocation95_spill] sm:$0xff] }
 0x1f0   : > { %5797 = vst [vmem:[#allocation81_spill] sm:$0xff] %v4321_v30  ;;  %2509 = vmatprep.subr.bf16.mxu0 %v5800_v4  ;;  %1429 = vmatprep.mubr.f32.mxu1 %v4318_v12  ;;  %v899_v10 = vmul.f32 %v3869_v44, %v824_v35  ;;  %v854_v4 = vmul.f32 %v2704_v3, %v5805_v28  ;;  %v773_v17 = vadd.f32 1e-05, %v741_v42  ;;  %v774_v5 = vadd.f32 1e-05, %v742_v21  ;;  %v5811_v9 = vld [vmem:[#allocation97_spill] sm:$0xff]  ;;  %v2708_v35 = vpop.eup %2707 }
 0x1f1   : > { %2443 = vmatpush1.bf16.msra.mxu1 %v5804_v56  ;;  %1340 = vmatmul.mubr.f32.gmra.mrb[8].mxu0 %v4321_v30  ;;  %v823_v63 = vmul.f32 %v2702_v61, %v5806_v33  ;;  %v4338_v55 = vadd.f32 %v3890_v11, %v926_v51  ;;  %v5809_v56 = vld [vmem:[#allocation94_spill] sm:$0xff]  ;;  %v5812_v62 = vld [vmem:[#allocation96_spill] sm:$0xff]  ;;  %v701_v33 = vpop.xlane.xlu1 %700  ;;  %2717 = vrsqrt.f32 %v758_v16 }
 0x1f2   : > { %v5810_v23 = vpack.c.bf16 %v5808_v15, %v5809_v56  ;;  %v5813_v29 = vpack.c.bf16 %v5811_v9, %v5812_v62  ;;  %v5814_v12 = vld [vmem:[#allocation42_spill] sm:$0xff]  ;;  %v4348_v28 = vadd.f32 %v3872_v6, %v899_v10  ;;  %v929_v61 = vmul.f32 %v3869_v44, %v854_v4  ;;  %v5816_v51 = vld [vmem:[#allocation100_spill] sm:$0xff]  ;;  %v656_v15 = vpop.xlane.xlu0 %655  ;;  %v5818_v56 = vld [vmem:[#allocation49_spill] sm:$0xff]  ;;  %v2710_v9 = vpop.eup %2709 }
 0x1f3   : > { %5807 = vst [vmem:[#allocation80_spill] sm:$0xff] %v4338_v55  ;;  %v853_v30 = vmul.f32 %v2704_v3, %v5814_v12  ;;  %v898_v42 = vmul.f32 %v3875_v20, %v823_v63  ;;  %v5817_v21 = vpack.c.bf16 %v3904_v18, %v5816_v51  ;;  %1430 = vmatmul.mubr.f32.gmra.mrb[6].mxu1 %v4338_v55  ;;  %v759_v3 = vadd.f32 1e-05, %v727_v41  ;;  %v5821_v63 = vld [vmem:[#allocation99_spill] sm:$0xff]  ;;  %v2712_v41 = vpop.eup %2711 }
 0x1f4   : > { %2511 = vmatpush1.bf16.msra.mxu0 %v5810_v23  ;;  %2445 = vmatprep.subr.bf16.mxu1 %v5813_v29  ;;  %5815 = vst [vmem:[#allocation79_spill] sm:$0xff] %v4348_v28  ;;  %v826_v23 = vmul.f32 %v2706_v38, %v5818_v56  ;;  %v743_v10 = vmul.f32 0.00390625, %v701_v33  ;;  %v728_v62 = vmul.f32 0.00390625, %v656_v15  ;;  %v4360_v4 = vadd.f32 %v3872_v6, %v929_v61  ;;  %v5822_v29 = vld [vmem:[#allocation98_spill] sm:$0xff]  ;;  %v5826_v15 = vld [vmem:[#allocation101_spill] sm:$0xff]  ;;  %v5828_v61 = vld [vmem:[#allocation47_spill] sm:$0xff] }
 0x1f5   : > { %2513 = vmatprep.subr.bf16.mxu0 %v5817_v21  ;;  %v928_v12 = vmul.f32 %v3875_v20, %v853_v30  ;;  %1345 = vmatprep.mubr.f32.mxu0 %v4348_v28  ;;  %v4363_v18 = vadd.f32 %v3890_v11, %v898_v42  ;;  %v5823_v51 = vpack.c.bf16 %v5821_v63, %v5822_v29  ;;  %2719 = vrsqrt.f32 %v773_v17  ;;  %v5825_v33 = vld [vmem:[#allocation102_spill] sm:$0xff]  ;;  %v5829_v42 = vld [vmem:[#allocation104_spill] sm:$0xff]  ;;  %v5830_v28 = vld [vmem:[#allocation103_spill] sm:$0xff]  ;;  %v704_v29 = vpop.xlane.xlu1 %703 }
 0x1f6   : > { %5819 = vst [vmem:[#allocation34_spill] sm:$0xff] %v4360_v4  ;;  %v901_v21 = vmul.f32 %v3869_v44, %v826_v23  ;;  %v775_v16 = vadd.f32 1e-05, %v743_v10  ;;  %v5827_v56 = vpack.c.bf16 %v5825_v33, %v5826_v15  ;;  %v856_v55 = vmul.f32 %v2708_v35, %v5828_v61  ;;  %1435 = vmatprep.mubr.f32.mxu1 %v4360_v4  ;;  %v5833_v23 = vld [vmem:[#allocation48_spill] sm:$0xff]  ;;  %v5834_v10 = vld [vmem:[#allocation46_spill] sm:$0xff]  ;;  %v2714_v61 = vpop.eup %2713 }
 0x1f7   : > { %5820 = vst [vmem:[#allocation85_spill] sm:$0xff] %v4363_v18  ;;  %2447 = vmatpush1.bf16.msra.mxu1 %v5823_v51  ;;  %v4370_v30 = vadd.f32 %v3890_v11, %v928_v12  ;;  %v5831_v31 = vpack.c.bf16 %v5829_v42, %v5830_v28  ;;  %2721 = vrsqrt.f32 %v774_v5  ;;  %1346 = vmatmul.mubr.f32.gmra.mrb[10].mxu0 %v4363_v18  ;;  %v659_v51 = vpop.xlane.xlu0 %658  ;;  %v760_v33 = vadd.f32 1e-05, %v728_v62  ;;  %v5835_v5 = vld [vmem:[#allocation106_spill] sm:$0xff]  ;;  %v5836_v28 = vld [vmem:[#allocation105_spill] sm:$0xff]  ;;  %v5839_v42 = vld [vmem:[#allocation107_spill] sm:$0xff] }
 0x1f8   : > { %2515 = vmatpush1.bf16.msra.mxu0 %v5827_v56  ;;  %v4382_v17 = vadd.f32 %v3872_v6, %v901_v21  ;;  %v825_v12 = vmul.f32 %v2706_v38, %v5833_v23  ;;  %v855_v63 = vmul.f32 %v2708_v35, %v5834_v10  ;;  %2723 = vrsqrt.f32 %v759_v3  ;;  %v5838_v21 = vld [vmem:[#allocation108_spill] sm:$0xff]  ;;  %v5841_v62 = vld [vmem:[#allocation53_spill] sm:$0xff] }
 0x1f9   : > { %5824 = vst [vmem:[#allocation41_spill] sm:$0xff] %v4370_v30  ;;  %2449 = vmatprep.subr.bf16.mxu1 %v5831_v31  ;;  %1436 = vmatmul.mubr.f32.gmra.mrb[8].mxu1 %v4370_v30  ;;  %v931_v31 = vmul.f32 %v3869_v44, %v856_v55  ;;  %v5837_v15 = vpack.c.bf16 %v5835_v5, %v5836_v28  ;;  %v744_v56 = vmul.f32 0.00390625, %v704_v29  ;;  %v729_v23 = vmul.f32 0.00390625, %v659_v51  ;;  %v2716_v55 = vpop.eup %2715  ;;  %v5842_v28 = vld [vmem:[#allocation110_spill] sm:$0xff] }
 0x1fa   : > { %5832 = vst [vmem:[#allocation39_spill] sm:$0xff] %v4382_v17  ;;  %1351 = vmatprep.mubr.f32.mxu0 %v4382_v17  ;;  %v900_v38 = vmul.f32 %v3875_v20, %v825_v12  ;;  %v930_v35 = vmul.f32 %v3875_v20, %v855_v63  ;;  %v5840_v3 = vpack.c.bf16 %v5838_v21, %v5839_v42  ;;  %2725 = vrsqrt.f32 %v775_v16  ;;  %v5845_v12 = vld [vmem:[#allocation51_spill] sm:$0xff]  ;;  %v5846_v63 = vld [vmem:[#allocation112_spill] sm:$0xff]  ;;  %v5851_v42 = vld [vmem:[#allocation114_spill] sm:$0xff] }
 0x1fb   : > { %2517 = vmatprep.subr.bf16.mxu0 %v5837_v15  ;;  %v828_v10 = vmul.f32 %v2712_v41, %v5841_v62  ;;  %v4399_v5 = vadd.f32 %v3872_v6, %v931_v31  ;;  %v776_v29 = vadd.f32 1e-05, %v744_v56  ;;  %v5843_v15 = vld [vmem:[#allocation109_spill] sm:$0xff]  ;;  %v858_v4 = vmul.f32 %v2710_v9, %v5845_v12  ;;  %v5847_v17 = vld [vmem:[#allocation111_spill] sm:$0xff]  ;;  %v5850_v31 = vld [vmem:[#allocation52_spill] sm:$0xff] }
 0x1fc   : > { %2451 = vmatpush1.bf16.msra.mxu1 %v5840_v3  ;;  %v5844_v30 = vpack.c.bf16 %v5842_v28, %v5843_v15  ;;  %v5848_v18 = vpack.c.bf16 %v5846_v63, %v5847_v17  ;;  %v4409_v51 = vadd.f32 %v3890_v11, %v900_v38  ;;  %v4412_v21 = vadd.f32 %v3890_v11, %v930_v35  ;;  %v5852_v3 = vld [vmem:[#allocation113_spill] sm:$0xff]  ;;  %v662_v28 = vpop.xlane.xlu0 %661  ;;  %v5854_v17 = vld [vmem:[#allocation50_spill] sm:$0xff]  ;;  %v5855_v63 = vld [vmem:[#allocation116_spill] sm:$0xff] }
 0x1fd   : > { %v903_v16 = vmul.f32 %v3869_v44, %v828_v10  ;;  %v827_v56 = vmul.f32 %v2712_v41, %v5850_v31  ;;  %v5853_v62 = vpack.c.bf16 %v5851_v42, %v5852_v3  ;;  %2727 = vrsqrt.f32 %v760_v33  ;;  %1441 = vmatprep.mubr.f32.mxu1 %v4399_v5  ;;  %v5858_v42 = vld [vmem:[#allocation118_spill] sm:$0xff]  ;;  %v5859_v3 = vld [vmem:[#allocation117_spill] sm:$0xff] }
 0x1fe   : > { %2519 = vmatpush1.bf16.msra.mxu0 %v5844_v30  ;;  %2453 = vmatprep.subr.bf16.mxu1 %v5848_v18  ;;  %5849 = vst [vmem:[#allocation84_spill] sm:$0xff] %v4412_v21  ;;  %v707_v30 = vpop.xlane.xlu1 %706  ;;  %v933_v18 = vmul.f32 %v3869_v44, %v858_v4  ;;  %v857_v38 = vmul.f32 %v2710_v9, %v5854_v17  ;;  %v761_v35 = vadd.f32 1e-05, %v729_v23  ;;  %v730_v12 = vmul.f32 0.00390625, %v662_v28  ;;  %v5856_v9 = vld [vmem:[#allocation115_spill] sm:$0xff]  ;;  %v5861_v23 = vld [vmem:[#allocation57_spill] sm:$0xff] }
 0x1ff   : > { %2521 = vmatprep.subr.bf16.mxu0 %v5853_v62  ;;  %v745_v15 = vmul.f32 0.00390625, %v707_v30  ;;  %1352 = vmatmul.mubr.f32.gmra.mrb[12].mxu0 %v4409_v51  ;;  %v4425_v41 = vadd.f32 %v3872_v6, %v903_v16  ;;  %v902_v10 = vmul.f32 %v3875_v20, %v827_v56  ;;  %2729 = vrsqrt.f32 %v776_v29  ;;  %v2718_v30 = vpop.eup %2717  ;;  %v5862_v28 = vld [vmem:[#allocation55_spill] sm:$0xff] }
 0x200   : > { %1442 = vmatmul.mubr.f32.gmra.mrb[10].mxu1 %v4412_v21  ;;  %v4429_v33 = vadd.f32 %v3872_v6, %v933_v18  ;;  %v932_v4 = vmul.f32 %v3875_v20, %v857_v38  ;;  %v5857_v31 = vpack.c.bf16 %v5855_v63, %v5856_v9  ;;  %v5860_v62 = vpack.c.bf16 %v5858_v42, %v5859_v3  ;;  %v5863_v17 = vld [vmem:[#allocation119_spill] sm:$0xff]  ;;  %v5865_v63 = vld [vmem:[#allocation56_spill] sm:$0xff]  ;;  %v665_v42 = vpop.xlane.xlu0 %664  ;;  %v2720_v3 = vpop.eup %2719 }
 0x201   : > { %v830_v16 = vmul.f32 %v2716_v55, %v5861_v23  ;;  %1357 = vmatprep.mubr.f32.mxu0 %v4425_v41  ;;  %v4441_v29 = vadd.f32 %v3890_v11, %v902_v10  ;;  %v777_v56 = vadd.f32 1e-05, %v745_v15  ;;  %v860_v18 = vmul.f32 %v2714_v61, %v5862_v28  ;;  %v5866_v15 = vld [vmem:[#allocation54_spill] sm:$0xff] }
 0x202   : > { %2455 = vmatpush1.bf16.msra.mxu1 %v5857_v31  ;;  %2523 = vmatpush1.bf16.msra.mxu0 %v5860_v62  ;;  %v5864_v38 = vpack.c.bf16 %v3972_v60, %v5863_v17  ;;  %v829_v9 = vmul.f32 %v2716_v55, %v5865_v63  ;;  %v710_v31 = vpop.xlane.xlu1 %709  ;;  %v4450_v62 = vadd.f32 %v3890_v11, %v932_v4  ;;  %v762_v23 = vadd.f32 1e-05, %v730_v12  ;;  %v2722_v60 = vpop.eup %2721 }
 0x203   : > { %1447 = vmatprep.mubr.f32.mxu1 %v4429_v33  ;;  %v905_v10 = vmul.f32 %v3869_v44, %v830_v16  ;;  %v859_v21 = vmul.f32 %v2714_v61, %v5866_v15  ;;  %v5867_v28 = vpack.c.bf16 %v3980_v7, %v3978_v39  ;;  %2731 = vrsqrt.f32 %v761_v35  ;;  %1358 = vmatmul.mubr.f32.gmra.mrb[14].mxu0 %v4441_v29  ;;  %v2724_v4 = vpop.eup %2723  ;;  %v5869_v35 = vld [vmem:[#allocation61_spill] sm:$0xff] }
 0x204   : > { %2457 = vmatprep.subr.bf16.mxu1 %v5864_v38  ;;  %v935_v55 = vmul.f32 %v3869_v44, %v860_v18  ;;  %v904_v17 = vmul.f32 %v3875_v20, %v829_v9  ;;  %v746_v38 = vmul.f32 0.00390625, %v710_v31  ;;  %1448 = vmatmul.mubr.f32.gmra.mrb[12].mxu1 %v4450_v62  ;;  %v5868_v39 = vpack.c.bf16 %v3992_v47, %v3982_v50  ;;  %v5870_v9 = vld [vmem:[#allocation120_spill] sm:$0xff]  ;;  %v4482_v15 = vpop.eup %2725 }
 0x205   : > { %2525 = vmatprep.subr.bf16.mxu0 %v5867_v28  ;;  %v4462_v12 = vadd.f32 %v3872_v6, %v905_v10  ;;  %v934_v61 = vmul.f32 %v3875_v20, %v859_v21  ;;  %v731_v7 = vmul.f32 0.00390625, %v665_v42  ;;  %v832_v16 = vmul.f32 %v2718_v30, %v5869_v35  ;;  %v5872_v10 = vld [vmem:[#allocation59_spill] sm:$0xff]  ;;  %v668_v42 = vpop.xlane.xlu0 %667 }
 0x206   : > { %2527 = vmatpush1.bf16.msra.mxu0 %v5868_v39  ;;  %2733 = vrsqrt.f32 %v777_v56  ;;  %v4470_v18 = vadd.f32 %v3872_v6, %v935_v55  ;;  %v4473_v63 = vadd.f32 %v3890_v11, %v904_v17  ;;  %v5871_v31 = vpack.c.bf16 %v3976_v32, %v5870_v9  ;;  %v713_v50 = vpop.xlane.xlu1 %712  ;;  %v5875_v32 = vld [vmem:[#allocation122_spill] sm:$0xff]  ;;  %v5876_v55 = vld [vmem:[#allocation121_spill] sm:$0xff]  ;;  %v5878_v39 = vld [vmem:[#allocation60_spill] sm:$0xff] }
 0x207   : > { %v862_v21 = vmul.f32 %v2720_v3, %v5872_v10  ;;  %v5873_v47 = vpack.c.bf16 %v4006_v1, %v4004_v8  ;;  %2735 = vrsqrt.f32 %v762_v23  ;;  %1363 = vmatprep.mubr.f32.mxu0 %v4462_v12  ;;  %v4486_v56 = vadd.f32 %v3890_v11, %v934_v61  ;;  %v5879_v23 = vld [vmem:[#allocation58_spill] sm:$0xff]  ;;  %v2728_v61 = vpop.eup %2727 }
 0x208   : > { %2459 = vmatpush1.bf16.msra.mxu1 %v5871_v31  ;;  %v907_v28 = vmul.f32 %v3869_v44, %v832_v16  ;;  %v5877_v17 = vpack.c.bf16 %v5875_v32, %v5876_v55  ;;  %v831_v35 = vmul.f32 %v2718_v30, %v5878_v39  ;;  %1453 = vmatprep.mubr.f32.mxu1 %v4470_v18  ;;  %v763_v1 = vadd.f32 1e-05, %v731_v7  ;;  %v5880_v30 = vld [vmem:[#allocation126_spill] sm:$0xff]  ;;  %v5881_v32 = vld [vmem:[#allocation125_spill] sm:$0xff] }
 0x209   : > { %2529 = vmatprep.subr.bf16.mxu0 %v5873_v47  ;;  %5874 = vst [vmem:[#allocation83_spill] sm:$0xff] %v4486_v56  ;;  %1364 = vmatmul.mubr.f32.gmra.mrb[16].mxu0 %v4473_v63  ;;  %v937_v8 = vmul.f32 %v3869_v44, %v862_v21  ;;  %v861_v9 = vmul.f32 %v2720_v3, %v5879_v23  ;;  %v747_v31 = vmul.f32 0.00390625, %v713_v50  ;;  %v778_v16 = vadd.f32 1e-05, %v746_v38  ;;  %v5883_v21 = vld [vmem:[#allocation124_spill] sm:$0xff]  ;;  %v5884_v50 = vld [vmem:[#allocation123_spill] sm:$0xff] }
 0x20a   : > { %2461 = vmatprep.subr.bf16.mxu1 %v5877_v17  ;;  %1454 = vmatmul.mubr.f32.gmra.mrb[14].mxu1 %v4486_v56  ;;  %v4499_v10 = vadd.f32 %v3872_v6, %v907_v28  ;;  %v906_v47 = vmul.f32 %v3875_v20, %v831_v35  ;;  %v5882_v55 = vpack.c.bf16 %v5880_v30, %v5881_v32  ;;  %v732_v17 = vmul.f32 0.00390625, %v668_v42  ;;  %v5886_v23 = vld [vmem:[#allocation65_spill] sm:$0xff]  ;;  %v716_v56 = vpop.xlane.xlu1 %715  ;;  %v2730_v30 = vpop.eup %2729 }
 0x20b   : > { %v4506_v7 = vadd.f32 %v3872_v6, %v937_v8  ;;  %v936_v3 = vmul.f32 %v3875_v20, %v861_v9  ;;  %v5885_v39 = vpack.c.bf16 %v5883_v21, %v5884_v50  ;;  %v779_v38 = vadd.f32 1e-05, %v747_v31  ;;  %v5888_v9 = vld [vmem:[#allocation63_spill] sm:$0xff]  ;;  %v5892_v31 = vld [vmem:[#allocation64_spill] sm:$0xff] }
 0x20c   : > { %2531 = vmatpush1.bf16.msra.mxu0 %v5882_v55  ;;  %v834_v28 = vmul.f32 %v2724_v4, %v5886_v23  ;;  %v5887_v35 = vpack.c.bf16 %v4034_v57, %v4032_v49  ;;  %1369 = vmatprep.mubr.f32.mxu0 %v4499_v10  ;;  %v4518_v42 = vadd.f32 %v3890_v11, %v906_v47  ;;  %v764_v8 = vadd.f32 1e-05, %v732_v17  ;;  %v5889_v55 = vld [vmem:[#allocation128_spill] sm:$0xff]  ;;  %v5890_v21 = vld [vmem:[#allocation127_spill] sm:$0xff]  ;;  %v5893_v23 = vld [vmem:[#allocation62_spill] sm:$0xff] }
 0x20d   : > { %2463 = vmatpush1.bf16.msra.mxu1 %v5885_v39  ;;  %v864_v32 = vmul.f32 %v2722_v60, %v5888_v9  ;;  %v5891_v50 = vpack.c.bf16 %v5889_v55, %v5890_v21  ;;  %v833_v39 = vmul.f32 %v2724_v4, %v5892_v31  ;;  %2737 = vrsqrt.f32 %v763_v1  ;;  %1459 = vmatprep.mubr.f32.mxu1 %v4506_v7  ;;  %v2732_v55 = vpop.eup %2731 }
 0x20e   : > { %2533 = vmatprep.subr.bf16.mxu0 %v5887_v35  ;;  %v4527_v57 = vadd.f32 %v3890_v11, %v936_v3  ;;  %v909_v49 = vmul.f32 %v3869_v44, %v834_v28  ;;  %v863_v47 = vmul.f32 %v2722_v60, %v5893_v23  ;;  %2739 = vrsqrt.f32 %v778_v16  ;;  %1370 = vmatmul.mubr.f32.gmra.mrb[18].mxu0 %v4518_v42  ;;  %v5895_v16 = vld [vmem:[#allocation16_spill] sm:$0xff] }
 0x20f   : > { %2465 = vmatprep.subr.bf16.mxu1 %v5891_v50  ;;  %v939_v17 = vmul.f32 %v3869_v44, %v864_v32  ;;  %v908_v35 = vmul.f32 %v3875_v20, %v833_v39  ;;  %v748_v9 = vmul.f32 0.00390625, %v716_v56  ;;  %2741 = vrsqrt.f32 %v779_v38  ;;  %v5896_v32 = vld [vmem:[#allocation130_spill] sm:$0xff]  ;;  %v5897_v38 = vld [vmem:[#allocation129_spill] sm:$0xff]  ;;  %v5899_v50 = vld [vmem:[#allocation67_spill] sm:$0xff] }
 0x210   : > { %1460 = vmatmul.mubr.f32.gmra.mrb[16].mxu1 %v4527_v57  ;;  %v4536_v4 = vadd.f32 %v3872_v6, %v909_v49  ;;  %v938_v1 = vmul.f32 %v3875_v20, %v863_v47  ;;  %v5894_v60 = vpack.c.bf16 %v4038_v0, %v4036_v53  ;;  %v836_v3 = vmul.f32 %v2728_v61, %v5895_v16  ;;  %v2734_v0 = vpop.eup %2733  ;;  %v5901_v23 = vld [vmem:[#allocation132_spill] sm:$0xff]  ;;  %v5902_v47 = vld [vmem:[#allocation131_spill] sm:$0xff] }
 0x211   : > { %2743 = vrsqrt.f32 %v764_v8  ;;  %v4544_v28 = vadd.f32 %v3872_v6, %v939_v17  ;;  %v4547_v56 = vadd.f32 %v3890_v11, %v908_v35  ;;  %v5898_v21 = vpack.c.bf16 %v5896_v32, %v5897_v38  ;;  %v5904_v35 = vld [vmem:[#allocation68_spill] sm:$0xff]  ;;  %v2736_v16 = vpop.eup %2735 }
 0x212   : > { %2535 = vmatpush1.bf16.msra.mxu0 %v5894_v60  ;;  %v866_v31 = vmul.f32 %v4482_v15, %v5899_v50  ;;  %v5900_v53 = vpack.c.bf16 %v4058_v36, %v4044_v24  ;;  %1375 = vmatprep.mubr.f32.mxu0 %v4536_v4  ;;  %v4559_v8 = vadd.f32 %v3890_v11, %v938_v1  ;;  %v780_v39 = vadd.f32 1e-05, %v748_v9  ;;  %v5905_v24 = vld [vmem:[#allocation66_spill] sm:$0xff]  ;;  %v5906_v32 = vld [vmem:[#allocation20_spill] sm:$0xff] }
 0x213   : > { %2467 = vmatpush1.bf16.msra.mxu1 %v5898_v21  ;;  %v911_v49 = vmul.f32 %v3869_v44, %v836_v3  ;;  %v5903_v17 = vpack.c.bf16 %v5901_v23, %v5902_v47  ;;  %v835_v60 = vmul.f32 %v2728_v61, %v5904_v35  ;;  %1465 = vmatprep.mubr.f32.mxu1 %v4544_v28  ;;  %v5907_v61 = vld [vmem:[#allocation135_spill] sm:$0xff]  ;;  %v5909_v50 = vld [vmem:[#allocation18_spill] sm:$0xff]  ;;  %v5911_v47 = vld [vmem:[#allocation133_spill] sm:$0xff] }
 0x214   : > { %2537 = vmatprep.subr.bf16.mxu0 %v5900_v53  ;;  %1376 = vmatmul.mubr.f32.gmra.mrb[20].mxu0 %v4547_v56  ;;  %v941_v36 = vmul.f32 %v3869_v44, %v866_v31  ;;  %v865_v1 = vmul.f32 %v4482_v15, %v5905_v24  ;;  %v838_v9 = vmul.f32 %v2732_v55, %v5906_v32  ;;  %v5910_v23 = vld [vmem:[#allocation134_spill] sm:$0xff]  ;;  %v5913_v35 = vld [vmem:[#allocation19_spill] sm:$0xff]  ;;  %2745 = vrsqrt.f32 %v780_v39 }
 0x215   : > { %2469 = vmatprep.subr.bf16.mxu1 %v5903_v17  ;;  %1466 = vmatmul.mubr.f32.gmra.mrb[18].mxu1 %v4559_v8  ;;  %v4574_v3 = vadd.f32 %v3872_v6, %v911_v49  ;;  %v910_v38 = vmul.f32 %v3875_v20, %v835_v60  ;;  %v5908_v21 = vpack.c.bf16 %v4064_v26, %v5907_v61 }
 0x216   : > { %v868_v53 = vmul.f32 %v2730_v30, %v5909_v50  ;;  %v4582_v31 = vadd.f32 %v3872_v6, %v941_v36  ;;  %v940_v15 = vmul.f32 %v3875_v20, %v865_v1  ;;  %v5912_v17 = vpack.c.bf16 %v5910_v23, %v5911_v47  ;;  %v5914_v36 = vld [vmem:[#allocation136_spill] sm:$0xff]  ;;  %v5916_v1 = vld [vmem:[#allocation17_spill] sm:$0xff]  ;;  %v5923_v47 = vld [vmem:[#allocation22_spill] sm:$0xff] }
 0x217   : > { %2539 = vmatpush1.bf16.msra.mxu0 %v5908_v21  ;;  %v913_v49 = vmul.f32 %v3869_v44, %v838_v9  ;;  %v837_v24 = vmul.f32 %v2732_v55, %v5913_v35  ;;  %1381 = vmatprep.mubr.f32.mxu0 %v4574_v3  ;;  %v4592_v26 = vadd.f32 %v3890_v11, %v910_v38  ;;  %v5918_v38 = vld [vmem:[#allocation138_spill] sm:$0xff]  ;;  %v5919_v21 = vld [vmem:[#allocation137_spill] sm:$0xff]  ;;  %v5922_v23 = vld [vmem:[#allocation24_spill] sm:$0xff] }
 0x218   : > { %2471 = vmatpush1.bf16.msra.mxu1 %v5912_v17  ;;  %v943_v60 = vmul.f32 %v3869_v44, %v868_v53  ;;  %v5915_v32 = vpack.c.bf16 %v4074_v2, %v5914_v36  ;;  %v867_v61 = vmul.f32 %v2730_v30, %v5916_v1  ;;  %1471 = vmatprep.mubr.f32.mxu1 %v4582_v31  ;;  %v2738_v53 = vpop.eup %2737 }
 0x219   : > { %v4601_v9 = vadd.f32 %v3890_v11, %v940_v15  ;;  %v4604_v55 = vadd.f32 %v3872_v6, %v913_v49  ;;  %v912_v39 = vmul.f32 %v3875_v20, %v837_v24  ;;  %v5920_v50 = vpack.c.bf16 %v5918_v38, %v5919_v21  ;;  %1382 = vmatmul.mubr.f32.gmra.mrb[22].mxu0 %v4592_v26  ;;  %v2740_v49 = vpop.eup %2739  ;;  %v5924_v24 = vld [vmem:[#allocation23_spill] sm:$0xff] }
 0x21a   : > { %2473 = vmatprep.subr.bf16.mxu1 %v5915_v32  ;;  %v4612_v2 = vadd.f32 %v3872_v6, %v943_v60  ;;  %v942_v30 = vmul.f32 %v3875_v20, %v867_v61  ;;  %v840_v15 = vmul.f32 %v2736_v16, %v5922_v23  ;;  %v870_v17 = vmul.f32 %v2734_v0, %v5923_v47  ;;  %v5925_v32 = vld [vmem:[#allocation21_spill] sm:$0xff]  ;;  %v2742_v60 = vpop.eup %2741  ;;  %v5926_v38 = vld [vmem:[#allocation139_spill] sm:$0xff] }
 0x21b   : > { %5917 = vst [vmem:[#allocation40_spill] sm:$0xff] %v4601_v9  ;;  %2541 = vmatprep.subr.bf16.mxu0 %v5920_v50  ;;  %1472 = vmatmul.mubr.f32.gmra.mrb[20].mxu1 %v4601_v9  ;;  %v4620_v35 = vadd.f32 %v3890_v11, %v912_v39  ;;  %v839_v36 = vmul.f32 %v2736_v16, %v5924_v24  ;;  %v2744_v39 = vpop.eup %2743  ;;  %v5928_v47 = vld [vmem:[#allocation141_spill] sm:$0xff]  ;;  %v5929_v9 = vld [vmem:[#allocation140_spill] sm:$0xff] }
 0x21c   : > { %5921 = vst [vmem:[#allocation89_spill] sm:$0xff] %v4612_v2  ;;  %1387 = vmatprep.mubr.f32.mxu0 %v4604_v55  ;;  %v869_v1 = vmul.f32 %v2734_v0, %v5925_v32  ;;  %1477 = vmatprep.mubr.f32.mxu1 %v4612_v2  ;;  %v4626_v61 = vadd.f32 %v3890_v11, %v942_v30  ;;  %v5931_v0 = vld [vmem:[#allocation142_spill] sm:$0xff]  ;;  %v5933_v2 = vld [vmem:[#allocation28_spill] sm:$0xff] }
 0x21d   : > { %v5927_v21 = vpack.c.bf16 %v4086_v19, %v5926_v38  ;;  %v915_v50 = vmul.f32 %v3869_v44, %v840_v15  ;;  %v945_v23 = vmul.f32 %v3869_v44, %v870_v17  ;;  %v5930_v16 = vpack.c.bf16 %v5928_v47, %v5929_v9  ;;  %1388 = vmatmul.mubr.f32.gmra.mrb[24].mxu0 %v4620_v35  ;;  %v5934_v9 = vld [vmem:[#allocation144_spill] sm:$0xff]  ;;  %v5935_v38 = vld [vmem:[#allocation143_spill] sm:$0xff] }
 0x21e   : > { %v5932_v24 = vpack.c.bf16 %v4104_v52, %v5931_v0  ;;  %v914_v30 = vmul.f32 %v3875_v20, %v839_v36  ;;  %v944_v32 = vmul.f32 %v3875_v20, %v869_v1  ;;  %v842_v19 = vmul.f32 %v2738_v53, %v5933_v2  ;;  %v5937_v52 = vld [vmem:[#allocation26_spill] sm:$0xff]  ;;  %v5939_v0 = vld [vmem:[#allocation25_spill] sm:$0xff] }
 0x21f   : > { %2475 = vmatpush1.bf16.msra.mxu1 %v5927_v21  ;;  %2543 = vmatpush1.bf16.msra.mxu0 %v5930_v16  ;;  %v4644_v15 = vadd.f32 %v3872_v6, %v915_v50  ;;  %v4647_v17 = vadd.f32 %v3872_v6, %v945_v23  ;;  %v5936_v21 = vpack.c.bf16 %v5934_v9, %v5935_v38  ;;  %v5938_v50 = vld [vmem:[#allocation27_spill] sm:$0xff] }
 0x220   : > { %2477 = vmatprep.subr.bf16.mxu1 %v5932_v24  ;;  %v872_v47 = vmul.f32 %v2740_v49, %v5937_v52  ;;  %1478 = vmatmul.mubr.f32.gmra.mrb[22].mxu1 %v4626_v61  ;;  %v4655_v36 = vadd.f32 %v3890_v11, %v914_v30  ;;  %v4658_v2 = vadd.f32 %v3890_v11, %v944_v32  ;;  %v5940_v9 = vld [vmem:[#allocation31_spill] sm:$0xff]  ;;  %v5942_v32 = vld [vmem:[#allocation145_spill] sm:$0xff]  ;;  %v5944_v52 = vld [vmem:[#allocation30_spill] sm:$0xff] }
 0x221   : > { %2545 = vmatprep.subr.bf16.mxu0 %v5936_v21  ;;  %v917_v1 = vmul.f32 %v3869_v44, %v842_v19  ;;  %v841_v16 = vmul.f32 %v2738_v53, %v5938_v50  ;;  %1393 = vmatprep.mubr.f32.mxu0 %v4644_v15  ;;  %v871_v24 = vmul.f32 %v2740_v49, %v5939_v0  ;;  %v5945_v0 = vld [vmem:[#allocation147_spill] sm:$0xff] }
 0x222   : > { %1483 = vmatprep.mubr.f32.mxu1 %v4647_v17  ;;  %v947_v23 = vmul.f32 %v3869_v44, %v872_v47  ;;  %v844_v38 = vmul.f32 %v2744_v39, %v5940_v9  ;;  %v5941_v30 = vpack.c.bf16 %v4118_v25, %v4116_v43  ;;  %v5943_v21 = vpack.c.bf16 %v4126_v27, %v5942_v32  ;;  %v2746_v47 = vpop.eup %2745  ;;  %v5946_v43 = vld [vmem:[#allocation146_spill] sm:$0xff] }
 0x223   : > { %v4674_v53 = vadd.f32 %v3872_v6, %v917_v1  ;;  %v916_v19 = vmul.f32 %v3875_v20, %v841_v16  ;;  %v874_v50 = vmul.f32 %v2742_v60, %v5944_v52  ;;  %1394 = vmatmul.mubr.f32.gmra.mrb[26].mxu0 %v4655_v36  ;;  %v5947_v25 = vpack.c.bf16 %v5945_v0, %v5946_v43  ;;  %v1210_v32 = vld [vmem:[#allocation8 + $0x5b8] sm:$0xff] }
 0x224   : > { %2479 = vmatpush1.bf16.msra.mxu1 %v5941_v30  ;;  %2547 = vmatpush1.bf16.msra.mxu0 %v5943_v21  ;;  %v4680_v49 = vadd.f32 %v3872_v6, %v947_v23  ;;  %v946_v27 = vmul.f32 %v3875_v20, %v871_v24  ;;  %v919_v9 = vmul.f32 %v3869_v44, %v844_v38  ;;  %v5948_v30 = vld [vmem:[#allocation69_spill] sm:$0xff]  ;;  %v5950_v38 = vld [vmem:[#allocation148_spill] sm:$0xff] }
 0x225   : > { %2481 = vmatprep.subr.bf16.mxu1 %v5947_v25  ;;  %1484 = vmatmul.mubr.f32.gmra.mrb[24].mxu1 %v4658_v2  ;;  %v4690_v1 = vadd.f32 %v3890_v11, %v916_v19  ;;  %v949_v16 = vmul.f32 %v3869_v44, %v874_v50  ;;  %v843_v23 = vmul.f32 %v2744_v39, %v5948_v30  ;;  %v1216_v21 = vld [vmem:[#allocation8 + $0x5e8] sm:$0xff] }
 0x226   : > { %1399 = vmatprep.mubr.f32.mxu0 %v4674_v53  ;;  %1489 = vmatprep.mubr.f32.mxu1 %v4680_v49  ;;  %v4696_v52 = vadd.f32 %v3890_v11, %v946_v27  ;;  %v5949_v24 = vld [vmem:[#allocation149_spill] sm:$0xff]  ;;  %v4702_v43 = vadd.f32 %v3872_v6, %v919_v9  ;;  %v5953_v50 = vpack.c.bf16 %v4162_v40, %v4150_v45  ;;  %v5957_v9 = vld [vmem:[#allocation32_spill] sm:$0xff] }
 0x227   : > { %v5951_v0 = vpack.c.bf16 %v5949_v24, %v5950_v38  ;;  %v5952_v19 = vld [vmem:[#allocation29_spill] sm:$0xff]  ;;  %v5954_v39 = vpack.c.bf16 %v4166_v13, %v4164_v22  ;;  %v4712_v27 = vadd.f32 %v3872_v6, %v949_v16  ;;  %v918_v30 = vmul.f32 %v3875_v20, %v843_v23  ;;  %1400 = vmatmul.mubr.f32.gmra.mrb[28].mxu0 %v4690_v1  ;;  %v1215_v13 = vld [vmem:[#allocation8 + $0x5e0] sm:$0xff] }
 0x228   : > { %v873_v25 = vmul.f32 %v2742_v60, %v5952_v19  ;;  %2483 = vmatpush1.bf16.msra.mxu1 %v5953_v50  ;;  %v5955_v24 = vld [vmem:[#allocation33_spill] sm:$0xff]  ;;  %v5956_v60 = vpack.c.bf16 %v4175_v48, %v4173_v54  ;;  %v2488_v45 = vpack.c.bf16 %v1216_v21, %v1210_v32  ;;  %1405 = vmatprep.mubr.f32.mxu0 %v4702_v43 }
 0x229   : > { %2549 = vmatprep.subr.bf16.mxu0 %v5951_v0  ;;  %v876_v38 = vmul.f32 %v2746_v47, %v5955_v24  ;;  %v875_v0 = vmul.f32 %v2746_v47, %v5957_v9  ;;  %v1209_v22 = vld [vmem:[#allocation8 + $0x5b0] sm:$0xff]  ;;  %1490 = vmatmul.mubr.f32.gmra.mrb[26].mxu1 %v4696_v52  ;;  %v4725_v16 = vadd.f32 %v3890_v11, %v918_v30  ;;  %v5973_v24 = vld [vmem:[#allocation39_spill] sm:$0xff] }
 0x22a   : > { %2551 = vmatpush1.bf16.msra.mxu0 %v5954_v39  ;;  %2485 = vmatprep.subr.bf16.mxu1 %v5956_v60  ;;  %v948_v40 = vmul.f32 %v3875_v20, %v873_v25  ;;  %v5958_v48 = vpack.c.bf16 %v4252_v37, %v4250_v46  ;;  %v5959_v32 = vpack.c.bf16 %v4272_v34, %v4270_v58  ;;  %v5961_v46 = vld [vmem:[#allocation150_spill] sm:$0xff]  ;;  %v5962_v34 = vld [vmem:[#allocation151_spill] sm:$0xff]  ;;  %v5967_v58 = vld [vmem:[#allocation37_spill] sm:$0xff] }
 0x22b   : > { %v951_v23 = vmul.f32 %v3869_v44, %v876_v38  ;;  %1495 = vmatprep.mubr.f32.mxu1 %v4712_v27  ;;  %v950_v47 = vmul.f32 %v3875_v20, %v875_v0  ;;  %v5960_v21 = vpack.c.bf16 %v4293_v14, %v4291_v59  ;;  %v2490_v19 = vpack.c.bf16 %v1215_v13, %v1209_v22  ;;  %v5964_v14 = vld [vmem:[#allocation155_spill] sm:$0xff]  ;;  %v5968_v59 = vld [vmem:[#allocation76_spill] sm:$0xff]  ;;  %v5970_v50 = vld [vmem:[#allocation81_spill] sm:$0xff] }
 0x22c   : > { %v4730_v54 = vadd.f32 %v3890_v11, %v948_v40  ;;  %2553 = vmatprep.subr.bf16.mxu0 %v5958_v48  ;;  %2487 = vmatpush1.bf16.msra.mxu1 %v5959_v32  ;;  %v5965_v37 = vld [vmem:[#allocation35_spill] sm:$0xff]  ;;  %v5969_v25 = vld [vmem:[#allocation36_spill] sm:$0xff]  ;;  %v5972_v30 = vld [vmem:[#allocation85_spill] sm:$0xff] }
 0x22d   : > { %v4743_v44 = vadd.f32 %v3872_v6, %v951_v23  ;;  %1406 = vmatmul.mubr.f32.gmra.mrb[30].mxu0 %v4725_v16  ;;  %2489 = vmatprep.subr.bf16.mxu1 %v2488_v45  ;;  %v4749_v20 = vadd.f32 %v3890_v11, %v950_v47  ;;  %v5963_v6 = vld [vmem:[#allocation154_spill] sm:$0xff]  ;;  %v5971_v39 = vld [vmem:[#allocation79_spill] sm:$0xff] }
 0x22e   : > { %2555 = vmatpush1.bf16.msra.mxu0 %v5960_v21  ;;  %1496 = vmatmul.mubr.f32.gmra.mrb[28].mxu1 %v4730_v54  ;;  %v5966_v11 = vld [vmem:[#allocation74_spill] sm:$0xff] }
 0x22f   : > { %1829 = vmatprep.mubr.f32.mxu0 %v5961_v46  ;;  %1501 = vmatprep.mubr.f32.mxu1 %v4743_v44 }
 0x230   : > { %2491 = vmatpush1.bf16.msra.mxu1 %v2490_v19 }
 0x231   : > { %1830 = vmatmul.mubr.f32.vlgmr.msra.gmra.mrb[32].mxu0 %v5962_v34 }
 0x232   : > { %1502 = vmatmul.mubr.f32.gmra.mrb[30].mxu1 %v4749_v20  ;;  %1835 = vmatprep.mubr.f32.mxu0 %v5963_v6 }
 0x233   : > { %1572 = vmatprep.mubr.f32.mxu1 %v5961_v46 }
 0x235   : > { %1836 = vmatmul.mubr.f32.gmra.mrb[34].mxu0 %v5964_v14 }
 0x236   : > { %1573 = vmatmul.mubr.f32.vlgmr.msra.gmra.mrb[32].mxu1 %v5962_v34  ;;  %1841 = vmatprep.mubr.f32.mxu0 %v5965_v37 }
 0x237   : > { %1578 = vmatprep.mubr.f32.mxu1 %v5963_v6 }
 0x239   : > { %1842 = vmatmul.mubr.f32.gmra.mrb[36].mxu0 %v5966_v11 }
 0x23a   : > { %1579 = vmatmul.mubr.f32.gmra.mrb[34].mxu1 %v5964_v14  ;;  %1847 = vmatprep.mubr.f32.mxu0 %v5967_v58 }
 0x23b   : > { %1584 = vmatprep.mubr.f32.mxu1 %v5965_v37 }
 0x23d   : > { %1848 = vmatmul.mubr.f32.gmra.mrb[38].mxu0 %v5968_v59 }
 0x23e   : > { %1585 = vmatmul.mubr.f32.gmra.mrb[36].mxu1 %v5966_v11  ;;  %1853 = vmatprep.mubr.f32.mxu0 %v5969_v25 }
 0x23f   : > { %1590 = vmatprep.mubr.f32.mxu1 %v5967_v58 }
 0x241   : > { %1854 = vmatmul.mubr.f32.gmra.mrb[40].mxu0 %v5970_v50 }
 0x242   : > { %1591 = vmatmul.mubr.f32.gmra.mrb[38].mxu1 %v5968_v59  ;;  %1859 = vmatprep.mubr.f32.mxu0 %v5971_v39 }
 0x243   : > { %1596 = vmatprep.mubr.f32.mxu1 %v5969_v25 }
 0x245   : > { %1860 = vmatmul.mubr.f32.gmra.mrb[42].mxu0 %v5972_v30 }
 0x246   : > { %1597 = vmatmul.mubr.f32.gmra.mrb[40].mxu1 %v5970_v50  ;;  %1865 = vmatprep.mubr.f32.mxu0 %v5973_v24 }
 0x247   : > { %1602 = vmatprep.mubr.f32.mxu1 %v5971_v39 }
 0x249   : > { %1866 = vmatmul.mubr.f32.gmra.mrb[44].mxu0 %v4409_v51 }
 0x24a   : > { %1603 = vmatmul.mubr.f32.gmra.mrb[42].mxu1 %v5972_v30  ;;  %1871 = vmatprep.mubr.f32.mxu0 %v4425_v41 }
 0x24b   : > { %1608 = vmatprep.mubr.f32.mxu1 %v5973_v24 }
 0x24d   : > { %1872 = vmatmul.mubr.f32.gmra.mrb[46].mxu0 %v4441_v29 }
 0x24e   : > { %1609 = vmatmul.mubr.f32.gmra.mrb[44].mxu1 %v4409_v51  ;;  %1877 = vmatprep.mubr.f32.mxu0 %v4462_v12  ;;  %v5974_v51 = vld [vmem:[#allocation152_spill] sm:$0xff] }
 0x24f   : > { %1614 = vmatprep.mubr.f32.mxu1 %v4425_v41  ;;  %v5975_v41 = vld [vmem:[#allocation153_spill] sm:$0xff] }
 0x251   : > { %1878 = vmatmul.mubr.f32.gmra.mrb[48].mxu0 %v4473_v63 }
 0x252   : > { %1615 = vmatmul.mubr.f32.gmra.mrb[46].mxu1 %v4441_v29  ;;  %1883 = vmatprep.mubr.f32.mxu0 %v4499_v10  ;;  %v5976_v29 = vld [vmem:[#allocation73_spill] sm:$0xff] }
 0x253   : > { %1620 = vmatprep.mubr.f32.mxu1 %v4462_v12  ;;  %v5977_v12 = vld [vmem:[#allocation78_spill] sm:$0xff] }
 0x255   : > { %1884 = vmatmul.mubr.f32.gmra.mrb[50].mxu0 %v4518_v42 }
 0x256   : > { %1621 = vmatmul.mubr.f32.gmra.mrb[48].mxu1 %v4473_v63  ;;  %1889 = vmatprep.mubr.f32.mxu0 %v4536_v4  ;;  %v5978_v63 = vld [vmem:[#allocation77_spill] sm:$0xff] }
 0x257   : > { %1626 = vmatprep.mubr.f32.mxu1 %v4499_v10  ;;  %v5979_v10 = vld [vmem:[#allocation75_spill] sm:$0xff] }
 0x259   : > { %1890 = vmatmul.mubr.f32.gmra.mrb[52].mxu0 %v4547_v56 }
 0x25a   : > { %1627 = vmatmul.mubr.f32.gmra.mrb[50].mxu1 %v4518_v42  ;;  %1895 = vmatprep.mubr.f32.mxu0 %v4574_v3  ;;  %v5980_v42 = vld [vmem:[#allocation82_spill] sm:$0xff] }
 0x25b   : > { %1632 = vmatprep.mubr.f32.mxu1 %v4536_v4  ;;  %v5981_v4 = vld [vmem:[#allocation80_spill] sm:$0xff] }
 0x25d   : > { %1896 = vmatmul.mubr.f32.gmra.mrb[54].mxu0 %v4592_v26 }
 0x25e   : > { %1633 = vmatmul.mubr.f32.gmra.mrb[52].mxu1 %v4547_v56  ;;  %1901 = vmatprep.mubr.f32.mxu0 %v4604_v55  ;;  %v5982_v56 = vld [vmem:[#allocation34_spill] sm:$0xff] }
 0x25f   : > { %1638 = vmatprep.mubr.f32.mxu1 %v4574_v3  ;;  %v5983_v3 = vld [vmem:[#allocation41_spill] sm:$0xff] }
 0x261   : > { %1902 = vmatmul.mubr.f32.gmra.mrb[56].mxu0 %v4620_v35 }
 0x262   : > { %1639 = vmatmul.mubr.f32.gmra.mrb[54].mxu1 %v4592_v26  ;;  %1907 = vmatprep.mubr.f32.mxu0 %v4644_v15  ;;  %v5984_v26 = vld [vmem:[#allocation84_spill] sm:$0xff] }
 0x263   : > { %1644 = vmatprep.mubr.f32.mxu1 %v4604_v55  ;;  %v5985_v55 = vld [vmem:[#allocation83_spill] sm:$0xff] }
 0x265   : > { %1908 = vmatmul.mubr.f32.gmra.mrb[58].mxu0 %v4655_v36 }
 0x266   : > { %1645 = vmatmul.mubr.f32.gmra.mrb[56].mxu1 %v4620_v35  ;;  %1913 = vmatprep.mubr.f32.mxu0 %v4674_v53 }
 0x267   : > { %1650 = vmatprep.mubr.f32.mxu1 %v4644_v15 }
 0x269   : > { %1914 = vmatmul.mubr.f32.gmra.mrb[60].mxu0 %v4690_v1 }
 0x26a   : > { %1651 = vmatmul.mubr.f32.gmra.mrb[58].mxu1 %v4655_v36  ;;  %1919 = vmatprep.mubr.f32.mxu0 %v4702_v43 }
 0x26b   : > { %1656 = vmatprep.mubr.f32.mxu1 %v4674_v53 }
 0x26d   : > { %1920 = vmatmul.mubr.f32.gmra.mrb[62].mxu0 %v4725_v16 }
 0x26e   : > { %1657 = vmatmul.mubr.f32.gmra.mrb[60].mxu1 %v4690_v1  ;;  %1925 = vmatprep.mubr.f32.mxu0 %v5974_v51 }
 0x26f   : > { %1662 = vmatprep.mubr.f32.mxu1 %v4702_v43 }
 0x271   : > { %1926 = vmatmul.mubr.f32.gmra.mrb[64].mxu0 %v5975_v41 }
 0x272   : > { %1663 = vmatmul.mubr.f32.gmra.mrb[62].mxu1 %v4725_v16  ;;  %1931 = vmatprep.mubr.f32.mxu0 %v5976_v29 }
 0x273   : > { %1668 = vmatprep.mubr.f32.mxu1 %v5974_v51 }
 0x275   : > { %1932 = vmatmul.mubr.f32.gmra.mrb[66].mxu0 %v5977_v12 }
 0x276   : > { %1669 = vmatmul.mubr.f32.gmra.mrb[64].mxu1 %v5975_v41  ;;  %1937 = vmatprep.mubr.f32.mxu0 %v5978_v63 }
 0x277   : > { %1674 = vmatprep.mubr.f32.mxu1 %v5976_v29 }
 0x279   : > { %1938 = vmatmul.mubr.f32.gmra.mrb[68].mxu0 %v5979_v10 }
 0x27a   : > { %1675 = vmatmul.mubr.f32.gmra.mrb[66].mxu1 %v5977_v12  ;;  %1943 = vmatprep.mubr.f32.mxu0 %v5980_v42 }
 0x27b   : > { %1680 = vmatprep.mubr.f32.mxu1 %v5978_v63 }
 0x27d   : > { %1944 = vmatmul.mubr.f32.gmra.mrb[70].mxu0 %v5981_v4 }
 0x27e   : > { %1681 = vmatmul.mubr.f32.gmra.mrb[68].mxu1 %v5979_v10  ;;  %1949 = vmatprep.mubr.f32.mxu0 %v5982_v56 }
 0x27f   : > { %1686 = vmatprep.mubr.f32.mxu1 %v5980_v42 }
 0x281   : > { %1950 = vmatmul.mubr.f32.gmra.mrb[72].mxu0 %v5983_v3 }
 0x282   : > { %1687 = vmatmul.mubr.f32.gmra.mrb[70].mxu1 %v5981_v4  ;;  %1955 = vmatprep.mubr.f32.mxu0 %v4399_v5 }
 0x283   : > { %1692 = vmatprep.mubr.f32.mxu1 %v5982_v56 }
 0x285   : > { %1956 = vmatmul.mubr.f32.gmra.mrb[74].mxu0 %v5984_v26 }
 0x286   : > { %1693 = vmatmul.mubr.f32.gmra.mrb[72].mxu1 %v5983_v3  ;;  %1961 = vmatprep.mubr.f32.mxu0 %v4429_v33 }
 0x287   : > { %1698 = vmatprep.mubr.f32.mxu1 %v4399_v5  ;;  %v5986_v5 = vld [vmem:[#allocation40_spill] sm:$0xff] }
 0x289   : > { %1962 = vmatmul.mubr.f32.gmra.mrb[76].mxu0 %v4450_v62 }
 0x28a   : > { %1699 = vmatmul.mubr.f32.gmra.mrb[74].mxu1 %v5984_v26  ;;  %1967 = vmatprep.mubr.f32.mxu0 %v4470_v18 }
 0x28b   : > { %1704 = vmatprep.mubr.f32.mxu1 %v4429_v33  ;;  %v5987_v33 = vld [vmem:[#allocation89_spill] sm:$0xff] }
 0x28d   : > { %1968 = vmatmul.mubr.f32.gmra.mrb[78].mxu0 %v5985_v55 }
 0x28e   : > { %1705 = vmatmul.mubr.f32.gmra.mrb[76].mxu1 %v4450_v62  ;;  %1973 = vmatprep.mubr.f32.mxu0 %v4506_v7  ;;  %v4880_v62 = vld [vmem:[#allocation10] sm:$0x3f] }
 0x28f   : > { %1710 = vmatprep.mubr.f32.mxu1 %v4470_v18  ;;  %v5988_v18 = vld [vmem:[#allocation72_spill] sm:$0xff] }
 0x291   : > { %1974 = vmatmul.mubr.f32.gmra.mrb[80].mxu0 %v4527_v57 }
 0x292   : > { %1711 = vmatmul.mubr.f32.gmra.mrb[78].mxu1 %v5985_v55  ;;  %1979 = vmatprep.mubr.f32.mxu0 %v4544_v28 }
 0x293   : > { %1716 = vmatprep.mubr.f32.mxu1 %v4506_v7  ;;  %v4885_v7 = vrot.slane %v4880_v62, %v5988_v18 }
 0x295   : > { %1980 = vmatmul.mubr.f32.gmra.mrb[82].mxu0 %v4559_v8 }
 0x296   : > { %1717 = vmatmul.mubr.f32.gmra.mrb[80].mxu1 %v4527_v57  ;;  %1985 = vmatprep.mubr.f32.mxu0 %v4582_v31  ;;  %v5989_v57 = vld [vmem:[#allocation71_spill] sm:$0xff] }
 0x297   : > { %1722 = vmatprep.mubr.f32.mxu1 %v4544_v28  ;;  %v4889_v28 = vrot.slane %v4880_v62, %v5989_v57 }
 0x299   : > { %1986 = vmatmul.mubr.f32.gmra.mrb[84].mxu0 %v5986_v5 }
 0x29a   : > { %1723 = vmatmul.mubr.f32.gmra.mrb[82].mxu1 %v4559_v8  ;;  %1991 = vmatprep.mubr.f32.mxu0 %v5987_v33 }
 0x29b   : > { %1728 = vmatprep.mubr.f32.mxu1 %v4582_v31 }
 0x29d   : > { %1992 = vmatmul.mubr.f32.gmra.mrb[86].mxu0 %v4626_v61 }
 0x29e   : > { %1729 = vmatmul.mubr.f32.gmra.mrb[84].mxu1 %v5986_v5  ;;  %1997 = vmatprep.mubr.f32.mxu0 %v4647_v17 }
 0x29f   : > { %1734 = vmatprep.mubr.f32.mxu1 %v5987_v33 }
 0x2a1   : > { %1998 = vmatmul.mubr.f32.gmra.mrb[88].mxu0 %v4658_v2 }
 0x2a2   : > { %1735 = vmatmul.mubr.f32.gmra.mrb[86].mxu1 %v4626_v61  ;;  %2003 = vmatprep.mubr.f32.mxu0 %v4680_v49 }
 0x2a3   : > { %1740 = vmatprep.mubr.f32.mxu1 %v4647_v17 }
 0x2a5   : > { %2004 = vmatmul.mubr.f32.gmra.mrb[90].mxu0 %v4696_v52 }
 0x2a6   : > { %1741 = vmatmul.mubr.f32.gmra.mrb[88].mxu1 %v4658_v2  ;;  %2009 = vmatprep.mubr.f32.mxu0 %v4712_v27 }
 0x2a7   : > { %1746 = vmatprep.mubr.f32.mxu1 %v4680_v49 }
 0x2a9   : > { %2010 = vmatmul.mubr.f32.gmra.mrb[92].mxu0 %v4730_v54 }
 0x2aa   : > { %1747 = vmatmul.mubr.f32.gmra.mrb[90].mxu1 %v4696_v52  ;;  %2015 = vmatprep.mubr.f32.mxu0 %v4743_v44 }
 0x2ab   : > { %1752 = vmatprep.mubr.f32.mxu1 %v4712_v27 }
 0x2ad   : > { %2016 = vmatmul.mubr.f32.gmra.mrb[94].mxu0 %v4749_v20  ;;  %v1317_v8 = vpop.f32.mrb[0].mxu0 }
 0x2ae   : > { %1753 = vmatmul.mubr.f32.gmra.mrb[92].mxu1 %v4730_v54  ;;  %v1318_v31 = vadd.f32 %v1317_v8, %v4885_v7  ;;  %v1319_v35 = vpop.f32.mrb[1].mxu0 }
 0x2af   : > { %1758 = vmatprep.mubr.f32.mxu1 %v4743_v44  ;;  %v1320_v61 = vadd.f32 %v1319_v35, %v4889_v28 }
 0x2b0   : > { %2022 = vst [vmem:[%s4893_s26] sm:$0xff] %v1318_v31 }
 0x2b1   : > { %2023 = vst [vmem:[%s4893_s26 + $0x8] sm:$0xff] %v1320_v61  ;;  %v1413_v15 = vpop.f32.mrb[0].mxu1 }
 0x2b2   : > { %1759 = vmatmul.mubr.f32.gmra.mrb[94].mxu1 %v4749_v20  ;;  %v1323_v17 = vpop.f32.mrb[2].mxu0  ;;  %v1414_v36 = vadd.f32 %v1413_v15, %v4885_v7  ;;  %v1415_v2 = vpop.f32.mrb[1].mxu1 }
 0x2b3   : > { %v1324_v53 = vadd.f32 %v1323_v17, %v4885_v7  ;;  %v1325_v49 = vpop.f32.mrb[3].mxu0  ;;  %v1416_v1 = vadd.f32 %v1415_v2, %v4889_v28 }
 0x2b4   : > { %2118 = vst [vmem:[%s4893_s26 + $0x300] sm:$0xff] %v1414_v36  ;;  %v1326_v52 = vadd.f32 %v1325_v49, %v4889_v28 }
 0x2b5   : > { %2028 = vst [vmem:[%s4893_s26 + $0x30] sm:$0xff] %v1324_v53  ;;  %2119 = vst [vmem:[%s4893_s26 + $0x308] sm:$0xff] %v1416_v1 }
 0x2b6   : > { %2029 = vst [vmem:[%s4893_s26 + $0x38] sm:$0xff] %v1326_v52 }
 0x2b8   : > { %v1329_v43 = vpop.f32.mrb[4].mxu0 }
 0x2b9   : > { %v1330_v27 = vadd.f32 %v1329_v43, %v4885_v7  ;;  %v1331_v60 = vpop.f32.mrb[5].mxu0 }
 0x2ba   : > { %v1419_v38 = vpop.f32.mrb[2].mxu1  ;;  %v1332_v45 = vadd.f32 %v1331_v60, %v4889_v28 }
 0x2bb   : > { %v1420_v40 = vadd.f32 %v1419_v38, %v4885_v7  ;;  %v1421_v9 = vpop.f32.mrb[3].mxu1  ;;  %2034 = vst [vmem:[%s4893_s26 + $0x60] sm:$0xff] %v1330_v27 }
 0x2bc   : > { %v1422_v0 = vadd.f32 %v1421_v9, %v4889_v28  ;;  %2035 = vst [vmem:[%s4893_s26 + $0x68] sm:$0xff] %v1332_v45 }
 0x2bd   : > { %2124 = vst [vmem:[%s4893_s26 + $0x330] sm:$0xff] %v1420_v40 }
 0x2be   : > { %2125 = vst [vmem:[%s4893_s26 + $0x338] sm:$0xff] %v1422_v0  ;;  %v1335_v22 = vpop.f32.mrb[6].mxu0 }
 0x2bf   : > { %v1336_v13 = vadd.f32 %v1335_v22, %v4885_v7  ;;  %v1337_v16 = vpop.f32.mrb[7].mxu0 }
 0x2c0   : > { %v1338_v54 = vadd.f32 %v1337_v16, %v4889_v28 }
 0x2c1   : > { %v1425_v23 = vpop.f32.mrb[4].mxu1  ;;  %2040 = vst [vmem:[%s4893_s26 + $0x90] sm:$0xff] %v1336_v13 }
 0x2c2   : > { %v1426_v48 = vadd.f32 %v1425_v23, %v4885_v7  ;;  %v1427_v47 = vpop.f32.mrb[5].mxu1  ;;  %2041 = vst [vmem:[%s4893_s26 + $0x98] sm:$0xff] %v1338_v54 }
 0x2c3   : > { %v1428_v32 = vadd.f32 %v1427_v47, %v4889_v28 }
 0x2c4   : > { %v1341_v21 = vpop.f32.mrb[8].mxu0  ;;  %2130 = vst [vmem:[%s4893_s26 + $0x360] sm:$0xff] %v1426_v48 }
 0x2c5   : > { %v1342_v44 = vadd.f32 %v1341_v21, %v4885_v7  ;;  %v1343_v19 = vpop.f32.mrb[9].mxu0  ;;  %2131 = vst [vmem:[%s4893_s26 + $0x368] sm:$0xff] %v1428_v32 }
 0x2c6   : > { %v1344_v46 = vadd.f32 %v1343_v19, %v4889_v28  ;;  %v1431_v20 = vpop.f32.mrb[6].mxu1 }
 0x2c7   : > { %2046 = vst [vmem:[%s4893_s26 + $0xc0] sm:$0xff] %v1342_v44  ;;  %v1432_v34 = vadd.f32 %v1431_v20, %v4885_v7  ;;  %v1433_v6 = vpop.f32.mrb[7].mxu1 }
 0x2c8   : > { %2047 = vst [vmem:[%s4893_s26 + $0xc8] sm:$0xff] %v1344_v46  ;;  %v1434_v14 = vadd.f32 %v1433_v6, %v4889_v28 }
 0x2c9   : > { %2136 = vst [vmem:[%s4893_s26 + $0x390] sm:$0xff] %v1432_v34 }
 0x2ca   : > { %v1347_v37 = vpop.f32.mrb[10].mxu0  ;;  %2137 = vst [vmem:[%s4893_s26 + $0x398] sm:$0xff] %v1434_v14 }
 0x2cb   : > { %v1348_v11 = vadd.f32 %v1347_v37, %v4885_v7  ;;  %v1349_v59 = vpop.f32.mrb[11].mxu0 }
 0x2cc   : > { %v1437_v58 = vpop.f32.mrb[8].mxu1  ;;  %v1350_v50 = vadd.f32 %v1349_v59, %v4889_v28 }
 0x2cd   : > { %v1438_v25 = vadd.f32 %v1437_v58, %v4885_v7  ;;  %v1439_v39 = vpop.f32.mrb[9].mxu1  ;;  %2052 = vst [vmem:[%s4893_s26 + $0xf0] sm:$0xff] %v1348_v11 }
 0x2ce   : > { %v1440_v30 = vadd.f32 %v1439_v39, %v4889_v28  ;;  %2053 = vst [vmem:[%s4893_s26 + $0xf8] sm:$0xff] %v1350_v50 }
 0x2cf   : > { %2142 = vst [vmem:[%s4893_s26 + $0x3c0] sm:$0xff] %v1438_v25 }
 0x2d0   : > { %2143 = vst [vmem:[%s4893_s26 + $0x3c8] sm:$0xff] %v1440_v30 }
 0x2d2   : > { %v1353_v24 = vpop.f32.mrb[12].mxu0 }
 0x2d3   : > { %v1443_v51 = vpop.f32.mrb[10].mxu1  ;;  %v1354_v41 = vadd.f32 %v1353_v24, %v4885_v7  ;;  %v1355_v12 = vpop.f32.mrb[13].mxu0 }
 0x2d4   : > { %v1444_v29 = vadd.f32 %v1443_v51, %v4885_v7  ;;  %v1445_v63 = vpop.f32.mrb[11].mxu1  ;;  %v1356_v10 = vadd.f32 %v1355_v12, %v4889_v28  ;;  %v5990_v12 = vld [vmem:[#allocation70_spill] sm:$0xff] }
 0x2d5   : > { %v1446_v42 = vadd.f32 %v1445_v63, %v4889_v28  ;;  %2058 = vst [vmem:[%s4893_s26 + $0x120] sm:$0xff] %v1354_v41  ;;  %v1239_v63 = vsub.s32 4, %v5990_v12 }
 0x2d6   : > { %2148 = vst [vmem:[%s4893_s26 + $0x3f0] sm:$0xff] %v1444_v29  ;;  %2059 = vst [vmem:[%s4893_s26 + $0x128] sm:$0xff] %v1356_v10  ;;  %v1359_v4 = vpop.f32.mrb[14].mxu0 }
 0x2d7   : > { %2149 = vst [vmem:[%s4893_s26 + $0x3f8] sm:$0xff] %v1446_v42  ;;  %v1360_v56 = vadd.f32 %v1359_v4, %v4885_v7  ;;  %v1449_v3 = vpop.f32.mrb[12].mxu1  ;;  %v1361_v26 = vpop.f32.mrb[15].mxu0 }
 0x2d8   : > { %v1450_v55 = vadd.f32 %v1449_v3, %v4885_v7  ;;  %v1362_v5 = vadd.f32 %v1361_v26, %v4889_v28  ;;  %v1451_v33 = vpop.f32.mrb[13].mxu1 }
 0x2d9   : > { %2064 = vst [vmem:[%s4893_s26 + $0x150] sm:$0xff] %v1360_v56  ;;  %v1452_v18 = vadd.f32 %v1451_v33, %v4889_v28  ;;  %v1243_v56 = vsub.s32 5, %v5990_v12 }
 0x2da   : > { %2154 = vst [vmem:[%s4893_s26 + $0x420] sm:$0xff] %v1450_v55  ;;  %2065 = vst [vmem:[%s4893_s26 + $0x158] sm:$0xff] %v1362_v5 }
 0x2db   : > { %2155 = vst [vmem:[%s4893_s26 + $0x428] sm:$0xff] %v1452_v18 }
 0x2dc   : > { %v1365_v57 = vpop.f32.mrb[16].mxu0 }
 0x2dd   : > { %v1366_v8 = vadd.f32 %v1365_v57, %v4885_v7  ;;  %v1455_v31 = vpop.f32.mrb[14].mxu1  ;;  %v1367_v35 = vpop.f32.mrb[17].mxu0 }
 0x2de   : > { %v1456_v61 = vadd.f32 %v1455_v31, %v4885_v7  ;;  %v1368_v15 = vadd.f32 %v1367_v35, %v4889_v28  ;;  %v1457_v17 = vpop.f32.mrb[15].mxu1  ;;  %v5013_v31 = vrot.slane %v4880_v62, %v1239_v63  ;;  %v1231_v35 = vsub.s32 2, %v5990_v12 }
 0x2df   : > { %2070 = vst [vmem:[%s4893_s26 + $0x180] sm:$0xff] %v1366_v8  ;;  %v1458_v36 = vadd.f32 %v1457_v17, %v4889_v28 }
 0x2e0   : > { %2160 = vst [vmem:[%s4893_s26 + $0x450] sm:$0xff] %v1456_v61  ;;  %2071 = vst [vmem:[%s4893_s26 + $0x188] sm:$0xff] %v1368_v15 }
 0x2e1   : > { %2161 = vst [vmem:[%s4893_s26 + $0x458] sm:$0xff] %v1458_v36  ;;  %v1371_v2 = vpop.f32.mrb[18].mxu0  ;;  %v5019_v36 = vrot.slane %v4880_v62, %v1243_v56 }
 0x2e2   : > { %v1372_v53 = vadd.f32 %v1371_v2, %v4885_v7  ;;  %v1373_v1 = vpop.f32.mrb[19].mxu0  ;;  %v1235_v2 = vsub.s32 3, %v5990_v12 }
 0x2e3   : > { %v1461_v49 = vpop.f32.mrb[16].mxu1  ;;  %v1374_v43 = vadd.f32 %v1373_v1, %v4889_v28 }
 0x2e4   : > { %v1462_v52 = vadd.f32 %v1461_v49, %v4885_v7  ;;  %v1463_v27 = vpop.f32.mrb[17].mxu1  ;;  %2076 = vst [vmem:[%s4893_s26 + $0x1b0] sm:$0xff] %v1372_v53 }
 0x2e5   : > { %v1464_v38 = vadd.f32 %v1463_v27, %v4889_v28  ;;  %2077 = vst [vmem:[%s4893_s26 + $0x1b8] sm:$0xff] %v1374_v43 }
 0x2e6   : > { %2166 = vst [vmem:[%s4893_s26 + $0x480] sm:$0xff] %v1462_v52 }
 0x2e7   : > { %v1377_v60 = vpop.f32.mrb[20].mxu0  ;;  %2167 = vst [vmem:[%s4893_s26 + $0x488] sm:$0xff] %v1464_v38 }
 0x2e8   : > { %v1378_v40 = vadd.f32 %v1377_v60, %v4885_v7  ;;  %v1467_v45 = vpop.f32.mrb[18].mxu1  ;;  %v1379_v9 = vpop.f32.mrb[21].mxu0 }
 0x2e9   : > { %v1468_v0 = vadd.f32 %v1467_v45, %v4885_v7  ;;  %v1380_v22 = vadd.f32 %v1379_v9, %v4889_v28  ;;  %v1469_v13 = vpop.f32.mrb[19].mxu1  ;;  %v5036_v9 = vrot.slane %v4880_v62, %v1235_v2 }
 0x2ea   : > { %2082 = vst [vmem:[%s4893_s26 + $0x1e0] sm:$0xff] %v1378_v40  ;;  %v1470_v16 = vadd.f32 %v1469_v13, %v4889_v28  ;;  %v5031_v40 = vrot.slane %v4880_v62, %v1231_v35 }
 0x2eb   : > { %2172 = vst [vmem:[%s4893_s26 + $0x4b0] sm:$0xff] %v1468_v0  ;;  %2083 = vst [vmem:[%s4893_s26 + $0x1e8] sm:$0xff] %v1380_v22 }
 0x2ec   : > { %2173 = vst [vmem:[%s4893_s26 + $0x4b8] sm:$0xff] %v1470_v16  ;;  %v1383_v23 = vpop.f32.mrb[22].mxu0 }
 0x2ed   : > { %v1384_v54 = vadd.f32 %v1383_v23, %v4885_v7  ;;  %v1385_v47 = vpop.f32.mrb[23].mxu0 }
 0x2ee   : > { %v1473_v48 = vpop.f32.mrb[20].mxu1  ;;  %v1386_v21 = vadd.f32 %v1385_v47, %v4889_v28 }
 0x2ef   : > { %v1474_v32 = vadd.f32 %v1473_v48, %v4885_v7  ;;  %v1475_v44 = vpop.f32.mrb[21].mxu1  ;;  %2088 = vst [vmem:[%s4893_s26 + $0x210] sm:$0xff] %v1384_v54 }
 0x2f0   : > { %v1476_v19 = vadd.f32 %v1475_v44, %v4889_v28  ;;  %2089 = vst [vmem:[%s4893_s26 + $0x218] sm:$0xff] %v1386_v21  ;;  %v1389_v46 = vpop.f32.mrb[24].mxu0 }
 0x2f1   : > { %2178 = vst [vmem:[%s4893_s26 + $0x4e0] sm:$0xff] %v1474_v32  ;;  %v1390_v20 = vadd.f32 %v1389_v46, %v4885_v7  ;;  %v1391_v6 = vpop.f32.mrb[25].mxu0 }
 0x2f2   : > { %2179 = vst [vmem:[%s4893_s26 + $0x4e8] sm:$0xff] %v1476_v19  ;;  %v1392_v37 = vadd.f32 %v1391_v6, %v4889_v28 }
 0x2f3   : > { %v1479_v34 = vpop.f32.mrb[22].mxu1  ;;  %2094 = vst [vmem:[%s4893_s26 + $0x240] sm:$0xff] %v1390_v20 }
 0x2f4   : > { %v1480_v14 = vadd.f32 %v1479_v34, %v4885_v7  ;;  %v1481_v11 = vpop.f32.mrb[23].mxu1  ;;  %2095 = vst [vmem:[%s4893_s26 + $0x248] sm:$0xff] %v1392_v37 }
 0x2f5   : > { %v1482_v58 = vadd.f32 %v1481_v11, %v4889_v28 }
 0x2f6   : > { %2184 = vst [vmem:[%s4893_s26 + $0x510] sm:$0xff] %v1480_v14  ;;  %v1395_v59 = vpop.f32.mrb[26].mxu0 }
 0x2f7   : > { %2185 = vst [vmem:[%s4893_s26 + $0x518] sm:$0xff] %v1482_v58  ;;  %v1396_v25 = vadd.f32 %v1395_v59, %v4885_v7  ;;  %v1397_v39 = vpop.f32.mrb[27].mxu0 }
 0x2f8   : > { %v1485_v50 = vpop.f32.mrb[24].mxu1  ;;  %v1398_v24 = vadd.f32 %v1397_v39, %v4889_v28 }
 0x2f9   : > { %v1486_v30 = vadd.f32 %v1485_v50, %v4885_v7  ;;  %v1487_v51 = vpop.f32.mrb[25].mxu1  ;;  %2100 = vst [vmem:[%s4893_s26 + $0x270] sm:$0xff] %v1396_v25 }
 0x2fa   : > { %v1488_v41 = vadd.f32 %v1487_v51, %v4889_v28  ;;  %2101 = vst [vmem:[%s4893_s26 + $0x278] sm:$0xff] %v1398_v24  ;;  %v1401_v29 = vpop.f32.mrb[28].mxu0 }
 0x2fb   : > { %2190 = vst [vmem:[%s4893_s26 + $0x540] sm:$0xff] %v1486_v30  ;;  %v1402_v10 = vadd.f32 %v1401_v29, %v4885_v7  ;;  %v1403_v4 = vpop.f32.mrb[29].mxu0 }
 0x2fc   : > { %2191 = vst [vmem:[%s4893_s26 + $0x548] sm:$0xff] %v1488_v41  ;;  %v1491_v42 = vpop.f32.mrb[26].mxu1  ;;  %v1404_v26 = vadd.f32 %v1403_v4, %v4889_v28 }
 0x2fd   : > { %v1492_v3 = vadd.f32 %v1491_v42, %v4885_v7  ;;  %v1493_v55 = vpop.f32.mrb[27].mxu1  ;;  %2106 = vst [vmem:[%s4893_s26 + $0x2a0] sm:$0xff] %v1402_v10 }
 0x2fe   : > { %v1494_v5 = vadd.f32 %v1493_v55, %v4889_v28  ;;  %2107 = vst [vmem:[%s4893_s26 + $0x2a8] sm:$0xff] %v1404_v26 }
 0x2ff   : > { %2196 = vst [vmem:[%s4893_s26 + $0x570] sm:$0xff] %v1492_v3 }
 0x300   : > { %v1407_v33 = vpop.f32.mrb[30].mxu0  ;;  %2197 = vst [vmem:[%s4893_s26 + $0x578] sm:$0xff] %v1494_v5 }
 0x301   : > { %v1408_v18 = vadd.f32 %v1407_v33, %v4885_v7  ;;  %v1497_v57 = vpop.f32.mrb[28].mxu1  ;;  %v1409_v8 = vpop.f32.mrb[31].mxu0 }
 0x302   : > { %v1498_v61 = vadd.f32 %v1497_v57, %v4885_v7  ;;  %v1410_v15 = vadd.f32 %v1409_v8, %v4889_v28  ;;  %v1499_v17 = vpop.f32.mrb[29].mxu1 }
 0x303   : > { %2112 = vst [vmem:[%s4893_s26 + $0x2d0] sm:$0xff] %v1408_v18  ;;  %v1500_v53 = vadd.f32 %v1499_v17, %v4889_v28 }
 0x304   : > { %2202 = vst [vmem:[%s4893_s26 + $0x5a0] sm:$0xff] %v1498_v61  ;;  %2113 = vst [vmem:[%s4893_s26 + $0x2d8] sm:$0xff] %v1410_v15  ;;  %v1831_v49 = vpop.f32.mrb[32].mxu0 }
 0x305   : > { %2203 = vst [vmem:[%s4893_s26 + $0x5a8] sm:$0xff] %v1500_v53  ;;  %v1503_v1 = vpop.f32.mrb[30].mxu1  ;;  %v1832_v52 = vadd.f32 %v1831_v49, %v5013_v31  ;;  %v1833_v43 = vpop.f32.mrb[33].mxu0 }
 0x306   : > { %v1504_v27 = vadd.f32 %v1503_v1, %v4885_v7  ;;  %v1505_v38 = vpop.f32.mrb[31].mxu1  ;;  %v1834_v60 = vadd.f32 %v1833_v43, %v5019_v36 }
 0x307   : > { %2026 = vst [vmem:[%s4893_s26 + $0x20] sm:$0xff] %v1832_v52  ;;  %v1506_v45 = vadd.f32 %v1505_v38, %v4889_v28 }
 0x308   : > { %2208 = vst [vmem:[%s4893_s26 + $0x5d0] sm:$0xff] %v1504_v27  ;;  %2027 = vst [vmem:[%s4893_s26 + $0x28] sm:$0xff] %v1834_v60  ;;  %v1837_v0 = vpop.f32.mrb[34].mxu0 }
 0x309   : > { %2209 = vst [vmem:[%s4893_s26 + $0x5d8] sm:$0xff] %v1506_v45  ;;  %v1574_v7 = vpop.f32.mrb[32].mxu1  ;;  %v1838_v22 = vadd.f32 %v1837_v0, %v5013_v31  ;;  %v1839_v13 = vpop.f32.mrb[35].mxu0 }
 0x30a   : > { %v1575_v16 = vadd.f32 %v1574_v7, %v5031_v40  ;;  %v1576_v23 = vpop.f32.mrb[33].mxu1  ;;  %v1840_v54 = vadd.f32 %v1839_v13, %v5019_v36 }
 0x30b   : > { %2032 = vst [vmem:[%s4893_s26 + $0x50] sm:$0xff] %v1838_v22  ;;  %v1577_v62 = vadd.f32 %v1576_v23, %v5036_v9 }
 0x30c   : > { %2024 = vst [vmem:[%s4893_s26 + $0x10] sm:$0xff] %v1575_v16  ;;  %2033 = vst [vmem:[%s4893_s26 + $0x58] sm:$0xff] %v1840_v54  ;;  %v1843_v28 = vpop.f32.mrb[36].mxu0 }
 0x30d   : > { %2025 = vst [vmem:[%s4893_s26 + $0x18] sm:$0xff] %v1577_v62  ;;  %v1580_v48 = vpop.f32.mrb[34].mxu1  ;;  %v1844_v47 = vadd.f32 %v1843_v28, %v5013_v31  ;;  %v1845_v32 = vpop.f32.mrb[37].mxu0 }
 0x30e   : > { %v1581_v21 = vadd.f32 %v1580_v48, %v5031_v40  ;;  %v1582_v44 = vpop.f32.mrb[35].mxu1  ;;  %v1846_v19 = vadd.f32 %v1845_v32, %v5019_v36 }
 0x30f   : > { %2038 = vst [vmem:[%s4893_s26 + $0x80] sm:$0xff] %v1844_v47  ;;  %v1583_v46 = vadd.f32 %v1582_v44, %v5036_v9 }
 0x310   : > { %2030 = vst [vmem:[%s4893_s26 + $0x40] sm:$0xff] %v1581_v21  ;;  %2039 = vst [vmem:[%s4893_s26 + $0x88] sm:$0xff] %v1846_v19  ;;  %v1849_v20 = vpop.f32.mrb[38].mxu0 }
 0x311   : > { %2031 = vst [vmem:[%s4893_s26 + $0x48] sm:$0xff] %v1583_v46  ;;  %v1586_v34 = vpop.f32.mrb[36].mxu1  ;;  %v1850_v6 = vadd.f32 %v1849_v20, %v5013_v31  ;;  %v1851_v14 = vpop.f32.mrb[39].mxu0 }
 0x312   : > { %v1587_v37 = vadd.f32 %v1586_v34, %v5031_v40  ;;  %v1588_v11 = vpop.f32.mrb[37].mxu1  ;;  %v1852_v58 = vadd.f32 %v1851_v14, %v5019_v36 }
 0x313   : > { %2044 = vst [vmem:[%s4893_s26 + $0xb0] sm:$0xff] %v1850_v6  ;;  %v1589_v59 = vadd.f32 %v1588_v11, %v5036_v9 }
 0x314   : > { %2036 = vst [vmem:[%s4893_s26 + $0x70] sm:$0xff] %v1587_v37  ;;  %2045 = vst [vmem:[%s4893_s26 + $0xb8] sm:$0xff] %v1852_v58  ;;  %v1855_v25 = vpop.f32.mrb[40].mxu0 }
 0x315   : > { %2037 = vst [vmem:[%s4893_s26 + $0x78] sm:$0xff] %v1589_v59  ;;  %v1592_v50 = vpop.f32.mrb[38].mxu1  ;;  %v1856_v39 = vadd.f32 %v1855_v25, %v5013_v31  ;;  %v1857_v30 = vpop.f32.mrb[41].mxu0 }
 0x316   : > { %v1593_v24 = vadd.f32 %v1592_v50, %v5031_v40  ;;  %v1594_v51 = vpop.f32.mrb[39].mxu1  ;;  %v1858_v41 = vadd.f32 %v1857_v30, %v5019_v36 }
 0x317   : > { %2050 = vst [vmem:[%s4893_s26 + $0xe0] sm:$0xff] %v1856_v39  ;;  %v1595_v29 = vadd.f32 %v1594_v51, %v5036_v9 }
 0x318   : > { %2042 = vst [vmem:[%s4893_s26 + $0xa0] sm:$0xff] %v1593_v24  ;;  %2051 = vst [vmem:[%s4893_s26 + $0xe8] sm:$0xff] %v1858_v41  ;;  %v1861_v12 = vpop.f32.mrb[42].mxu0 }
 0x319   : > { %2043 = vst [vmem:[%s4893_s26 + $0xa8] sm:$0xff] %v1595_v29  ;;  %v1598_v63 = vpop.f32.mrb[40].mxu1  ;;  %v1862_v10 = vadd.f32 %v1861_v12, %v5013_v31  ;;  %v1863_v42 = vpop.f32.mrb[43].mxu0 }
 0x31a   : > { %v1599_v4 = vadd.f32 %v1598_v63, %v5031_v40  ;;  %v1600_v56 = vpop.f32.mrb[41].mxu1  ;;  %v1864_v3 = vadd.f32 %v1863_v42, %v5019_v36 }
 0x31b   : > { %2056 = vst [vmem:[%s4893_s26 + $0x110] sm:$0xff] %v1862_v10  ;;  %v1601_v26 = vadd.f32 %v1600_v56, %v5036_v9 }
 0x31c   : > { %2048 = vst [vmem:[%s4893_s26 + $0xd0] sm:$0xff] %v1599_v4  ;;  %2057 = vst [vmem:[%s4893_s26 + $0x118] sm:$0xff] %v1864_v3  ;;  %v1867_v55 = vpop.f32.mrb[44].mxu0 }
 0x31d   : > { %2049 = vst [vmem:[%s4893_s26 + $0xd8] sm:$0xff] %v1601_v26  ;;  %v1604_v5 = vpop.f32.mrb[42].mxu1  ;;  %v1868_v33 = vadd.f32 %v1867_v55, %v5013_v31  ;;  %v1869_v18 = vpop.f32.mrb[45].mxu0 }
 0x31e   : > { %v1605_v57 = vadd.f32 %v1604_v5, %v5031_v40  ;;  %v1606_v8 = vpop.f32.mrb[43].mxu1  ;;  %v1870_v35 = vadd.f32 %v1869_v18, %v5019_v36 }
 0x31f   : > { %2062 = vst [vmem:[%s4893_s26 + $0x140] sm:$0xff] %v1868_v33  ;;  %v1607_v61 = vadd.f32 %v1606_v8, %v5036_v9 }
 0x320   : > { %2054 = vst [vmem:[%s4893_s26 + $0x100] sm:$0xff] %v1605_v57  ;;  %2063 = vst [vmem:[%s4893_s26 + $0x148] sm:$0xff] %v1870_v35  ;;  %v1873_v15 = vpop.f32.mrb[46].mxu0 }
 0x321   : > { %2055 = vst [vmem:[%s4893_s26 + $0x108] sm:$0xff] %v1607_v61  ;;  %v1610_v17 = vpop.f32.mrb[44].mxu1  ;;  %v1874_v2 = vadd.f32 %v1873_v15, %v5013_v31  ;;  %v1875_v53 = vpop.f32.mrb[47].mxu0 }
 0x322   : > { %v1611_v49 = vadd.f32 %v1610_v17, %v5031_v40  ;;  %v1612_v1 = vpop.f32.mrb[45].mxu1  ;;  %v1876_v52 = vadd.f32 %v1875_v53, %v5019_v36 }
 0x323   : > { %2068 = vst [vmem:[%s4893_s26 + $0x170] sm:$0xff] %v1874_v2  ;;  %v1613_v43 = vadd.f32 %v1612_v1, %v5036_v9 }
 0x324   : > { %2060 = vst [vmem:[%s4893_s26 + $0x130] sm:$0xff] %v1611_v49  ;;  %2069 = vst [vmem:[%s4893_s26 + $0x178] sm:$0xff] %v1876_v52  ;;  %v1879_v27 = vpop.f32.mrb[48].mxu0 }
 0x325   : > { %2061 = vst [vmem:[%s4893_s26 + $0x138] sm:$0xff] %v1613_v43  ;;  %v1616_v38 = vpop.f32.mrb[46].mxu1  ;;  %v1880_v60 = vadd.f32 %v1879_v27, %v5013_v31  ;;  %v1881_v45 = vpop.f32.mrb[49].mxu0 }
 0x326   : > { %v1617_v0 = vadd.f32 %v1616_v38, %v5031_v40  ;;  %v1618_v7 = vpop.f32.mrb[47].mxu1  ;;  %v1882_v22 = vadd.f32 %v1881_v45, %v5019_v36 }
 0x327   : > { %2074 = vst [vmem:[%s4893_s26 + $0x1a0] sm:$0xff] %v1880_v60  ;;  %v1619_v13 = vadd.f32 %v1618_v7, %v5036_v9 }
 0x328   : > { %2066 = vst [vmem:[%s4893_s26 + $0x160] sm:$0xff] %v1617_v0  ;;  %2075 = vst [vmem:[%s4893_s26 + $0x1a8] sm:$0xff] %v1882_v22  ;;  %v1885_v16 = vpop.f32.mrb[50].mxu0 }
 0x329   : > { %2067 = vst [vmem:[%s4893_s26 + $0x168] sm:$0xff] %v1619_v13  ;;  %v1622_v23 = vpop.f32.mrb[48].mxu1  ;;  %v1886_v54 = vadd.f32 %v1885_v16, %v5013_v31  ;;  %v1887_v62 = vpop.f32.mrb[51].mxu0 }
 0x32a   : > { %v1623_v28 = vadd.f32 %v1622_v23, %v5031_v40  ;;  %v1624_v48 = vpop.f32.mrb[49].mxu1  ;;  %v1888_v47 = vadd.f32 %v1887_v62, %v5019_v36 }
 0x32b   : > { %2080 = vst [vmem:[%s4893_s26 + $0x1d0] sm:$0xff] %v1886_v54  ;;  %v1625_v32 = vadd.f32 %v1624_v48, %v5036_v9 }
 0x32c   : > { %2072 = vst [vmem:[%s4893_s26 + $0x190] sm:$0xff] %v1623_v28  ;;  %2081 = vst [vmem:[%s4893_s26 + $0x1d8] sm:$0xff] %v1888_v47  ;;  %v1891_v21 = vpop.f32.mrb[52].mxu0 }
 0x32d   : > { %2073 = vst [vmem:[%s4893_s26 + $0x198] sm:$0xff] %v1625_v32  ;;  %v1628_v44 = vpop.f32.mrb[50].mxu1  ;;  %v1892_v19 = vadd.f32 %v1891_v21, %v5013_v31  ;;  %v1893_v46 = vpop.f32.mrb[53].mxu0 }
 0x32e   : > { %v1629_v20 = vadd.f32 %v1628_v44, %v5031_v40  ;;  %v1630_v34 = vpop.f32.mrb[51].mxu1  ;;  %v1894_v6 = vadd.f32 %v1893_v46, %v5019_v36 }
 0x32f   : > { %2086 = vst [vmem:[%s4893_s26 + $0x200] sm:$0xff] %v1892_v19  ;;  %v1631_v14 = vadd.f32 %v1630_v34, %v5036_v9 }
 0x330   : > { %2078 = vst [vmem:[%s4893_s26 + $0x1c0] sm:$0xff] %v1629_v20  ;;  %2087 = vst [vmem:[%s4893_s26 + $0x208] sm:$0xff] %v1894_v6  ;;  %v1897_v37 = vpop.f32.mrb[54].mxu0 }
 0x331   : > { %2079 = vst [vmem:[%s4893_s26 + $0x1c8] sm:$0xff] %v1631_v14  ;;  %v1634_v11 = vpop.f32.mrb[52].mxu1  ;;  %v1898_v58 = vadd.f32 %v1897_v37, %v5013_v31  ;;  %v1899_v59 = vpop.f32.mrb[55].mxu0 }
 0x332   : > { %v1635_v25 = vadd.f32 %v1634_v11, %v5031_v40  ;;  %v1636_v50 = vpop.f32.mrb[53].mxu1  ;;  %v1900_v39 = vadd.f32 %v1899_v59, %v5019_v36 }
 0x333   : > { %2092 = vst [vmem:[%s4893_s26 + $0x230] sm:$0xff] %v1898_v58  ;;  %v1637_v30 = vadd.f32 %v1636_v50, %v5036_v9 }
 0x334   : > { %2084 = vst [vmem:[%s4893_s26 + $0x1f0] sm:$0xff] %v1635_v25  ;;  %2093 = vst [vmem:[%s4893_s26 + $0x238] sm:$0xff] %v1900_v39  ;;  %v1903_v24 = vpop.f32.mrb[56].mxu0 }
 0x335   : > { %2085 = vst [vmem:[%s4893_s26 + $0x1f8] sm:$0xff] %v1637_v30  ;;  %v1640_v51 = vpop.f32.mrb[54].mxu1  ;;  %v1904_v41 = vadd.f32 %v1903_v24, %v5013_v31  ;;  %v1905_v29 = vpop.f32.mrb[57].mxu0 }
 0x336   : > { %v1641_v12 = vadd.f32 %v1640_v51, %v5031_v40  ;;  %v1642_v63 = vpop.f32.mrb[55].mxu1  ;;  %v1906_v10 = vadd.f32 %v1905_v29, %v5019_v36 }
 0x337   : > { %2098 = vst [vmem:[%s4893_s26 + $0x260] sm:$0xff] %v1904_v41  ;;  %v1643_v42 = vadd.f32 %v1642_v63, %v5036_v9 }
 0x338   : > { %2090 = vst [vmem:[%s4893_s26 + $0x220] sm:$0xff] %v1641_v12  ;;  %2099 = vst [vmem:[%s4893_s26 + $0x268] sm:$0xff] %v1906_v10  ;;  %v1909_v4 = vpop.f32.mrb[58].mxu0 }
 0x339   : > { %2091 = vst [vmem:[%s4893_s26 + $0x228] sm:$0xff] %v1643_v42  ;;  %v1646_v56 = vpop.f32.mrb[56].mxu1  ;;  %v1910_v3 = vadd.f32 %v1909_v4, %v5013_v31  ;;  %v1911_v26 = vpop.f32.mrb[59].mxu0 }
 0x33a   : > { %v1647_v55 = vadd.f32 %v1646_v56, %v5031_v40  ;;  %v1648_v5 = vpop.f32.mrb[57].mxu1  ;;  %v1912_v33 = vadd.f32 %v1911_v26, %v5019_v36 }
 0x33b   : > { %2104 = vst [vmem:[%s4893_s26 + $0x290] sm:$0xff] %v1910_v3  ;;  %v1649_v18 = vadd.f32 %v1648_v5, %v5036_v9 }
 0x33c   : > { %2096 = vst [vmem:[%s4893_s26 + $0x250] sm:$0xff] %v1647_v55  ;;  %2105 = vst [vmem:[%s4893_s26 + $0x298] sm:$0xff] %v1912_v33  ;;  %v1915_v57 = vpop.f32.mrb[60].mxu0 }
 0x33d   : > { %2097 = vst [vmem:[%s4893_s26 + $0x258] sm:$0xff] %v1649_v18  ;;  %v1652_v8 = vpop.f32.mrb[58].mxu1  ;;  %v1916_v35 = vadd.f32 %v1915_v57, %v5013_v31  ;;  %v1917_v61 = vpop.f32.mrb[61].mxu0 }
 0x33e   : > { %v1653_v15 = vadd.f32 %v1652_v8, %v5031_v40  ;;  %v1654_v17 = vpop.f32.mrb[59].mxu1  ;;  %v1918_v2 = vadd.f32 %v1917_v61, %v5019_v36 }
 0x33f   : > { %2110 = vst [vmem:[%s4893_s26 + $0x2c0] sm:$0xff] %v1916_v35  ;;  %v1655_v53 = vadd.f32 %v1654_v17, %v5036_v9 }
 0x340   : > { %2102 = vst [vmem:[%s4893_s26 + $0x280] sm:$0xff] %v1653_v15  ;;  %2111 = vst [vmem:[%s4893_s26 + $0x2c8] sm:$0xff] %v1918_v2  ;;  %v1921_v49 = vpop.f32.mrb[62].mxu0 }
 0x341   : > { %2103 = vst [vmem:[%s4893_s26 + $0x288] sm:$0xff] %v1655_v53  ;;  %v1658_v1 = vpop.f32.mrb[60].mxu1  ;;  %v1922_v52 = vadd.f32 %v1921_v49, %v5013_v31  ;;  %v1923_v43 = vpop.f32.mrb[63].mxu0 }
 0x342   : > { %v1659_v27 = vadd.f32 %v1658_v1, %v5031_v40  ;;  %v1660_v38 = vpop.f32.mrb[61].mxu1  ;;  %v1924_v60 = vadd.f32 %v1923_v43, %v5019_v36 }
 0x343   : > { %2116 = vst [vmem:[%s4893_s26 + $0x2f0] sm:$0xff] %v1922_v52  ;;  %v1661_v45 = vadd.f32 %v1660_v38, %v5036_v9 }
 0x344   : > { %2108 = vst [vmem:[%s4893_s26 + $0x2b0] sm:$0xff] %v1659_v27  ;;  %2117 = vst [vmem:[%s4893_s26 + $0x2f8] sm:$0xff] %v1924_v60  ;;  %v1927_v0 = vpop.f32.mrb[64].mxu0 }
 0x345   : > { %2109 = vst [vmem:[%s4893_s26 + $0x2b8] sm:$0xff] %v1661_v45  ;;  %v1664_v7 = vpop.f32.mrb[62].mxu1  ;;  %v1928_v22 = vadd.f32 %v1927_v0, %v5013_v31  ;;  %v1929_v13 = vpop.f32.mrb[65].mxu0 }
 0x346   : > { %v1665_v16 = vadd.f32 %v1664_v7, %v5031_v40  ;;  %v1666_v23 = vpop.f32.mrb[63].mxu1  ;;  %v1930_v54 = vadd.f32 %v1929_v13, %v5019_v36 }
 0x347   : > { %2122 = vst [vmem:[%s4893_s26 + $0x320] sm:$0xff] %v1928_v22  ;;  %v1667_v62 = vadd.f32 %v1666_v23, %v5036_v9 }
 0x348   : > { %2114 = vst [vmem:[%s4893_s26 + $0x2e0] sm:$0xff] %v1665_v16  ;;  %2123 = vst [vmem:[%s4893_s26 + $0x328] sm:$0xff] %v1930_v54  ;;  %v1933_v28 = vpop.f32.mrb[66].mxu0 }
 0x349   : > { %2115 = vst [vmem:[%s4893_s26 + $0x2e8] sm:$0xff] %v1667_v62  ;;  %v1670_v48 = vpop.f32.mrb[64].mxu1  ;;  %v1934_v47 = vadd.f32 %v1933_v28, %v5013_v31  ;;  %v1935_v32 = vpop.f32.mrb[67].mxu0 }
 0x34a   : > { %v1671_v21 = vadd.f32 %v1670_v48, %v5031_v40  ;;  %v1672_v44 = vpop.f32.mrb[65].mxu1  ;;  %v1936_v19 = vadd.f32 %v1935_v32, %v5019_v36 }
 0x34b   : > { %2128 = vst [vmem:[%s4893_s26 + $0x350] sm:$0xff] %v1934_v47  ;;  %v1673_v46 = vadd.f32 %v1672_v44, %v5036_v9 }
 0x34c   : > { %2120 = vst [vmem:[%s4893_s26 + $0x310] sm:$0xff] %v1671_v21  ;;  %2129 = vst [vmem:[%s4893_s26 + $0x358] sm:$0xff] %v1936_v19  ;;  %v1939_v20 = vpop.f32.mrb[68].mxu0 }
 0x34d   : > { %2121 = vst [vmem:[%s4893_s26 + $0x318] sm:$0xff] %v1673_v46  ;;  %v1676_v34 = vpop.f32.mrb[66].mxu1  ;;  %v1940_v6 = vadd.f32 %v1939_v20, %v5013_v31  ;;  %v1941_v14 = vpop.f32.mrb[69].mxu0 }
 0x34e   : > { %v1677_v37 = vadd.f32 %v1676_v34, %v5031_v40  ;;  %v1678_v11 = vpop.f32.mrb[67].mxu1  ;;  %v1942_v58 = vadd.f32 %v1941_v14, %v5019_v36 }
 0x34f   : > { %2134 = vst [vmem:[%s4893_s26 + $0x380] sm:$0xff] %v1940_v6  ;;  %v1679_v59 = vadd.f32 %v1678_v11, %v5036_v9 }
 0x350   : > { %2126 = vst [vmem:[%s4893_s26 + $0x340] sm:$0xff] %v1677_v37  ;;  %2135 = vst [vmem:[%s4893_s26 + $0x388] sm:$0xff] %v1942_v58  ;;  %v1945_v25 = vpop.f32.mrb[70].mxu0 }
 0x351   : > { %2127 = vst [vmem:[%s4893_s26 + $0x348] sm:$0xff] %v1679_v59  ;;  %v1682_v50 = vpop.f32.mrb[68].mxu1  ;;  %v1946_v39 = vadd.f32 %v1945_v25, %v5013_v31  ;;  %v1947_v30 = vpop.f32.mrb[71].mxu0 }
 0x352   : > { %v1683_v24 = vadd.f32 %v1682_v50, %v5031_v40  ;;  %v1684_v51 = vpop.f32.mrb[69].mxu1  ;;  %v1948_v41 = vadd.f32 %v1947_v30, %v5019_v36 }
 0x353   : > { %2140 = vst [vmem:[%s4893_s26 + $0x3b0] sm:$0xff] %v1946_v39  ;;  %v1685_v29 = vadd.f32 %v1684_v51, %v5036_v9 }
 0x354   : > { %2132 = vst [vmem:[%s4893_s26 + $0x370] sm:$0xff] %v1683_v24  ;;  %2141 = vst [vmem:[%s4893_s26 + $0x3b8] sm:$0xff] %v1948_v41  ;;  %v1951_v12 = vpop.f32.mrb[72].mxu0 }
 0x355   : > { %2133 = vst [vmem:[%s4893_s26 + $0x378] sm:$0xff] %v1685_v29  ;;  %v1688_v63 = vpop.f32.mrb[70].mxu1  ;;  %v1952_v10 = vadd.f32 %v1951_v12, %v5013_v31  ;;  %v1953_v42 = vpop.f32.mrb[73].mxu0 }
 0x356   : > { %v1689_v4 = vadd.f32 %v1688_v63, %v5031_v40  ;;  %v1690_v56 = vpop.f32.mrb[71].mxu1  ;;  %v1954_v3 = vadd.f32 %v1953_v42, %v5019_v36 }
 0x357   : > { %2146 = vst [vmem:[%s4893_s26 + $0x3e0] sm:$0xff] %v1952_v10  ;;  %v1691_v26 = vadd.f32 %v1690_v56, %v5036_v9 }
 0x358   : > { %2138 = vst [vmem:[%s4893_s26 + $0x3a0] sm:$0xff] %v1689_v4  ;;  %2147 = vst [vmem:[%s4893_s26 + $0x3e8] sm:$0xff] %v1954_v3  ;;  %v1957_v55 = vpop.f32.mrb[74].mxu0 }
 0x359   : > { %2139 = vst [vmem:[%s4893_s26 + $0x3a8] sm:$0xff] %v1691_v26  ;;  %v1694_v5 = vpop.f32.mrb[72].mxu1  ;;  %v1958_v33 = vadd.f32 %v1957_v55, %v5013_v31  ;;  %v1959_v18 = vpop.f32.mrb[75].mxu0 }
 0x35a   : > { %v1695_v57 = vadd.f32 %v1694_v5, %v5031_v40  ;;  %v1696_v8 = vpop.f32.mrb[73].mxu1  ;;  %v1960_v35 = vadd.f32 %v1959_v18, %v5019_v36 }
 0x35b   : > { %2152 = vst [vmem:[%s4893_s26 + $0x410] sm:$0xff] %v1958_v33  ;;  %v1697_v61 = vadd.f32 %v1696_v8, %v5036_v9 }
 0x35c   : > { %2144 = vst [vmem:[%s4893_s26 + $0x3d0] sm:$0xff] %v1695_v57  ;;  %2153 = vst [vmem:[%s4893_s26 + $0x418] sm:$0xff] %v1960_v35  ;;  %v1963_v15 = vpop.f32.mrb[76].mxu0 }
 0x35d   : > { %2145 = vst [vmem:[%s4893_s26 + $0x3d8] sm:$0xff] %v1697_v61  ;;  %v1700_v17 = vpop.f32.mrb[74].mxu1  ;;  %v1964_v2 = vadd.f32 %v1963_v15, %v5013_v31  ;;  %v1965_v53 = vpop.f32.mrb[77].mxu0 }
 0x35e   : > { %v1701_v49 = vadd.f32 %v1700_v17, %v5031_v40  ;;  %v1702_v1 = vpop.f32.mrb[75].mxu1  ;;  %v1966_v52 = vadd.f32 %v1965_v53, %v5019_v36 }
 0x35f   : > { %2158 = vst [vmem:[%s4893_s26 + $0x440] sm:$0xff] %v1964_v2  ;;  %v1703_v43 = vadd.f32 %v1702_v1, %v5036_v9 }
 0x360   : > { %2150 = vst [vmem:[%s4893_s26 + $0x400] sm:$0xff] %v1701_v49  ;;  %2159 = vst [vmem:[%s4893_s26 + $0x448] sm:$0xff] %v1966_v52  ;;  %v1969_v27 = vpop.f32.mrb[78].mxu0 }
 0x361   : > { %2151 = vst [vmem:[%s4893_s26 + $0x408] sm:$0xff] %v1703_v43  ;;  %v1706_v38 = vpop.f32.mrb[76].mxu1  ;;  %v1970_v60 = vadd.f32 %v1969_v27, %v5013_v31  ;;  %v1971_v45 = vpop.f32.mrb[79].mxu0 }
 0x362   : > { %v1707_v0 = vadd.f32 %v1706_v38, %v5031_v40  ;;  %v1708_v7 = vpop.f32.mrb[77].mxu1  ;;  %v1972_v22 = vadd.f32 %v1971_v45, %v5019_v36 }
 0x363   : > { %2164 = vst [vmem:[%s4893_s26 + $0x470] sm:$0xff] %v1970_v60  ;;  %v1709_v13 = vadd.f32 %v1708_v7, %v5036_v9 }
 0x364   : > { %2156 = vst [vmem:[%s4893_s26 + $0x430] sm:$0xff] %v1707_v0  ;;  %2165 = vst [vmem:[%s4893_s26 + $0x478] sm:$0xff] %v1972_v22  ;;  %v1975_v16 = vpop.f32.mrb[80].mxu0 }
 0x365   : > { %2157 = vst [vmem:[%s4893_s26 + $0x438] sm:$0xff] %v1709_v13  ;;  %v1712_v23 = vpop.f32.mrb[78].mxu1  ;;  %v1976_v54 = vadd.f32 %v1975_v16, %v5013_v31  ;;  %v1977_v62 = vpop.f32.mrb[81].mxu0 }
 0x366   : > { %v1713_v28 = vadd.f32 %v1712_v23, %v5031_v40  ;;  %v1714_v48 = vpop.f32.mrb[79].mxu1  ;;  %v1978_v47 = vadd.f32 %v1977_v62, %v5019_v36 }
 0x367   : > { %2170 = vst [vmem:[%s4893_s26 + $0x4a0] sm:$0xff] %v1976_v54  ;;  %v1715_v32 = vadd.f32 %v1714_v48, %v5036_v9 }
 0x368   : > { %2162 = vst [vmem:[%s4893_s26 + $0x460] sm:$0xff] %v1713_v28  ;;  %2171 = vst [vmem:[%s4893_s26 + $0x4a8] sm:$0xff] %v1978_v47  ;;  %v1981_v21 = vpop.f32.mrb[82].mxu0 }
 0x369   : > { %2163 = vst [vmem:[%s4893_s26 + $0x468] sm:$0xff] %v1715_v32  ;;  %v1718_v44 = vpop.f32.mrb[80].mxu1  ;;  %v1982_v19 = vadd.f32 %v1981_v21, %v5013_v31  ;;  %v1983_v46 = vpop.f32.mrb[83].mxu0 }
 0x36a   : > { %v1719_v20 = vadd.f32 %v1718_v44, %v5031_v40  ;;  %v1720_v34 = vpop.f32.mrb[81].mxu1  ;;  %v1984_v6 = vadd.f32 %v1983_v46, %v5019_v36 }
 0x36b   : > { %2176 = vst [vmem:[%s4893_s26 + $0x4d0] sm:$0xff] %v1982_v19  ;;  %v1721_v14 = vadd.f32 %v1720_v34, %v5036_v9 }
 0x36c   : > { %2168 = vst [vmem:[%s4893_s26 + $0x490] sm:$0xff] %v1719_v20  ;;  %2177 = vst [vmem:[%s4893_s26 + $0x4d8] sm:$0xff] %v1984_v6  ;;  %v1987_v37 = vpop.f32.mrb[84].mxu0 }
 0x36d   : > { %2169 = vst [vmem:[%s4893_s26 + $0x498] sm:$0xff] %v1721_v14  ;;  %v1724_v11 = vpop.f32.mrb[82].mxu1  ;;  %v1988_v58 = vadd.f32 %v1987_v37, %v5013_v31  ;;  %v1989_v59 = vpop.f32.mrb[85].mxu0 }
 0x36e   : > { %v1725_v25 = vadd.f32 %v1724_v11, %v5031_v40  ;;  %v1726_v50 = vpop.f32.mrb[83].mxu1  ;;  %v1990_v39 = vadd.f32 %v1989_v59, %v5019_v36 }
 0x36f   : > { %2182 = vst [vmem:[%s4893_s26 + $0x500] sm:$0xff] %v1988_v58  ;;  %v1727_v30 = vadd.f32 %v1726_v50, %v5036_v9 }
 0x370   : > { %2174 = vst [vmem:[%s4893_s26 + $0x4c0] sm:$0xff] %v1725_v25  ;;  %2183 = vst [vmem:[%s4893_s26 + $0x508] sm:$0xff] %v1990_v39  ;;  %v1993_v24 = vpop.f32.mrb[86].mxu0 }
 0x371   : > { %2175 = vst [vmem:[%s4893_s26 + $0x4c8] sm:$0xff] %v1727_v30  ;;  %v1730_v51 = vpop.f32.mrb[84].mxu1  ;;  %v1994_v41 = vadd.f32 %v1993_v24, %v5013_v31  ;;  %v1995_v29 = vpop.f32.mrb[87].mxu0 }
 0x372   : > { %v1731_v12 = vadd.f32 %v1730_v51, %v5031_v40  ;;  %v1732_v63 = vpop.f32.mrb[85].mxu1  ;;  %v1996_v10 = vadd.f32 %v1995_v29, %v5019_v36 }
 0x373   : > { %2188 = vst [vmem:[%s4893_s26 + $0x530] sm:$0xff] %v1994_v41  ;;  %v1733_v42 = vadd.f32 %v1732_v63, %v5036_v9 }
 0x374   : > { %2180 = vst [vmem:[%s4893_s26 + $0x4f0] sm:$0xff] %v1731_v12  ;;  %2189 = vst [vmem:[%s4893_s26 + $0x538] sm:$0xff] %v1996_v10  ;;  %v1999_v4 = vpop.f32.mrb[88].mxu0 }
 0x375   : > { %2181 = vst [vmem:[%s4893_s26 + $0x4f8] sm:$0xff] %v1733_v42  ;;  %v1736_v56 = vpop.f32.mrb[86].mxu1  ;;  %v2000_v3 = vadd.f32 %v1999_v4, %v5013_v31  ;;  %v2001_v26 = vpop.f32.mrb[89].mxu0 }
 0x376   : > { %v1737_v55 = vadd.f32 %v1736_v56, %v5031_v40  ;;  %v1738_v5 = vpop.f32.mrb[87].mxu1  ;;  %v2002_v33 = vadd.f32 %v2001_v26, %v5019_v36 }
 0x377   : > { %2194 = vst [vmem:[%s4893_s26 + $0x560] sm:$0xff] %v2000_v3  ;;  %v1739_v18 = vadd.f32 %v1738_v5, %v5036_v9 }
 0x378   : > { %2186 = vst [vmem:[%s4893_s26 + $0x520] sm:$0xff] %v1737_v55  ;;  %2195 = vst [vmem:[%s4893_s26 + $0x568] sm:$0xff] %v2002_v33  ;;  %v2005_v57 = vpop.f32.mrb[90].mxu0 }
 0x379   : > { %2187 = vst [vmem:[%s4893_s26 + $0x528] sm:$0xff] %v1739_v18  ;;  %v1742_v8 = vpop.f32.mrb[88].mxu1  ;;  %v2006_v35 = vadd.f32 %v2005_v57, %v5013_v31  ;;  %v2007_v61 = vpop.f32.mrb[91].mxu0 }
 0x37a   : > { %v1743_v15 = vadd.f32 %v1742_v8, %v5031_v40  ;;  %v1744_v17 = vpop.f32.mrb[89].mxu1  ;;  %v2008_v2 = vadd.f32 %v2007_v61, %v5019_v36 }
 0x37b   : > { %2200 = vst [vmem:[%s4893_s26 + $0x590] sm:$0xff] %v2006_v35  ;;  %v1745_v53 = vadd.f32 %v1744_v17, %v5036_v9 }
 0x37c   : > { %2192 = vst [vmem:[%s4893_s26 + $0x550] sm:$0xff] %v1743_v15  ;;  %2201 = vst [vmem:[%s4893_s26 + $0x598] sm:$0xff] %v2008_v2  ;;  %v2011_v49 = vpop.f32.mrb[92].mxu0 }
 0x37d   : > { %2193 = vst [vmem:[%s4893_s26 + $0x558] sm:$0xff] %v1745_v53  ;;  %v1748_v1 = vpop.f32.mrb[90].mxu1  ;;  %v2012_v52 = vadd.f32 %v2011_v49, %v5013_v31  ;;  %v2013_v43 = vpop.f32.mrb[93].mxu0 }
 0x37e   : > { %v1749_v27 = vadd.f32 %v1748_v1, %v5031_v40  ;;  %v1750_v38 = vpop.f32.mrb[91].mxu1  ;;  %v2014_v60 = vadd.f32 %v2013_v43, %v5019_v36 }
 0x37f   : > { %2206 = vst [vmem:[%s4893_s26 + $0x5c0] sm:$0xff] %v2012_v52  ;;  %v1751_v45 = vadd.f32 %v1750_v38, %v5036_v9 }
 0x380   : > { %2198 = vst [vmem:[%s4893_s26 + $0x580] sm:$0xff] %v1749_v27  ;;  %2207 = vst [vmem:[%s4893_s26 + $0x5c8] sm:$0xff] %v2014_v60  ;;  %v2017_v0 = vpop.f32.mrb[94].mxu0 }
 0x381   : > { %2199 = vst [vmem:[%s4893_s26 + $0x588] sm:$0xff] %v1751_v45  ;;  %v1754_v7 = vpop.f32.mrb[92].mxu1  ;;  %v2018_v22 = vadd.f32 %v2017_v0, %v5013_v31  ;;  %v2019_v13 = vpop.f32.mrb[95].mxu0 }
 0x382   : > { %v1755_v16 = vadd.f32 %v1754_v7, %v5031_v40  ;;  %v1756_v23 = vpop.f32.mrb[93].mxu1  ;;  %v2020_v54 = vadd.f32 %v2019_v13, %v5019_v36 }
 0x383   : > { %2212 = vst [vmem:[%s4893_s26 + $0x5f0] sm:$0xff] %v2018_v22  ;;  %v1757_v62 = vadd.f32 %v1756_v23, %v5036_v9 }
 0x384   : > { %2204 = vst [vmem:[%s4893_s26 + $0x5b0] sm:$0xff] %v1755_v16  ;;  %2213 = vst [vmem:[%s4893_s26 + $0x5f8] sm:$0xff] %v2020_v54 }
 0x385   : > { %2205 = vst [vmem:[%s4893_s26 + $0x5b8] sm:$0xff] %v1757_v62  ;;  %v1760_v28 = vpop.f32.mrb[94].mxu1 }
 0x386   : > { %v1761_v31 = vadd.f32 %v1760_v28, %v5031_v40  ;;  %v1762_v48 = vpop.f32.mrb[95].mxu1 }
 0x387   : > { %v1763_v36 = vadd.f32 %v1762_v48, %v5036_v9 }
 0x388   : > { %2210 = vst [vmem:[%s4893_s26 + $0x5e0] sm:$0xff] %v1761_v31 }
 0x389   : > { %2211 = vst [vmem:[%s4893_s26 + $0x5e8] sm:$0xff] %v1763_v36 }
 0x38a   : > { %2902 = shalt.err (!%p2899_p12)
}
 0x38b   : > { %s2903_s12 = scalar_lea.hbm %s5295_s15, 24576  ;;  %s2907_s16 = scalar_lea.hbm %s5348_s5, 98304 }
 0x38c   : > { %p2904_p0 = scmp.ne.s32.totalorder %s5295_s15, %s2903_s12  ;;  %p2908_p11 = scmp.lt.u32.totalorder %s5295_s15, %s5348_s5 }
 0x38d   : > { %p2909_p13 = scmp.lt.u32.totalorder %s2907_s16, %s2903_s12  ;;  %p2911_p4 = scmp.lt.u32.totalorder %s2903_s12, %s5295_s15 }
 0x38e   : > { %p2905_p5 = pnand %p2904_p0, %p3158_p1 }
 0x38f   : > { %p2910_p2 = por %p2909_p13, %p2908_p11 }
 0x390   : > { %p2906_p10 = pneg %p2905_p5 }
 0x391   : > { %p2912_p6 = por %p2911_p4, %p2910_p2 }
 0x393   : > { %p2913_p8 = pnand %p2912_p6, %p2906_p10 }
 0x395   : > { %2916 = shalt.err (!%p2913_p8)
}
 0x396   : > { %s2975_s29 = smov 768   ;;  %s2976_s10 = smov 48  }
 0x397   : > { %2608 = dma.vmem_to_hbm [thread:$0]  (%p3158_p1), %s5297_s9, 24576, %s5295_s15, %s2215_s22, %s2975_s29, %s2975_s29, %s2976_s10  }
 0x398 PF: > { %p2640_p3 = scmp.ge.s32.totalorder %s2963_s21, 2  ;;  %s2244_s8 = sand.u32 1, %s2951_s18  }
 0x399   : > { %p5991_p7 = scmp.ne.s32.totalorder %s5560_s25, 0  ;;  %s2245_s23 = scalar_lea.sflag [#allocation4], %s2244_s8 }
 0x39b   : > { %p2628_p9 = pnand %p2640_p3, %p5991_p7 }
 0x39d   : > { %2946 = dma.done.wait (!%p2628_p9), %s2245_s23, 24576  }
 0x39e   : > { %2948 = vsyncadd (!%p2628_p9), %s2245_s23, 4294942720  ;;  %p20_p12 = scmp.ge.s32.totalorder %s3148_s14, 6   ;;  %s5992_s18 = smov %s2955_s19 }
 0x39f   : > { %s5993_s19 = smov %s2959_s20  ;;  %s5994_s20 = smov %s3164_s28 }
 0x3a0   : > { %s5995_s21 = smov %s3148_s14  ;;  %22 = sbr.rel (!%p20_p12) target bundleno = 7 (0x7), region = 101 }
 0x3a7   :  { %2250 = vsyncpa [#allocation3], 1 }
 0x3a8   :  { %2252 = vsyncpa [#allocation3 + $0x1], 1 }
 0x3a9   :  { %2253 = vsyncpa [#allocation6], 1 }
 0x3aa   :  { %2254 = vsyncpa [#allocation9], 1 }
 0x3ab   :  { %2255 = vsyncpa [#allocation4], 1 }
 0x3ac   :  { %2257 = vsyncpa [#allocation4 + $0x1], 1 }

</bundles_post_ra>
